<compile_context>
chip_gen: v5e
topology: v5e:2x2
jax: 0.10.0
libtpu: 0.0.40
codegen_flags: <defaults>
</compile_context>

<pallas_src>
import functools

import jax
import jax.numpy as jnp
from jax import lax
from jax.experimental import pallas as pl
from jax.experimental.pallas import tpu as pltpu

LANE = 128


# ------------------------- small helpers -------------------------

def _round_up(x, m):
    return ((x + m - 1) // m) * m


def _tpu_config():
    """Generation-aware tiling / VMEM budget (v5e/v6e: 128 MiB VMEM; v7x: 64 MiB, 2 TCs)."""
    vmem_bytes = None
    try:
        vmem_bytes = int(pltpu.get_tpu_info().vmem_capacity_bytes)
    except Exception:
        vmem_bytes = None
    if vmem_bytes is not None and vmem_bytes >= (96 << 20):
        # v5e / v6e: single TensorCore, big VMEM -> big row tiles, 2 grid steps already pipeline.
        return {"target_rows": 512, "min_steps": 2, "vmem_limit": 64 << 20}
    # v7x (or unknown): 64 MiB VMEM, 2 TensorCores -> smaller tiles, >=4 grid steps (2 per core).
    return {"target_rows": 256, "min_steps": 4, "vmem_limit": 40 << 20}


def _pick_th(ho, wo, n_imgs, cfg):
    """Output-row tile: divides Ho, th*Wo a multiple of 8 (or full), sized per generation."""
    divs = [d for d in range(1, ho + 1) if ho % d == 0]
    cands = [d for d in divs if (d * wo) % 8 == 0 or d == ho]
    if not cands:
        cands = [ho]
    fit = [d for d in cands if d * wo <= cfg["target_rows"]]
    th = max(fit) if fit else min(cands)
    while n_imgs * (ho // th) < cfg["min_steps"]:
        smaller = [d for d in cands if d < th]
        if not smaller:
            break
        th = max(smaller)
    return th


# ------------------------- the fused conv kernel -------------------------

def _conv_block_kernel(*refs, n_src, taps, th, wo, bn_in, bn_out, resid):
    """3x3 conv over one row-block of output pixels as 9 accumulating tap matmuls.

    refs order: src_0..src_{n_src-1} (resident images), w (9, Cin, Cout) bf16,
                [bn_in scale, shift], [bn_out scale, shift],
                [identity residual row-block] or [shortcut src, scale, shift, w_sc],
                out.
    taps: 9 static (src_index, row_offset, col_offset) triples.
    """
    ix = 0
    srcs = refs[ix:ix + n_src]; ix += n_src
    w_ref = refs[ix]; ix += 1
    if bn_in:
        s_in = refs[ix]; b_in = refs[ix + 1]; ix += 2
    if bn_out:
        s_out = refs[ix]; b_out = refs[ix + 1]; ix += 2
    if resid == "identity":
        res_ref = refs[ix]; ix += 1
    elif resid == "conv":
        sc_ref, s_sc, b_sc, wsc_ref = refs[ix:ix + 4]; ix += 4
    o_ref = refs[ix]

    r = pl.program_id(1)
    ro = r * th
    rows = th * wo

    if bn_in:
        sv = s_in[...]          # (1, Cin)
        bv = b_in[...]
    acc = jnp.zeros((rows, o_ref.shape[-1]), jnp.float32)
    for t, (si, dh, dw) in enumerate(taps):
        slab = srcs[si][pl.ds(ro + dh, th), pl.ds(dw, wo), :]
        a = slab.reshape(rows, slab.shape[-1])
        if bn_in:                                 # bn1 + ReLU prologue; the neutral padding
            a = jnp.maximum(a * sv + bv, 0.0)     # value makes relu(bn1(pad)) exactly 0.
        acc = acc + jnp.dot(a.astype(jnp.bfloat16), w_ref[t],
                            preferred_element_type=jnp.float32)

    if resid == "identity":
        acc = acc + res_ref[...]
    elif resid == "conv":                         # fused 1x1 shortcut on relu(bn1(x))
        sl = sc_ref[pl.ds(ro, th), pl.ds(0, wo), :]
        a = jnp.maximum(sl.reshape(rows, sl.shape[-1]) * s_sc[...] + b_sc[...], 0.0)
        acc = acc + jnp.dot(a.astype(jnp.bfloat16), wsc_ref[...],
                            preferred_element_type=jnp.float32)

    if bn_out:                                    # bn2 + ReLU epilogue
        acc = jnp.maximum(acc * s_out[...] + b_out[...], 0.0)
    o_ref[...] = acc.astype(o_ref.dtype)


def _conv_call(srcs, w_taps, taps, ho, wo, *, bn_in, bn_out, resid, out_dtype, cfg):
    """Launch one fused conv: grid = (images, output-row blocks); sources stay VMEM-resident."""
    n_imgs = srcs[0].shape[0]
    coutp = w_taps.shape[-1]
    th = _pick_th(ho, wo, n_imgs, cfg)
    rows_blk = th * wo
    n_row_blocks = ho // th

    def img_spec(arr):
        _, hs, ws, cs = arr.shape
        return pl.BlockSpec((None, hs, ws, cs), lambda n, r: (n, 0, 0, 0))

    def vec_spec(c):
        return pl.BlockSpec((1, c), lambda n, r: (0, 0))

    row_spec = pl.BlockSpec((None, rows_blk, coutp), lambda n, r: (n, r, 0))

    in_specs, operands = [], []
    for s in srcs:
        in_specs.append(img_spec(s)); operands.append(s)
    in_specs.append(pl.BlockSpec(w_taps.shape, lambda n, r: (0, 0, 0)))
    operands.append(w_taps)
    if bn_in is not None:
        c = srcs[0].shape[-1]
        in_specs += [vec_spec(c), vec_spec(c)]
        operands += [bn_in[0].reshape(1, -1), bn_in[1].reshape(1, -1)]
    if bn_out is not None:
        in_specs += [vec_spec(coutp), vec_spec(coutp)]
        operands += [bn_out[0].reshape(1, -1), bn_out[1].reshape(1, -1)]
    resid_mode = None
    if resid is not None:
        resid_mode = resid[0]
        if resid_mode == "identity":
            in_specs.append(row_spec); operands.append(resid[1])
        else:
            _, sc_src, s_sc, b_sc, w_sc = resid
            c = sc_src.shape[-1]
            in_specs += [img_spec(sc_src), vec_spec(c), vec_spec(c),
                         pl.BlockSpec(w_sc.shape, lambda n, r: (0, 0))]
            operands += [sc_src, s_sc.reshape(1, -1), b_sc.reshape(1, -1), w_sc]

    kernel = functools.partial(
        _conv_block_kernel, n_src=len(srcs), taps=tuple(taps), th=th, wo=wo,
        bn_in=bn_in is not None, bn_out=bn_out is not None, resid=resid_mode)

    return pl.pallas_call(
        kernel,
        out_shape=jax.ShapeDtypeStruct((n_imgs, ho * wo, coutp), out_dtype),
        grid=(n_imgs, n_row_blocks),
        in_specs=in_specs,
        out_specs=row_spec,
        compiler_params=pltpu.CompilerParams(
            dimension_semantics=("parallel", "parallel"),
            vmem_limit_bytes=cfg["vmem_limit"]),
    )(*operands)


# ------------------------- conv glue (padding / phase split) -------------------------

def _pad_neutral(x, scale, shift):
    """Spatially pad by 1 with the per-channel value v such that relu(v*scale + shift) == 0.

    This lets bn1+ReLU be fused as a prologue inside the conv kernel while preserving the
    conv's zero-padding semantics (zero-padding applies to relu(bn1(x)), not to x).
    """
    safe = jnp.where(jnp.abs(scale) < 1e-12, 1.0, scale)
    v = (-shift / safe).reshape(1, 1, 1, -1)
    return jnp.pad(x - v, ((0, 0), (1, 1), (1, 1), (0, 0))) + v


def _phase_split(xq):
    """4 phase-subsampled copies of the padded input: stride-2 taps become contiguous slabs."""
    return [xq[:, a::2, b::2, :] for a in (0, 1) for b in (0, 1)]


# ------------------------- BasicBlock / NetworkBlock -------------------------

def basic_block_forward(x, p, stride, equal_in_out, cfg):
    """x: (N,H,W,C) f32 block input (C lane-padded except possibly block 0). Returns y f32."""
    n_imgs, h, w, cin = x.shape
    assert not (equal_in_out and stride != 1), \
        "identity shortcut with stride>1 is unsupported (mirrors the upstream PyTorch code)"
    coutp = p["conv1_w"].shape[-1]
    ho = (h - 1) // stride + 1
    wo = (w - 1) // stride + 1

    # --- conv1: 3x3 stride s; bn1+ReLU fused as prologue, bn2+ReLU fused as epilogue ---
    xq = _pad_neutral(x, p["bn1_scale"], p["bn1_shift"])
    if stride == 1:
        srcs = [xq]
        taps = tuple((0, kh, kw) for kh in range(3) for kw in range(3))
    else:
        assert stride == 2 and h % 2 == 0 and w % 2 == 0
        srcs = _phase_split(xq)
        taps = tuple(((kh % 2) * 2 + (kw % 2), kh // 2, kw // 2)
                     for kh in range(3) for kw in range(3))
    out2 = _conv_call(srcs, p["conv1_w"], taps, ho, wo,
                      bn_in=(p["bn1_scale"], p["bn1_shift"]),
                      bn_out=(p["bn2_scale"], p["bn2_shift"]),
                      resid=None, out_dtype=jnp.bfloat16, cfg=cfg)      # (N, Ho*Wo, Coutp) bf16

    # dropout skipped: dropRate == 0.0
    # --- conv2: 3x3 stride 1; residual (identity or fused 1x1 shortcut) added in epilogue ---
    out2p = jnp.pad(out2.reshape(n_imgs, ho, wo, coutp),
                    ((0, 0), (1, 1), (1, 1), (0, 0)))                   # zero pad of relu'd map
    taps2 = tuple((0, kh, kw) for kh in range(3) for kw in range(3))
    if equal_in_out:
        resid = ("identity", x.reshape(n_imgs, h * w, cin))
    else:
        # center-tap source == x[::s, ::s]; bn1+ReLU + 1x1 matmul happen inside the kernel.
        sc_src = srcs[3] if stride == 2 else x
        resid = ("conv", sc_src, p["bn1_scale"], p["bn1_shift"], p["shortcut_w"])
    y = _conv_call([out2p], p["conv2_w"], taps2, ho, wo,
                   bn_in=None, bn_out=None, resid=resid, out_dtype=jnp.float32, cfg=cfg)
    return y.reshape(n_imgs, ho, wo, coutp)


def network_block_forward(x_nchw, layer_params, *, in_planes, out_planes, stride):
    cfg = _tpu_config()
    coutp = _round_up(out_planes, LANE)
    x = jnp.transpose(x_nchw, (0, 2, 3, 1)).astype(jnp.float32)         # NCHW -> NHWC
    eq0 = (in_planes == out_planes)
    if eq0:
        # identity residual of block 0 needs channel-matched (lane-padded) input
        x = jnp.pad(x, ((0, 0), (0, 0), (0, 0), (0, coutp - in_planes)))
    for i, p in enumerate(layer_params):
        s = stride if i == 0 else 1
        eq = eq0 if i == 0 else True
        x = basic_block_forward(x, p, s, eq, cfg)
    y = x[..., :out_planes]                                             # drop channel padding
    return jnp.transpose(y, (0, 3, 1, 2))                               # back to NCHW


# ------------------------- parameters -------------------------

def make_params(key, nb_layers, in_planes, out_planes):
    """Logical (unpadded, f32) params; BN running stats folded into per-channel scale/shift."""
    eps = 1e-5
    layer_params = []
    for i in range(nb_layers):
        cin = in_planes if i == 0 else out_planes
        keys = jax.random.split(jax.random.fold_in(key, i), 11)
        gamma1 = 1.0 + 0.1 * jax.random.normal(keys[0], (cin,), jnp.float32)
        beta1 = 0.1 * jax.random.normal(keys[1], (cin,), jnp.float32)
        mean1 = 0.1 * jax.random.normal(keys[2], (cin,), jnp.float32)
        var1 = 1.0 + 0.1 * jax.random.uniform(keys[3], (cin,), jnp.float32)
        gamma2 = 1.0 + 0.1 * jax.random.normal(keys[4], (out_planes,), jnp.float32)
        beta2 = 0.1 * jax.random.normal(keys[5], (out_planes,), jnp.float32)
        mean2 = 0.1 * jax.random.normal(keys[6], (out_planes,), jnp.float32)
        var2 = 1.0 + 0.1 * jax.random.uniform(keys[7], (out_planes,), jnp.float32)
        s1 = gamma1 / jnp.sqrt(var1 + eps)
        s2 = gamma2 / jnp.sqrt(var2 + eps)
        p = {
            "bn1_scale": s1, "bn1_shift": beta1 - mean1 * s1,
            "bn2_scale": s2, "bn2_shift": beta2 - mean2 * s2,
            "conv1_w": jax.random.normal(keys[8], (3, 3, cin, out_planes), jnp.float32)
                       * (2.0 / (9 * cin)) ** 0.5,
            "conv2_w": jax.random.normal(keys[9], (3, 3, out_planes, out_planes), jnp.float32)
                       * (2.0 / (9 * out_planes)) ** 0.5,
        }
        if i == 0 and in_planes != out_planes:
            p["shortcut_w"] = (jax.random.normal(keys[10], (cin, out_planes), jnp.float32)
                               * (2.0 / cin) ** 0.5)
        layer_params.append(p)
    return layer_params


def prepare_pallas_params(layer_params, in_planes, out_planes):
    """Pad only the output/lane channel dim to 128; keep block-0's contraction channels natural.
    Conv weights become (9, Cin, Coutp) bf16 per-tap matrices."""
    coutp = _round_up(out_planes, LANE)

    def pad_vec(v, n):
        return jnp.pad(v, (0, n - v.shape[0]))

    prepared = []
    for i, p in enumerate(layer_params):
        cin = in_planes if i == 0 else out_planes
        # block 0 keeps its natural (unpadded) cin unless the identity shortcut forces padding
        cin_eff = coutp if (i > 0 or in_planes == out_planes) else cin
        q = {
            "bn1_scale": pad_vec(p["bn1_scale"], cin_eff),
            "bn1_shift": pad_vec(p["bn1_shift"], cin_eff),
            "bn2_scale": pad_vec(p["bn2_scale"], coutp),
            "bn2_shift": pad_vec(p["bn2_shift"], coutp),
        }
        w1 = jnp.pad(p["conv1_w"],
                     ((0, 0), (0, 0), (0, cin_eff - cin), (0, coutp - out_planes)))
        q["conv1_w"] = w1.reshape(9, cin_eff, coutp).astype(jnp.bfloat16)
        w2 = jnp.pad(p["conv2_w"],
                     ((0, 0), (0, 0), (0, coutp - out_planes), (0, coutp - out_planes)))
        q["conv2_w"] = w2.reshape(9, coutp, coutp).astype(jnp.bfloat16)
        if "shortcut_w" in p:
            ws = jnp.pad(p["shortcut_w"], ((0, cin_eff - cin), (0, coutp - out_planes)))
            q["shortcut_w"] = ws.astype(jnp.bfloat16)
        prepared.append(q)
    return prepared


# ------------------- pure-JAX reference (bf16 matmul operands, f32 accum) -------------------

def _ref_conv3x3(x, w, stride):
    return lax.conv_general_dilated(
        x.astype(jnp.bfloat16), w.astype(jnp.bfloat16), (stride, stride), ((1, 1), (1, 1)),
        dimension_numbers=("NHWC", "HWIO", "NHWC"), preferred_element_type=jnp.float32)


def _ref_conv1x1(x, w, stride):
    return lax.conv_general_dilated(
        x.astype(jnp.bfloat16), w.reshape(1, 1, *w.shape).astype(jnp.bfloat16),
        (stride, stride), ((0, 0), (0, 0)),
        dimension_numbers=("NHWC", "HWIO", "NHWC"), preferred_element_type=jnp.float32)


def reference_forward(x_nchw, layer_params, in_planes, out_planes, stride):
    x = jnp.transpose(x_nchw, (0, 2, 3, 1)).astype(jnp.float32)
    for i, p in enumerate(layer_params):
        s = stride if i == 0 else 1
        eq = (in_planes == out_planes) if i == 0 else True
        a = jnp.maximum(x * p["bn1_scale"] + p["bn1_shift"], 0.0)
        out = _ref_conv3x3(a, p["conv1_w"], s)
        res = x if eq else _ref_conv1x1(a, p["shortcut_w"], s)
        out = jnp.maximum(out * p["bn2_scale"] + p["bn2_shift"], 0.0)
        x = _ref_conv3x3(out, p["conv2_w"], 1) + res
    return jnp.transpose(x, (0, 3, 1, 2))


# ------------------------- main -------------------------

if __name__ == "__main__":
    key = jax.random.PRNGKey(0)
    N, in_planes, out_planes, H, W = 2, 4, 8, 16, 16
    nb_layers, stride = 2, 2

    kx, kp = jax.random.split(key)
    x = jax.random.normal(kx, (N, in_planes, H, W), jnp.float32)  # NCHW, like PyTorch
    params = make_params(kp, nb_layers, in_planes, out_planes)
    pallas_params = prepare_pallas_params(params, in_planes, out_planes)

    fwd = jax.jit(functools.partial(network_block_forward,
                                    in_planes=in_planes, out_planes=out_planes, stride=stride))
    y = fwd(x, pallas_params)
    y = jax.block_until_ready(y)

    y_ref = reference_forward(x, params, in_planes, out_planes, stride)
    assert y.shape == (N, out_planes, H // stride, W // stride), y.shape
    assert jnp.allclose(y, y_ref, atol=1e-2, rtol=1e-2), "mismatch vs pure-JAX reference"

    print("KERNEL_OK")
</pallas_src>

<mosaic_0001>
module attributes {stable_mosaic.version = 11 : i64} {
  func.func @_conv_block_kernel(%arg0: i32, %arg1: i32, %arg2: memref<1x10x10x128xf32, #tpu.memory_space<vmem>>, %arg3: memref<9x128x128xbf16, #tpu.memory_space<vmem>>, %arg4: memref<1x128xf32, #tpu.memory_space<vmem>>, %arg5: memref<1x128xf32, #tpu.memory_space<vmem>>, %arg6: memref<1x128xf32, #tpu.memory_space<vmem>>, %arg7: memref<1x128xf32, #tpu.memory_space<vmem>>, %arg8: memref<1x32x128xbf16, #tpu.memory_space<vmem>>) attributes {dimension_semantics = [#tpu.dimension_semantics<parallel>, #tpu.dimension_semantics<parallel>], iteration_bounds = array<i64: 2, 2>, scalar_prefetch = 0 : i64, scratch_operands = 0 : i64, tpu.core_type = #tpu.core_type<tc>, window_params = [{transform_indices = @transform_0, window_bounds = array<i64: 1, 10, 10, 128>}, {pipeline_mode = #tpu.pipeline_mode<synchronous>, transform_indices = @transform_1, window_bounds = array<i64: 9, 128, 128>}, {pipeline_mode = #tpu.pipeline_mode<synchronous>, transform_indices = @transform_2, window_bounds = array<i64: 1, 128>}, {pipeline_mode = #tpu.pipeline_mode<synchronous>, transform_indices = @transform_3, window_bounds = array<i64: 1, 128>}, {pipeline_mode = #tpu.pipeline_mode<synchronous>, transform_indices = @transform_4, window_bounds = array<i64: 1, 128>}, {pipeline_mode = #tpu.pipeline_mode<synchronous>, transform_indices = @transform_5, window_bounds = array<i64: 1, 128>}, {transform_indices = @transform_6, window_bounds = array<i64: 1, 32, 128>}]} {
    %c4_i32 = arith.constant 4 : i32
    %0 = arith.muli %arg1, %c4_i32 : i32
    %c0 = arith.constant 0 : index
    %c0_0 = arith.constant 0 : index
    %1 = vector.load %arg4[%c0, %c0_0] : memref<1x128xf32, #tpu.memory_space<vmem>>, vector<1x128xf32>
    %c0_1 = arith.constant 0 : index
    %c0_2 = arith.constant 0 : index
    %2 = vector.load %arg5[%c0_1, %c0_2] : memref<1x128xf32, #tpu.memory_space<vmem>>, vector<1x128xf32>
    %cst = arith.constant 0.000000e+00 : f32
    %3 = vector.broadcast %cst : f32 to vector<32x128xf32>
    %c0_i32 = arith.constant 0 : i32
    %4 = arith.addi %0, %c0_i32 : i32
    %c0_3 = arith.constant 0 : index
    %5 = arith.index_cast %4 : i32 to index
    %c0_4 = arith.constant 0 : index
    %c0_5 = arith.constant 0 : index
    %6 = vector.load %arg2[%c0_3, %5, %c0_4, %c0_5] : memref<1x10x10x128xf32, #tpu.memory_space<vmem>>, vector<1x4x8x128xf32>
    %7 = vector.shape_cast %6 : vector<1x4x8x128xf32> to vector<4x8x128xf32>
    %8 = vector.shape_cast %7 : vector<4x8x128xf32> to vector<32x128xf32>
    %9 = vector.broadcast %1 : vector<1x128xf32> to vector<32x128xf32>
    %10 = arith.mulf %8, %9 : vector<32x128xf32>
    %11 = vector.broadcast %2 : vector<1x128xf32> to vector<32x128xf32>
    %12 = arith.addf %10, %11 : vector<32x128xf32>
    %cst_6 = arith.constant 0.000000e+00 : f32
    %13 = vector.broadcast %cst_6 : f32 to vector<32x128xf32>
    %14 = arith.maximumf %12, %13 : vector<32x128xf32>
    %15 = arith.truncf %14 : vector<32x128xf32> to vector<32x128xbf16>
    %c0_7 = arith.constant 0 : index
    %c0_8 = arith.constant 0 : index
    %c0_9 = arith.constant 0 : index
    %16 = vector.load %arg3[%c0_7, %c0_8, %c0_9] : memref<9x128x128xbf16, #tpu.memory_space<vmem>>, vector<1x128x128xbf16>
    %17 = vector.shape_cast %16 : vector<1x128x128xbf16> to vector<128x128xbf16>
    %cst_10 = arith.constant dense<0.000000e+00> : vector<32x128xf32>
    %18 = tpu.matmul %15, %17, %cst_10 {dimension_numbers = #tpu.dot_dimension_numbers<[1], [0], [0], [1], [0, 0, 1, 1], [], []>} : vector<32x128xbf16>, vector<128x128xbf16>, vector<32x128xf32> -> vector<32x128xf32>
    %19 = arith.addf %3, %18 : vector<32x128xf32>
    %c0_i32_11 = arith.constant 0 : i32
    %20 = arith.addi %0, %c0_i32_11 : i32
    %c0_12 = arith.constant 0 : index
    %21 = arith.index_cast %20 : i32 to index
    %c1 = arith.constant 1 : index
    %c0_13 = arith.constant 0 : index
    %22 = vector.load %arg2[%c0_12, %21, %c1, %c0_13] : memref<1x10x10x128xf32, #tpu.memory_space<vmem>>, vector<1x4x8x128xf32>
    %23 = vector.shape_cast %22 : vector<1x4x8x128xf32> to vector<4x8x128xf32>
    %24 = vector.shape_cast %23 : vector<4x8x128xf32> to vector<32x128xf32>
    %25 = vector.broadcast %1 : vector<1x128xf32> to vector<32x128xf32>
    %26 = arith.mulf %24, %25 : vector<32x128xf32>
    %27 = vector.broadcast %2 : vector<1x128xf32> to vector<32x128xf32>
    %28 = arith.addf %26, %27 : vector<32x128xf32>
    %cst_14 = arith.constant 0.000000e+00 : f32
    %29 = vector.broadcast %cst_14 : f32 to vector<32x128xf32>
    %30 = arith.maximumf %28, %29 : vector<32x128xf32>
    %31 = arith.truncf %30 : vector<32x128xf32> to vector<32x128xbf16>
    %c1_15 = arith.constant 1 : index
    %c0_16 = arith.constant 0 : index
    %c0_17 = arith.constant 0 : index
    %32 = vector.load %arg3[%c1_15, %c0_16, %c0_17] : memref<9x128x128xbf16, #tpu.memory_space<vmem>>, vector<1x128x128xbf16>
    %33 = vector.shape_cast %32 : vector<1x128x128xbf16> to vector<128x128xbf16>
    %cst_18 = arith.constant dense<0.000000e+00> : vector<32x128xf32>
    %34 = tpu.matmul %31, %33, %cst_18 {dimension_numbers = #tpu.dot_dimension_numbers<[1], [0], [0], [1], [0, 0, 1, 1], [], []>} : vector<32x128xbf16>, vector<128x128xbf16>, vector<32x128xf32> -> vector<32x128xf32>
    %35 = arith.addf %19, %34 : vector<32x128xf32>
    %c0_i32_19 = arith.constant 0 : i32
    %36 = arith.addi %0, %c0_i32_19 : i32
    %c0_20 = arith.constant 0 : index
    %37 = arith.index_cast %36 : i32 to index
    %c2 = arith.constant 2 : index
    %c0_21 = arith.constant 0 : index
    %38 = vector.load %arg2[%c0_20, %37, %c2, %c0_21] : memref<1x10x10x128xf32, #tpu.memory_space<vmem>>, vector<1x4x8x128xf32>
    %39 = vector.shape_cast %38 : vector<1x4x8x128xf32> to vector<4x8x128xf32>
    %40 = vector.shape_cast %39 : vector<4x8x128xf32> to vector<32x128xf32>
    %41 = vector.broadcast %1 : vector<1x128xf32> to vector<32x128xf32>
    %42 = arith.mulf %40, %41 : vector<32x128xf32>
    %43 = vector.broadcast %2 : vector<1x128xf32> to vector<32x128xf32>
    %44 = arith.addf %42, %43 : vector<32x128xf32>
    %cst_22 = arith.constant 0.000000e+00 : f32
    %45 = vector.broadcast %cst_22 : f32 to vector<32x128xf32>
    %46 = arith.maximumf %44, %45 : vector<32x128xf32>
    %47 = arith.truncf %46 : vector<32x128xf32> to vector<32x128xbf16>
    %c2_23 = arith.constant 2 : index
    %c0_24 = arith.constant 0 : index
    %c0_25 = arith.constant 0 : index
    %48 = vector.load %arg3[%c2_23, %c0_24, %c0_25] : memref<9x128x128xbf16, #tpu.memory_space<vmem>>, vector<1x128x128xbf16>
    %49 = vector.shape_cast %48 : vector<1x128x128xbf16> to vector<128x128xbf16>
    %cst_26 = arith.constant dense<0.000000e+00> : vector<32x128xf32>
    %50 = tpu.matmul %47, %49, %cst_26 {dimension_numbers = #tpu.dot_dimension_numbers<[1], [0], [0], [1], [0, 0, 1, 1], [], []>} : vector<32x128xbf16>, vector<128x128xbf16>, vector<32x128xf32> -> vector<32x128xf32>
    %51 = arith.addf %35, %50 : vector<32x128xf32>
    %c1_i32 = arith.constant 1 : i32
    %52 = arith.addi %0, %c1_i32 : i32
    %c0_27 = arith.constant 0 : index
    %53 = arith.index_cast %52 : i32 to index
    %c0_28 = arith.constant 0 : index
    %c0_29 = arith.constant 0 : index
    %54 = vector.load %arg2[%c0_27, %53, %c0_28, %c0_29] : memref<1x10x10x128xf32, #tpu.memory_space<vmem>>, vector<1x4x8x128xf32>
    %55 = vector.shape_cast %54 : vector<1x4x8x128xf32> to vector<4x8x128xf32>
    %56 = vector.shape_cast %55 : vector<4x8x128xf32> to vector<32x128xf32>
    %57 = vector.broadcast %1 : vector<1x128xf32> to vector<32x128xf32>
    %58 = arith.mulf %56, %57 : vector<32x128xf32>
    %59 = vector.broadcast %2 : vector<1x128xf32> to vector<32x128xf32>
    %60 = arith.addf %58, %59 : vector<32x128xf32>
    %cst_30 = arith.constant 0.000000e+00 : f32
    %61 = vector.broadcast %cst_30 : f32 to vector<32x128xf32>
    %62 = arith.maximumf %60, %61 : vector<32x128xf32>
    %63 = arith.truncf %62 : vector<32x128xf32> to vector<32x128xbf16>
    %c3 = arith.constant 3 : index
    %c0_31 = arith.constant 0 : index
    %c0_32 = arith.constant 0 : index
    %64 = vector.load %arg3[%c3, %c0_31, %c0_32] : memref<9x128x128xbf16, #tpu.memory_space<vmem>>, vector<1x128x128xbf16>
    %65 = vector.shape_cast %64 : vector<1x128x128xbf16> to vector<128x128xbf16>
    %cst_33 = arith.constant dense<0.000000e+00> : vector<32x128xf32>
    %66 = tpu.matmul %63, %65, %cst_33 {dimension_numbers = #tpu.dot_dimension_numbers<[1], [0], [0], [1], [0, 0, 1, 1], [], []>} : vector<32x128xbf16>, vector<128x128xbf16>, vector<32x128xf32> -> vector<32x128xf32>
    %67 = arith.addf %51, %66 : vector<32x128xf32>
    %c1_i32_34 = arith.constant 1 : i32
    %68 = arith.addi %0, %c1_i32_34 : i32
    %c0_35 = arith.constant 0 : index
    %69 = arith.index_cast %68 : i32 to index
    %c1_36 = arith.constant 1 : index
    %c0_37 = arith.constant 0 : index
    %70 = vector.load %arg2[%c0_35, %69, %c1_36, %c0_37] : memref<1x10x10x128xf32, #tpu.memory_space<vmem>>, vector<1x4x8x128xf32>
    %71 = vector.shape_cast %70 : vector<1x4x8x128xf32> to vector<4x8x128xf32>
    %72 = vector.shape_cast %71 : vector<4x8x128xf32> to vector<32x128xf32>
    %73 = vector.broadcast %1 : vector<1x128xf32> to vector<32x128xf32>
    %74 = arith.mulf %72, %73 : vector<32x128xf32>
    %75 = vector.broadcast %2 : vector<1x128xf32> to vector<32x128xf32>
    %76 = arith.addf %74, %75 : vector<32x128xf32>
    %cst_38 = arith.constant 0.000000e+00 : f32
    %77 = vector.broadcast %cst_38 : f32 to vector<32x128xf32>
    %78 = arith.maximumf %76, %77 : vector<32x128xf32>
    %79 = arith.truncf %78 : vector<32x128xf32> to vector<32x128xbf16>
    %c4 = arith.constant 4 : index
    %c0_39 = arith.constant 0 : index
    %c0_40 = arith.constant 0 : index
    %80 = vector.load %arg3[%c4, %c0_39, %c0_40] : memref<9x128x128xbf16, #tpu.memory_space<vmem>>, vector<1x128x128xbf16>
    %81 = vector.shape_cast %80 : vector<1x128x128xbf16> to vector<128x128xbf16>
    %cst_41 = arith.constant dense<0.000000e+00> : vector<32x128xf32>
    %82 = tpu.matmul %79, %81, %cst_41 {dimension_numbers = #tpu.dot_dimension_numbers<[1], [0], [0], [1], [0, 0, 1, 1], [], []>} : vector<32x128xbf16>, vector<128x128xbf16>, vector<32x128xf32> -> vector<32x128xf32>
    %83 = arith.addf %67, %82 : vector<32x128xf32>
    %c1_i32_42 = arith.constant 1 : i32
    %84 = arith.addi %0, %c1_i32_42 : i32
    %c0_43 = arith.constant 0 : index
    %85 = arith.index_cast %84 : i32 to index
    %c2_44 = arith.constant 2 : index
    %c0_45 = arith.constant 0 : index
    %86 = vector.load %arg2[%c0_43, %85, %c2_44, %c0_45] : memref<1x10x10x128xf32, #tpu.memory_space<vmem>>, vector<1x4x8x128xf32>
    %87 = vector.shape_cast %86 : vector<1x4x8x128xf32> to vector<4x8x128xf32>
    %88 = vector.shape_cast %87 : vector<4x8x128xf32> to vector<32x128xf32>
    %89 = vector.broadcast %1 : vector<1x128xf32> to vector<32x128xf32>
    %90 = arith.mulf %88, %89 : vector<32x128xf32>
    %91 = vector.broadcast %2 : vector<1x128xf32> to vector<32x128xf32>
    %92 = arith.addf %90, %91 : vector<32x128xf32>
    %cst_46 = arith.constant 0.000000e+00 : f32
    %93 = vector.broadcast %cst_46 : f32 to vector<32x128xf32>
    %94 = arith.maximumf %92, %93 : vector<32x128xf32>
    %95 = arith.truncf %94 : vector<32x128xf32> to vector<32x128xbf16>
    %c5 = arith.constant 5 : index
    %c0_47 = arith.constant 0 : index
    %c0_48 = arith.constant 0 : index
    %96 = vector.load %arg3[%c5, %c0_47, %c0_48] : memref<9x128x128xbf16, #tpu.memory_space<vmem>>, vector<1x128x128xbf16>
    %97 = vector.shape_cast %96 : vector<1x128x128xbf16> to vector<128x128xbf16>
    %cst_49 = arith.constant dense<0.000000e+00> : vector<32x128xf32>
    %98 = tpu.matmul %95, %97, %cst_49 {dimension_numbers = #tpu.dot_dimension_numbers<[1], [0], [0], [1], [0, 0, 1, 1], [], []>} : vector<32x128xbf16>, vector<128x128xbf16>, vector<32x128xf32> -> vector<32x128xf32>
    %99 = arith.addf %83, %98 : vector<32x128xf32>
    %c2_i32 = arith.constant 2 : i32
    %100 = arith.addi %0, %c2_i32 : i32
    %c0_50 = arith.constant 0 : index
    %101 = arith.index_cast %100 : i32 to index
    %c0_51 = arith.constant 0 : index
    %c0_52 = arith.constant 0 : index
    %102 = vector.load %arg2[%c0_50, %101, %c0_51, %c0_52] : memref<1x10x10x128xf32, #tpu.memory_space<vmem>>, vector<1x4x8x128xf32>
    %103 = vector.shape_cast %102 : vector<1x4x8x128xf32> to vector<4x8x128xf32>
    %104 = vector.shape_cast %103 : vector<4x8x128xf32> to vector<32x128xf32>
    %105 = vector.broadcast %1 : vector<1x128xf32> to vector<32x128xf32>
    %106 = arith.mulf %104, %105 : vector<32x128xf32>
    %107 = vector.broadcast %2 : vector<1x128xf32> to vector<32x128xf32>
    %108 = arith.addf %106, %107 : vector<32x128xf32>
    %cst_53 = arith.constant 0.000000e+00 : f32
    %109 = vector.broadcast %cst_53 : f32 to vector<32x128xf32>
    %110 = arith.maximumf %108, %109 : vector<32x128xf32>
    %111 = arith.truncf %110 : vector<32x128xf32> to vector<32x128xbf16>
    %c6 = arith.constant 6 : index
    %c0_54 = arith.constant 0 : index
    %c0_55 = arith.constant 0 : index
    %112 = vector.load %arg3[%c6, %c0_54, %c0_55] : memref<9x128x128xbf16, #tpu.memory_space<vmem>>, vector<1x128x128xbf16>
    %113 = vector.shape_cast %112 : vector<1x128x128xbf16> to vector<128x128xbf16>
    %cst_56 = arith.constant dense<0.000000e+00> : vector<32x128xf32>
    %114 = tpu.matmul %111, %113, %cst_56 {dimension_numbers = #tpu.dot_dimension_numbers<[1], [0], [0], [1], [0, 0, 1, 1], [], []>} : vector<32x128xbf16>, vector<128x128xbf16>, vector<32x128xf32> -> vector<32x128xf32>
    %115 = arith.addf %99, %114 : vector<32x128xf32>
    %c2_i32_57 = arith.constant 2 : i32
    %116 = arith.addi %0, %c2_i32_57 : i32
    %c0_58 = arith.constant 0 : index
    %117 = arith.index_cast %116 : i32 to index
    %c1_59 = arith.constant 1 : index
    %c0_60 = arith.constant 0 : index
    %118 = vector.load %arg2[%c0_58, %117, %c1_59, %c0_60] : memref<1x10x10x128xf32, #tpu.memory_space<vmem>>, vector<1x4x8x128xf32>
    %119 = vector.shape_cast %118 : vector<1x4x8x128xf32> to vector<4x8x128xf32>
    %120 = vector.shape_cast %119 : vector<4x8x128xf32> to vector<32x128xf32>
    %121 = vector.broadcast %1 : vector<1x128xf32> to vector<32x128xf32>
    %122 = arith.mulf %120, %121 : vector<32x128xf32>
    %123 = vector.broadcast %2 : vector<1x128xf32> to vector<32x128xf32>
    %124 = arith.addf %122, %123 : vector<32x128xf32>
    %cst_61 = arith.constant 0.000000e+00 : f32
    %125 = vector.broadcast %cst_61 : f32 to vector<32x128xf32>
    %126 = arith.maximumf %124, %125 : vector<32x128xf32>
    %127 = arith.truncf %126 : vector<32x128xf32> to vector<32x128xbf16>
    %c7 = arith.constant 7 : index
    %c0_62 = arith.constant 0 : index
    %c0_63 = arith.constant 0 : index
    %128 = vector.load %arg3[%c7, %c0_62, %c0_63] : memref<9x128x128xbf16, #tpu.memory_space<vmem>>, vector<1x128x128xbf16>
    %129 = vector.shape_cast %128 : vector<1x128x128xbf16> to vector<128x128xbf16>
    %cst_64 = arith.constant dense<0.000000e+00> : vector<32x128xf32>
    %130 = tpu.matmul %127, %129, %cst_64 {dimension_numbers = #tpu.dot_dimension_numbers<[1], [0], [0], [1], [0, 0, 1, 1], [], []>} : vector<32x128xbf16>, vector<128x128xbf16>, vector<32x128xf32> -> vector<32x128xf32>
    %131 = arith.addf %115, %130 : vector<32x128xf32>
    %c2_i32_65 = arith.constant 2 : i32
    %132 = arith.addi %0, %c2_i32_65 : i32
    %c0_66 = arith.constant 0 : index
    %133 = arith.index_cast %132 : i32 to index
    %c2_67 = arith.constant 2 : index
    %c0_68 = arith.constant 0 : index
    %134 = vector.load %arg2[%c0_66, %133, %c2_67, %c0_68] : memref<1x10x10x128xf32, #tpu.memory_space<vmem>>, vector<1x4x8x128xf32>
    %135 = vector.shape_cast %134 : vector<1x4x8x128xf32> to vector<4x8x128xf32>
    %136 = vector.shape_cast %135 : vector<4x8x128xf32> to vector<32x128xf32>
    %137 = vector.broadcast %1 : vector<1x128xf32> to vector<32x128xf32>
    %138 = arith.mulf %136, %137 : vector<32x128xf32>
    %139 = vector.broadcast %2 : vector<1x128xf32> to vector<32x128xf32>
    %140 = arith.addf %138, %139 : vector<32x128xf32>
    %cst_69 = arith.constant 0.000000e+00 : f32
    %141 = vector.broadcast %cst_69 : f32 to vector<32x128xf32>
    %142 = arith.maximumf %140, %141 : vector<32x128xf32>
    %143 = arith.truncf %142 : vector<32x128xf32> to vector<32x128xbf16>
    %c8 = arith.constant 8 : index
    %c0_70 = arith.constant 0 : index
    %c0_71 = arith.constant 0 : index
    %144 = vector.load %arg3[%c8, %c0_70, %c0_71] : memref<9x128x128xbf16, #tpu.memory_space<vmem>>, vector<1x128x128xbf16>
    %145 = vector.shape_cast %144 : vector<1x128x128xbf16> to vector<128x128xbf16>
    %cst_72 = arith.constant dense<0.000000e+00> : vector<32x128xf32>
    %146 = tpu.matmul %143, %145, %cst_72 {dimension_numbers = #tpu.dot_dimension_numbers<[1], [0], [0], [1], [0, 0, 1, 1], [], []>} : vector<32x128xbf16>, vector<128x128xbf16>, vector<32x128xf32> -> vector<32x128xf32>
    %147 = arith.addf %131, %146 : vector<32x128xf32>
    %c0_73 = arith.constant 0 : index
    %c0_74 = arith.constant 0 : index
    %148 = vector.load %arg6[%c0_73, %c0_74] : memref<1x128xf32, #tpu.memory_space<vmem>>, vector<1x128xf32>
    %149 = vector.broadcast %148 : vector<1x128xf32> to vector<32x128xf32>
    %150 = arith.mulf %147, %149 : vector<32x128xf32>
    %c0_75 = arith.constant 0 : index
    %c0_76 = arith.constant 0 : index
    %151 = vector.load %arg7[%c0_75, %c0_76] : memref<1x128xf32, #tpu.memory_space<vmem>>, vector<1x128xf32>
    %152 = vector.broadcast %151 : vector<1x128xf32> to vector<32x128xf32>
    %153 = arith.addf %150, %152 : vector<32x128xf32>
    %cst_77 = arith.constant 0.000000e+00 : f32
    %154 = vector.broadcast %cst_77 : f32 to vector<32x128xf32>
    %155 = arith.maximumf %153, %154 : vector<32x128xf32>
    %156 = arith.truncf %155 : vector<32x128xf32> to vector<32x128xbf16>
    %c0_78 = arith.constant 0 : index
    %c0_79 = arith.constant 0 : index
    %c0_80 = arith.constant 0 : index
    %157 = vector.load %arg8[%c0_78, %c0_79, %c0_80] : memref<1x32x128xbf16, #tpu.memory_space<vmem>>, vector<1x32x128xbf16>
    %158 = vector.shape_cast %157 : vector<1x32x128xbf16> to vector<32x128xbf16>
    %159 = vector.shape_cast %156 : vector<32x128xbf16> to vector<1x32x128xbf16>
    tpu.vector_store %arg8[%c0_78, %c0_79, %c0_80], %159 {strides = array<i32>} : memref<1x32x128xbf16, #tpu.memory_space<vmem>>, vector<1x32x128xbf16>,
    return
  }
  func.func @transform_0(%arg0: i32, %arg1: i32) -> (i32, i32, i32, i32) {
    %c0_i32 = arith.constant 0 : i32
    %c0_i32_0 = arith.constant 0 : i32
    %c0_i32_1 = arith.constant 0 : i32
    %c0_i32_2 = arith.constant 0 : i32
    return %arg0, %c0_i32, %c0_i32_0, %c0_i32_1 : i32, i32, i32, i32
  }
  func.func @transform_1(%arg0: i32, %arg1: i32) -> (i32, i32, i32) {
    %c0_i32 = arith.constant 0 : i32
    %c0_i32_0 = arith.constant 0 : i32
    %c0_i32_1 = arith.constant 0 : i32
    %c0_i32_2 = arith.constant 0 : i32
    return %c0_i32, %c0_i32_0, %c0_i32_1 : i32, i32, i32
  }
  func.func @transform_2(%arg0: i32, %arg1: i32) -> (i32, i32) {
    %c0_i32 = arith.constant 0 : i32
    %c0_i32_0 = arith.constant 0 : i32
    %c0_i32_1 = arith.constant 0 : i32
    return %c0_i32, %c0_i32_0 : i32, i32
  }
  func.func @transform_3(%arg0: i32, %arg1: i32) -> (i32, i32) {
    %c0_i32 = arith.constant 0 : i32
    %c0_i32_0 = arith.constant 0 : i32
    %c0_i32_1 = arith.constant 0 : i32
    return %c0_i32, %c0_i32_0 : i32, i32
  }
  func.func @transform_4(%arg0: i32, %arg1: i32) -> (i32, i32) {
    %c0_i32 = arith.constant 0 : i32
    %c0_i32_0 = arith.constant 0 : i32
    %c0_i32_1 = arith.constant 0 : i32
    return %c0_i32, %c0_i32_0 : i32, i32
  }
  func.func @transform_5(%arg0: i32, %arg1: i32) -> (i32, i32) {
    %c0_i32 = arith.constant 0 : i32
    %c0_i32_0 = arith.constant 0 : i32
    %c0_i32_1 = arith.constant 0 : i32
    return %c0_i32, %c0_i32_0 : i32, i32
  }
  func.func @transform_6(%arg0: i32, %arg1: i32) -> (i32, i32, i32) {
    %c0_i32 = arith.constant 0 : i32
    %c0_i32_0 = arith.constant 0 : i32
    return %arg0, %arg1, %c0_i32 : i32, i32, i32
  }
}

module attributes {stable_mosaic.version = 11 : i64} {
  func.func @_conv_block_kernel(%arg0: i32, %arg1: i32, %arg2: memref<1x9x9x4xf32, #tpu.memory_space<vmem>>, %arg3: memref<1x9x9x4xf32, #tpu.memory_space<vmem>>, %arg4: memref<1x9x9x4xf32, #tpu.memory_space<vmem>>, %arg5: memref<1x9x9x4xf32, #tpu.memory_space<vmem>>, %arg6: memref<9x4x128xbf16, #tpu.memory_space<vmem>>, %arg7: memref<1x4xf32, #tpu.memory_space<vmem>>, %arg8: memref<1x4xf32, #tpu.memory_space<vmem>>, %arg9: memref<1x128xf32, #tpu.memory_space<vmem>>, %arg10: memref<1x128xf32, #tpu.memory_space<vmem>>, %arg11: memref<1x32x128xbf16, #tpu.memory_space<vmem>>) attributes {dimension_semantics = [#tpu.dimension_semantics<parallel>, #tpu.dimension_semantics<parallel>], iteration_bounds = array<i64: 2, 2>, scalar_prefetch = 0 : i64, scratch_operands = 0 : i64, tpu.core_type = #tpu.core_type<tc>, window_params = [{transform_indices = @transform_0, window_bounds = array<i64: 1, 9, 9, 4>}, {transform_indices = @transform_1, window_bounds = array<i64: 1, 9, 9, 4>}, {transform_indices = @transform_2, window_bounds = array<i64: 1, 9, 9, 4>}, {transform_indices = @transform_3, window_bounds = array<i64: 1, 9, 9, 4>}, {pipeline_mode = #tpu.pipeline_mode<synchronous>, transform_indices = @transform_4, window_bounds = array<i64: 9, 4, 128>}, {pipeline_mode = #tpu.pipeline_mode<synchronous>, transform_indices = @transform_5, window_bounds = array<i64: 1, 4>}, {pipeline_mode = #tpu.pipeline_mode<synchronous>, transform_indices = @transform_6, window_bounds = array<i64: 1, 4>}, {pipeline_mode = #tpu.pipeline_mode<synchronous>, transform_indices = @transform_7, window_bounds = array<i64: 1, 128>}, {pipeline_mode = #tpu.pipeline_mode<synchronous>, transform_indices = @transform_8, window_bounds = array<i64: 1, 128>}, {transform_indices = @transform_9, window_bounds = array<i64: 1, 32, 128>}]} {
    %c4_i32 = arith.constant 4 : i32
    %0 = arith.muli %arg1, %c4_i32 : i32
    %c0 = arith.constant 0 : index
    %c0_0 = arith.constant 0 : index
    %1 = vector.load %arg7[%c0, %c0_0] : memref<1x4xf32, #tpu.memory_space<vmem>>, vector<1x4xf32>
    %c0_1 = arith.constant 0 : index
    %c0_2 = arith.constant 0 : index
    %2 = vector.load %arg8[%c0_1, %c0_2] : memref<1x4xf32, #tpu.memory_space<vmem>>, vector<1x4xf32>
    %cst = arith.constant 0.000000e+00 : f32
    %3 = vector.broadcast %cst : f32 to vector<32x128xf32>
    %c0_i32 = arith.constant 0 : i32
    %4 = arith.addi %0, %c0_i32 : i32
    %c0_3 = arith.constant 0 : index
    %5 = arith.index_cast %4 : i32 to index
    %c0_4 = arith.constant 0 : index
    %c0_5 = arith.constant 0 : index
    %6 = vector.load %arg2[%c0_3, %5, %c0_4, %c0_5] : memref<1x9x9x4xf32, #tpu.memory_space<vmem>>, vector<1x4x8x4xf32>
    %7 = vector.shape_cast %6 : vector<1x4x8x4xf32> to vector<4x8x4xf32>
    %8 = vector.shape_cast %7 : vector<4x8x4xf32> to vector<32x4xf32>
    %9 = vector.broadcast %1 : vector<1x4xf32> to vector<32x4xf32>
    %10 = arith.mulf %8, %9 : vector<32x4xf32>
    %11 = vector.broadcast %2 : vector<1x4xf32> to vector<32x4xf32>
    %12 = arith.addf %10, %11 : vector<32x4xf32>
    %cst_6 = arith.constant 0.000000e+00 : f32
    %13 = vector.broadcast %cst_6 : f32 to vector<32x4xf32>
    %14 = arith.maximumf %12, %13 : vector<32x4xf32>
    %15 = arith.truncf %14 : vector<32x4xf32> to vector<32x4xbf16>
    %c0_7 = arith.constant 0 : index
    %c0_8 = arith.constant 0 : index
    %c0_9 = arith.constant 0 : index
    %16 = vector.load %arg6[%c0_7, %c0_8, %c0_9] : memref<9x4x128xbf16, #tpu.memory_space<vmem>>, vector<1x4x128xbf16>
    %17 = vector.shape_cast %16 : vector<1x4x128xbf16> to vector<4x128xbf16>
    %cst_10 = arith.constant dense<0.000000e+00> : vector<32x128xf32>
    %18 = tpu.matmul %15, %17, %cst_10 {dimension_numbers = #tpu.dot_dimension_numbers<[1], [0], [0], [1], [0, 0, 1, 1], [], []>} : vector<32x4xbf16>, vector<4x128xbf16>, vector<32x128xf32> -> vector<32x128xf32>
    %19 = arith.addf %3, %18 : vector<32x128xf32>
    %c0_i32_11 = arith.constant 0 : i32
    %20 = arith.addi %0, %c0_i32_11 : i32
    %c0_12 = arith.constant 0 : index
    %21 = arith.index_cast %20 : i32 to index
    %c0_13 = arith.constant 0 : index
    %c0_14 = arith.constant 0 : index
    %22 = vector.load %arg3[%c0_12, %21, %c0_13, %c0_14] : memref<1x9x9x4xf32, #tpu.memory_space<vmem>>, vector<1x4x8x4xf32>
    %23 = vector.shape_cast %22 : vector<1x4x8x4xf32> to vector<4x8x4xf32>
    %24 = vector.shape_cast %23 : vector<4x8x4xf32> to vector<32x4xf32>
    %25 = vector.broadcast %1 : vector<1x4xf32> to vector<32x4xf32>
    %26 = arith.mulf %24, %25 : vector<32x4xf32>
    %27 = vector.broadcast %2 : vector<1x4xf32> to vector<32x4xf32>
    %28 = arith.addf %26, %27 : vector<32x4xf32>
    %cst_15 = arith.constant 0.000000e+00 : f32
    %29 = vector.broadcast %cst_15 : f32 to vector<32x4xf32>
    %30 = arith.maximumf %28, %29 : vector<32x4xf32>
    %31 = arith.truncf %30 : vector<32x4xf32> to vector<32x4xbf16>
    %c1 = arith.constant 1 : index
    %c0_16 = arith.constant 0 : index
    %c0_17 = arith.constant 0 : index
    %32 = vector.load %arg6[%c1, %c0_16, %c0_17] : memref<9x4x128xbf16, #tpu.memory_space<vmem>>, vector<1x4x128xbf16>
    %33 = vector.shape_cast %32 : vector<1x4x128xbf16> to vector<4x128xbf16>
    %cst_18 = arith.constant dense<0.000000e+00> : vector<32x128xf32>
    %34 = tpu.matmul %31, %33, %cst_18 {dimension_numbers = #tpu.dot_dimension_numbers<[1], [0], [0], [1], [0, 0, 1, 1], [], []>} : vector<32x4xbf16>, vector<4x128xbf16>, vector<32x128xf32> -> vector<32x128xf32>
    %35 = arith.addf %19, %34 : vector<32x128xf32>
    %c0_i32_19 = arith.constant 0 : i32
    %36 = arith.addi %0, %c0_i32_19 : i32
    %c0_20 = arith.constant 0 : index
    %37 = arith.index_cast %36 : i32 to index
    %c1_21 = arith.constant 1 : index
    %c0_22 = arith.constant 0 : index
    %38 = vector.load %arg2[%c0_20, %37, %c1_21, %c0_22] : memref<1x9x9x4xf32, #tpu.memory_space<vmem>>, vector<1x4x8x4xf32>
    %39 = vector.shape_cast %38 : vector<1x4x8x4xf32> to vector<4x8x4xf32>
    %40 = vector.shape_cast %39 : vector<4x8x4xf32> to vector<32x4xf32>
    %41 = vector.broadcast %1 : vector<1x4xf32> to vector<32x4xf32>
    %42 = arith.mulf %40, %41 : vector<32x4xf32>
    %43 = vector.broadcast %2 : vector<1x4xf32> to vector<32x4xf32>
    %44 = arith.addf %42, %43 : vector<32x4xf32>
    %cst_23 = arith.constant 0.000000e+00 : f32
    %45 = vector.broadcast %cst_23 : f32 to vector<32x4xf32>
    %46 = arith.maximumf %44, %45 : vector<32x4xf32>
    %47 = arith.truncf %46 : vector<32x4xf32> to vector<32x4xbf16>
    %c2 = arith.constant 2 : index
    %c0_24 = arith.constant 0 : index
    %c0_25 = arith.constant 0 : index
    %48 = vector.load %arg6[%c2, %c0_24, %c0_25] : memref<9x4x128xbf16, #tpu.memory_space<vmem>>, vector<1x4x128xbf16>
    %49 = vector.shape_cast %48 : vector<1x4x128xbf16> to vector<4x128xbf16>
    %cst_26 = arith.constant dense<0.000000e+00> : vector<32x128xf32>
    %50 = tpu.matmul %47, %49, %cst_26 {dimension_numbers = #tpu.dot_dimension_numbers<[1], [0], [0], [1], [0, 0, 1, 1], [], []>} : vector<32x4xbf16>, vector<4x128xbf16>, vector<32x128xf32> -> vector<32x128xf32>
    %51 = arith.addf %35, %50 : vector<32x128xf32>
    %c0_i32_27 = arith.constant 0 : i32
    %52 = arith.addi %0, %c0_i32_27 : i32
    %c0_28 = arith.constant 0 : index
    %53 = arith.index_cast %52 : i32 to index
    %c0_29 = arith.constant 0 : index
    %c0_30 = arith.constant 0 : index
    %54 = vector.load %arg4[%c0_28, %53, %c0_29, %c0_30] : memref<1x9x9x4xf32, #tpu.memory_space<vmem>>, vector<1x4x8x4xf32>
    %55 = vector.shape_cast %54 : vector<1x4x8x4xf32> to vector<4x8x4xf32>
    %56 = vector.shape_cast %55 : vector<4x8x4xf32> to vector<32x4xf32>
    %57 = vector.broadcast %1 : vector<1x4xf32> to vector<32x4xf32>
    %58 = arith.mulf %56, %57 : vector<32x4xf32>
    %59 = vector.broadcast %2 : vector<1x4xf32> to vector<32x4xf32>
    %60 = arith.addf %58, %59 : vector<32x4xf32>
    %cst_31 = arith.constant 0.000000e+00 : f32
    %61 = vector.broadcast %cst_31 : f32 to vector<32x4xf32>
    %62 = arith.maximumf %60, %61 : vector<32x4xf32>
    %63 = arith.truncf %62 : vector<32x4xf32> to vector<32x4xbf16>
    %c3 = arith.constant 3 : index
    %c0_32 = arith.constant 0 : index
    %c0_33 = arith.constant 0 : index
    %64 = vector.load %arg6[%c3, %c0_32, %c0_33] : memref<9x4x128xbf16, #tpu.memory_space<vmem>>, vector<1x4x128xbf16>
    %65 = vector.shape_cast %64 : vector<1x4x128xbf16> to vector<4x128xbf16>
    %cst_34 = arith.constant dense<0.000000e+00> : vector<32x128xf32>
    %66 = tpu.matmul %63, %65, %cst_34 {dimension_numbers = #tpu.dot_dimension_numbers<[1], [0], [0], [1], [0, 0, 1, 1], [], []>} : vector<32x4xbf16>, vector<4x128xbf16>, vector<32x128xf32> -> vector<32x128xf32>
    %67 = arith.addf %51, %66 : vector<32x128xf32>
    %c0_i32_35 = arith.constant 0 : i32
    %68 = arith.addi %0, %c0_i32_35 : i32
    %c0_36 = arith.constant 0 : index
    %69 = arith.index_cast %68 : i32 to index
    %c0_37 = arith.constant 0 : index
    %c0_38 = arith.constant 0 : index
    %70 = vector.load %arg5[%c0_36, %69, %c0_37, %c0_38] : memref<1x9x9x4xf32, #tpu.memory_space<vmem>>, vector<1x4x8x4xf32>
    %71 = vector.shape_cast %70 : vector<1x4x8x4xf32> to vector<4x8x4xf32>
    %72 = vector.shape_cast %71 : vector<4x8x4xf32> to vector<32x4xf32>
    %73 = vector.broadcast %1 : vector<1x4xf32> to vector<32x4xf32>
    %74 = arith.mulf %72, %73 : vector<32x4xf32>
    %75 = vector.broadcast %2 : vector<1x4xf32> to vector<32x4xf32>
    %76 = arith.addf %74, %75 : vector<32x4xf32>
    %cst_39 = arith.constant 0.000000e+00 : f32
    %77 = vector.broadcast %cst_39 : f32 to vector<32x4xf32>
    %78 = arith.maximumf %76, %77 : vector<32x4xf32>
    %79 = arith.truncf %78 : vector<32x4xf32> to vector<32x4xbf16>
    %c4 = arith.constant 4 : index
    %c0_40 = arith.constant 0 : index
    %c0_41 = arith.constant 0 : index
    %80 = vector.load %arg6[%c4, %c0_40, %c0_41] : memref<9x4x128xbf16, #tpu.memory_space<vmem>>, vector<1x4x128xbf16>
    %81 = vector.shape_cast %80 : vector<1x4x128xbf16> to vector<4x128xbf16>
    %cst_42 = arith.constant dense<0.000000e+00> : vector<32x128xf32>
    %82 = tpu.matmul %79, %81, %cst_42 {dimension_numbers = #tpu.dot_dimension_numbers<[1], [0], [0], [1], [0, 0, 1, 1], [], []>} : vector<32x4xbf16>, vector<4x128xbf16>, vector<32x128xf32> -> vector<32x128xf32>
    %83 = arith.addf %67, %82 : vector<32x128xf32>
    %c0_i32_43 = arith.constant 0 : i32
    %84 = arith.addi %0, %c0_i32_43 : i32
    %c0_44 = arith.constant 0 : index
    %85 = arith.index_cast %84 : i32 to index
    %c1_45 = arith.constant 1 : index
    %c0_46 = arith.constant 0 : index
    %86 = vector.load %arg4[%c0_44, %85, %c1_45, %c0_46] : memref<1x9x9x4xf32, #tpu.memory_space<vmem>>, vector<1x4x8x4xf32>
    %87 = vector.shape_cast %86 : vector<1x4x8x4xf32> to vector<4x8x4xf32>
    %88 = vector.shape_cast %87 : vector<4x8x4xf32> to vector<32x4xf32>
    %89 = vector.broadcast %1 : vector<1x4xf32> to vector<32x4xf32>
    %90 = arith.mulf %88, %89 : vector<32x4xf32>
    %91 = vector.broadcast %2 : vector<1x4xf32> to vector<32x4xf32>
    %92 = arith.addf %90, %91 : vector<32x4xf32>
    %cst_47 = arith.constant 0.000000e+00 : f32
    %93 = vector.broadcast %cst_47 : f32 to vector<32x4xf32>
    %94 = arith.maximumf %92, %93 : vector<32x4xf32>
    %95 = arith.truncf %94 : vector<32x4xf32> to vector<32x4xbf16>
    %c5 = arith.constant 5 : index
    %c0_48 = arith.constant 0 : index
    %c0_49 = arith.constant 0 : index
    %96 = vector.load %arg6[%c5, %c0_48, %c0_49] : memref<9x4x128xbf16, #tpu.memory_space<vmem>>, vector<1x4x128xbf16>
    %97 = vector.shape_cast %96 : vector<1x4x128xbf16> to vector<4x128xbf16>
    %cst_50 = arith.constant dense<0.000000e+00> : vector<32x128xf32>
    %98 = tpu.matmul %95, %97, %cst_50 {dimension_numbers = #tpu.dot_dimension_numbers<[1], [0], [0], [1], [0, 0, 1, 1], [], []>} : vector<32x4xbf16>, vector<4x128xbf16>, vector<32x128xf32> -> vector<32x128xf32>
    %99 = arith.addf %83, %98 : vector<32x128xf32>
    %c1_i32 = arith.constant 1 : i32
    %100 = arith.addi %0, %c1_i32 : i32
    %c0_51 = arith.constant 0 : index
    %101 = arith.index_cast %100 : i32 to index
    %c0_52 = arith.constant 0 : index
    %c0_53 = arith.constant 0 : index
    %102 = vector.load %arg2[%c0_51, %101, %c0_52, %c0_53] : memref<1x9x9x4xf32, #tpu.memory_space<vmem>>, vector<1x4x8x4xf32>
    %103 = vector.shape_cast %102 : vector<1x4x8x4xf32> to vector<4x8x4xf32>
    %104 = vector.shape_cast %103 : vector<4x8x4xf32> to vector<32x4xf32>
    %105 = vector.broadcast %1 : vector<1x4xf32> to vector<32x4xf32>
    %106 = arith.mulf %104, %105 : vector<32x4xf32>
    %107 = vector.broadcast %2 : vector<1x4xf32> to vector<32x4xf32>
    %108 = arith.addf %106, %107 : vector<32x4xf32>
    %cst_54 = arith.constant 0.000000e+00 : f32
    %109 = vector.broadcast %cst_54 : f32 to vector<32x4xf32>
    %110 = arith.maximumf %108, %109 : vector<32x4xf32>
    %111 = arith.truncf %110 : vector<32x4xf32> to vector<32x4xbf16>
    %c6 = arith.constant 6 : index
    %c0_55 = arith.constant 0 : index
    %c0_56 = arith.constant 0 : index
    %112 = vector.load %arg6[%c6, %c0_55, %c0_56] : memref<9x4x128xbf16, #tpu.memory_space<vmem>>, vector<1x4x128xbf16>
    %113 = vector.shape_cast %112 : vector<1x4x128xbf16> to vector<4x128xbf16>
    %cst_57 = arith.constant dense<0.000000e+00> : vector<32x128xf32>
    %114 = tpu.matmul %111, %113, %cst_57 {dimension_numbers = #tpu.dot_dimension_numbers<[1], [0], [0], [1], [0, 0, 1, 1], [], []>} : vector<32x4xbf16>, vector<4x128xbf16>, vector<32x128xf32> -> vector<32x128xf32>
    %115 = arith.addf %99, %114 : vector<32x128xf32>
    %c1_i32_58 = arith.constant 1 : i32
    %116 = arith.addi %0, %c1_i32_58 : i32
    %c0_59 = arith.constant 0 : index
    %117 = arith.index_cast %116 : i32 to index
    %c0_60 = arith.constant 0 : index
    %c0_61 = arith.constant 0 : index
    %118 = vector.load %arg3[%c0_59, %117, %c0_60, %c0_61] : memref<1x9x9x4xf32, #tpu.memory_space<vmem>>, vector<1x4x8x4xf32>
    %119 = vector.shape_cast %118 : vector<1x4x8x4xf32> to vector<4x8x4xf32>
    %120 = vector.shape_cast %119 : vector<4x8x4xf32> to vector<32x4xf32>
    %121 = vector.broadcast %1 : vector<1x4xf32> to vector<32x4xf32>
    %122 = arith.mulf %120, %121 : vector<32x4xf32>
    %123 = vector.broadcast %2 : vector<1x4xf32> to vector<32x4xf32>
    %124 = arith.addf %122, %123 : vector<32x4xf32>
    %cst_62 = arith.constant 0.000000e+00 : f32
    %125 = vector.broadcast %cst_62 : f32 to vector<32x4xf32>
    %126 = arith.maximumf %124, %125 : vector<32x4xf32>
    %127 = arith.truncf %126 : vector<32x4xf32> to vector<32x4xbf16>
    %c7 = arith.constant 7 : index
    %c0_63 = arith.constant 0 : index
    %c0_64 = arith.constant 0 : index
    %128 = vector.load %arg6[%c7, %c0_63, %c0_64] : memref<9x4x128xbf16, #tpu.memory_space<vmem>>, vector<1x4x128xbf16>
    %129 = vector.shape_cast %128 : vector<1x4x128xbf16> to vector<4x128xbf16>
    %cst_65 = arith.constant dense<0.000000e+00> : vector<32x128xf32>
    %130 = tpu.matmul %127, %129, %cst_65 {dimension_numbers = #tpu.dot_dimension_numbers<[1], [0], [0], [1], [0, 0, 1, 1], [], []>} : vector<32x4xbf16>, vector<4x128xbf16>, vector<32x128xf32> -> vector<32x128xf32>
    %131 = arith.addf %115, %130 : vector<32x128xf32>
    %c1_i32_66 = arith.constant 1 : i32
    %132 = arith.addi %0, %c1_i32_66 : i32
    %c0_67 = arith.constant 0 : index
    %133 = arith.index_cast %132 : i32 to index
    %c1_68 = arith.constant 1 : index
    %c0_69 = arith.constant 0 : index
    %134 = vector.load %arg2[%c0_67, %133, %c1_68, %c0_69] : memref<1x9x9x4xf32, #tpu.memory_space<vmem>>, vector<1x4x8x4xf32>
    %135 = vector.shape_cast %134 : vector<1x4x8x4xf32> to vector<4x8x4xf32>
    %136 = vector.shape_cast %135 : vector<4x8x4xf32> to vector<32x4xf32>
    %137 = vector.broadcast %1 : vector<1x4xf32> to vector<32x4xf32>
    %138 = arith.mulf %136, %137 : vector<32x4xf32>
    %139 = vector.broadcast %2 : vector<1x4xf32> to vector<32x4xf32>
    %140 = arith.addf %138, %139 : vector<32x4xf32>
    %cst_70 = arith.constant 0.000000e+00 : f32
    %141 = vector.broadcast %cst_70 : f32 to vector<32x4xf32>
    %142 = arith.maximumf %140, %141 : vector<32x4xf32>
    %143 = arith.truncf %142 : vector<32x4xf32> to vector<32x4xbf16>
    %c8 = arith.constant 8 : index
    %c0_71 = arith.constant 0 : index
    %c0_72 = arith.constant 0 : index
    %144 = vector.load %arg6[%c8, %c0_71, %c0_72] : memref<9x4x128xbf16, #tpu.memory_space<vmem>>, vector<1x4x128xbf16>
    %145 = vector.shape_cast %144 : vector<1x4x128xbf16> to vector<4x128xbf16>
    %cst_73 = arith.constant dense<0.000000e+00> : vector<32x128xf32>
    %146 = tpu.matmul %143, %145, %cst_73 {dimension_numbers = #tpu.dot_dimension_numbers<[1], [0], [0], [1], [0, 0, 1, 1], [], []>} : vector<32x4xbf16>, vector<4x128xbf16>, vector<32x128xf32> -> vector<32x128xf32>
    %147 = arith.addf %131, %146 : vector<32x128xf32>
    %c0_74 = arith.constant 0 : index
    %c0_75 = arith.constant 0 : index
    %148 = vector.load %arg9[%c0_74, %c0_75] : memref<1x128xf32, #tpu.memory_space<vmem>>, vector<1x128xf32>
    %149 = vector.broadcast %148 : vector<1x128xf32> to vector<32x128xf32>
    %150 = arith.mulf %147, %149 : vector<32x128xf32>
    %c0_76 = arith.constant 0 : index
    %c0_77 = arith.constant 0 : index
    %151 = vector.load %arg10[%c0_76, %c0_77] : memref<1x128xf32, #tpu.memory_space<vmem>>, vector<1x128xf32>
    %152 = vector.broadcast %151 : vector<1x128xf32> to vector<32x128xf32>
    %153 = arith.addf %150, %152 : vector<32x128xf32>
    %cst_78 = arith.constant 0.000000e+00 : f32
    %154 = vector.broadcast %cst_78 : f32 to vector<32x128xf32>
    %155 = arith.maximumf %153, %154 : vector<32x128xf32>
    %156 = arith.truncf %155 : vector<32x128xf32> to vector<32x128xbf16>
    %c0_79 = arith.constant 0 : index
    %c0_80 = arith.constant 0 : index
    %c0_81 = arith.constant 0 : index
    %157 = vector.load %arg11[%c0_79, %c0_80, %c0_81] : memref<1x32x128xbf16, #tpu.memory_space<vmem>>, vector<1x32x128xbf16>
    %158 = vector.shape_cast %157 : vector<1x32x128xbf16> to vector<32x128xbf16>
    %159 = vector.shape_cast %156 : vector<32x128xbf16> to vector<1x32x128xbf16>
    tpu.vector_store %arg11[%c0_79, %c0_80, %c0_81], %159 {strides = array<i32>} : memref<1x32x128xbf16, #tpu.memory_space<vmem>>, vector<1x32x128xbf16>,
    return
  }
  func.func @transform_0(%arg0: i32, %arg1: i32) -> (i32, i32, i32, i32) {
    %c0_i32 = arith.constant 0 : i32
    %c0_i32_0 = arith.constant 0 : i32
    %c0_i32_1 = arith.constant 0 : i32
    %c0_i32_2 = arith.constant 0 : i32
    return %arg0, %c0_i32, %c0_i32_0, %c0_i32_1 : i32, i32, i32, i32
  }
  func.func @transform_1(%arg0: i32, %arg1: i32) -> (i32, i32, i32, i32) {
    %c0_i32 = arith.constant 0 : i32
    %c0_i32_0 = arith.constant 0 : i32
    %c0_i32_1 = arith.constant 0 : i32
    %c0_i32_2 = arith.constant 0 : i32
    return %arg0, %c0_i32, %c0_i32_0, %c0_i32_1 : i32, i32, i32, i32
  }
  func.func @transform_2(%arg0: i32, %arg1: i32) -> (i32, i32, i32, i32) {
    %c0_i32 = arith.constant 0 : i32
    %c0_i32_0 = arith.constant 0 : i32
    %c0_i32_1 = arith.constant 0 : i32
    %c0_i32_2 = arith.constant 0 : i32
    return %arg0, %c0_i32, %c0_i32_0, %c0_i32_1 : i32, i32, i32, i32
  }
  func.func @transform_3(%arg0: i32, %arg1: i32) -> (i32, i32, i32, i32) {
    %c0_i32 = arith.constant 0 : i32
    %c0_i32_0 = arith.constant 0 : i32
    %c0_i32_1 = arith.constant 0 : i32
    %c0_i32_2 = arith.constant 0 : i32
    return %arg0, %c0_i32, %c0_i32_0, %c0_i32_1 : i32, i32, i32, i32
  }
  func.func @transform_4(%arg0: i32, %arg1: i32) -> (i32, i32, i32) {
    %c0_i32 = arith.constant 0 : i32
    %c0_i32_0 = arith.constant 0 : i32
    %c0_i32_1 = arith.constant 0 : i32
    %c0_i32_2 = arith.constant 0 : i32
    return %c0_i32, %c0_i32_0, %c0_i32_1 : i32, i32, i32
  }
  func.func @transform_5(%arg0: i32, %arg1: i32) -> (i32, i32) {
    %c0_i32 = arith.constant 0 : i32
    %c0_i32_0 = arith.constant 0 : i32
    %c0_i32_1 = arith.constant 0 : i32
    return %c0_i32, %c0_i32_0 : i32, i32
  }
  func.func @transform_6(%arg0: i32, %arg1: i32) -> (i32, i32) {
    %c0_i32 = arith.constant 0 : i32
    %c0_i32_0 = arith.constant 0 : i32
    %c0_i32_1 = arith.constant 0 : i32
    return %c0_i32, %c0_i32_0 : i32, i32
  }
  func.func @transform_7(%arg0: i32, %arg1: i32) -> (i32, i32) {
    %c0_i32 = arith.constant 0 : i32
    %c0_i32_0 = arith.constant 0 : i32
    %c0_i32_1 = arith.constant 0 : i32
    return %c0_i32, %c0_i32_0 : i32, i32
  }
  func.func @transform_8(%arg0: i32, %arg1: i32) -> (i32, i32) {
    %c0_i32 = arith.constant 0 : i32
    %c0_i32_0 = arith.constant 0 : i32
    %c0_i32_1 = arith.constant 0 : i32
    return %c0_i32, %c0_i32_0 : i32, i32
  }
  func.func @transform_9(%arg0: i32, %arg1: i32) -> (i32, i32, i32) {
    %c0_i32 = arith.constant 0 : i32
    %c0_i32_0 = arith.constant 0 : i32
    return %arg0, %arg1, %c0_i32 : i32, i32, i32
  }
}

module attributes {stable_mosaic.version = 11 : i64} {
  func.func @_conv_block_kernel(%arg0: i32, %arg1: i32, %arg2: memref<1x10x10x128xbf16, #tpu.memory_space<vmem>>, %arg3: memref<9x128x128xbf16, #tpu.memory_space<vmem>>, %arg4: memref<1x32x128xf32, #tpu.memory_space<vmem>>, %arg5: memref<1x32x128xf32, #tpu.memory_space<vmem>>) attributes {dimension_semantics = [#tpu.dimension_semantics<parallel>, #tpu.dimension_semantics<parallel>], iteration_bounds = array<i64: 2, 2>, scalar_prefetch = 0 : i64, scratch_operands = 0 : i64, tpu.core_type = #tpu.core_type<tc>, window_params = [{transform_indices = @transform_0, window_bounds = array<i64: 1, 10, 10, 128>}, {pipeline_mode = #tpu.pipeline_mode<synchronous>, transform_indices = @transform_1, window_bounds = array<i64: 9, 128, 128>}, {transform_indices = @transform_2, window_bounds = array<i64: 1, 32, 128>}, {transform_indices = @transform_3, window_bounds = array<i64: 1, 32, 128>}]} {
    %c4_i32 = arith.constant 4 : i32
    %0 = arith.muli %arg1, %c4_i32 : i32
    %cst = arith.constant 0.000000e+00 : f32
    %1 = vector.broadcast %cst : f32 to vector<32x128xf32>
    %c0_i32 = arith.constant 0 : i32
    %2 = arith.addi %0, %c0_i32 : i32
    %c0 = arith.constant 0 : index
    %3 = arith.index_cast %2 : i32 to index
    %c0_0 = arith.constant 0 : index
    %c0_1 = arith.constant 0 : index
    %4 = vector.load %arg2[%c0, %3, %c0_0, %c0_1] : memref<1x10x10x128xbf16, #tpu.memory_space<vmem>>, vector<1x4x8x128xbf16>
    %5 = vector.shape_cast %4 : vector<1x4x8x128xbf16> to vector<4x8x128xbf16>
    %6 = vector.shape_cast %5 : vector<4x8x128xbf16> to vector<32x128xbf16>
    %c0_2 = arith.constant 0 : index
    %c0_3 = arith.constant 0 : index
    %c0_4 = arith.constant 0 : index
    %7 = vector.load %arg3[%c0_2, %c0_3, %c0_4] : memref<9x128x128xbf16, #tpu.memory_space<vmem>>, vector<1x128x128xbf16>
    %8 = vector.shape_cast %7 : vector<1x128x128xbf16> to vector<128x128xbf16>
    %cst_5 = arith.constant dense<0.000000e+00> : vector<32x128xf32>
    %9 = tpu.matmul %6, %8, %cst_5 {dimension_numbers = #tpu.dot_dimension_numbers<[1], [0], [0], [1], [0, 0, 1, 1], [], []>} : vector<32x128xbf16>, vector<128x128xbf16>, vector<32x128xf32> -> vector<32x128xf32>
    %10 = arith.addf %1, %9 : vector<32x128xf32>
    %c0_i32_6 = arith.constant 0 : i32
    %11 = arith.addi %0, %c0_i32_6 : i32
    %c0_7 = arith.constant 0 : index
    %12 = arith.index_cast %11 : i32 to index
    %c1 = arith.constant 1 : index
    %c0_8 = arith.constant 0 : index
    %13 = vector.load %arg2[%c0_7, %12, %c1, %c0_8] : memref<1x10x10x128xbf16, #tpu.memory_space<vmem>>, vector<1x4x8x128xbf16>
    %14 = vector.shape_cast %13 : vector<1x4x8x128xbf16> to vector<4x8x128xbf16>
    %15 = vector.shape_cast %14 : vector<4x8x128xbf16> to vector<32x128xbf16>
    %c1_9 = arith.constant 1 : index
    %c0_10 = arith.constant 0 : index
    %c0_11 = arith.constant 0 : index
    %16 = vector.load %arg3[%c1_9, %c0_10, %c0_11] : memref<9x128x128xbf16, #tpu.memory_space<vmem>>, vector<1x128x128xbf16>
    %17 = vector.shape_cast %16 : vector<1x128x128xbf16> to vector<128x128xbf16>
    %cst_12 = arith.constant dense<0.000000e+00> : vector<32x128xf32>
    %18 = tpu.matmul %15, %17, %cst_12 {dimension_numbers = #tpu.dot_dimension_numbers<[1], [0], [0], [1], [0, 0, 1, 1], [], []>} : vector<32x128xbf16>, vector<128x128xbf16>, vector<32x128xf32> -> vector<32x128xf32>
    %19 = arith.addf %10, %18 : vector<32x128xf32>
    %c0_i32_13 = arith.constant 0 : i32
    %20 = arith.addi %0, %c0_i32_13 : i32
    %c0_14 = arith.constant 0 : index
    %21 = arith.index_cast %20 : i32 to index
    %c2 = arith.constant 2 : index
    %c0_15 = arith.constant 0 : index
    %22 = vector.load %arg2[%c0_14, %21, %c2, %c0_15] : memref<1x10x10x128xbf16, #tpu.memory_space<vmem>>, vector<1x4x8x128xbf16>
    %23 = vector.shape_cast %22 : vector<1x4x8x128xbf16> to vector<4x8x128xbf16>
    %24 = vector.shape_cast %23 : vector<4x8x128xbf16> to vector<32x128xbf16>
    %c2_16 = arith.constant 2 : index
    %c0_17 = arith.constant 0 : index
    %c0_18 = arith.constant 0 : index
    %25 = vector.load %arg3[%c2_16, %c0_17, %c0_18] : memref<9x128x128xbf16, #tpu.memory_space<vmem>>, vector<1x128x128xbf16>
    %26 = vector.shape_cast %25 : vector<1x128x128xbf16> to vector<128x128xbf16>
    %cst_19 = arith.constant dense<0.000000e+00> : vector<32x128xf32>
    %27 = tpu.matmul %24, %26, %cst_19 {dimension_numbers = #tpu.dot_dimension_numbers<[1], [0], [0], [1], [0, 0, 1, 1], [], []>} : vector<32x128xbf16>, vector<128x128xbf16>, vector<32x128xf32> -> vector<32x128xf32>
    %28 = arith.addf %19, %27 : vector<32x128xf32>
    %c1_i32 = arith.constant 1 : i32
    %29 = arith.addi %0, %c1_i32 : i32
    %c0_20 = arith.constant 0 : index
    %30 = arith.index_cast %29 : i32 to index
    %c0_21 = arith.constant 0 : index
    %c0_22 = arith.constant 0 : index
    %31 = vector.load %arg2[%c0_20, %30, %c0_21, %c0_22] : memref<1x10x10x128xbf16, #tpu.memory_space<vmem>>, vector<1x4x8x128xbf16>
    %32 = vector.shape_cast %31 : vector<1x4x8x128xbf16> to vector<4x8x128xbf16>
    %33 = vector.shape_cast %32 : vector<4x8x128xbf16> to vector<32x128xbf16>
    %c3 = arith.constant 3 : index
    %c0_23 = arith.constant 0 : index
    %c0_24 = arith.constant 0 : index
    %34 = vector.load %arg3[%c3, %c0_23, %c0_24] : memref<9x128x128xbf16, #tpu.memory_space<vmem>>, vector<1x128x128xbf16>
    %35 = vector.shape_cast %34 : vector<1x128x128xbf16> to vector<128x128xbf16>
    %cst_25 = arith.constant dense<0.000000e+00> : vector<32x128xf32>
    %36 = tpu.matmul %33, %35, %cst_25 {dimension_numbers = #tpu.dot_dimension_numbers<[1], [0], [0], [1], [0, 0, 1, 1], [], []>} : vector<32x128xbf16>, vector<128x128xbf16>, vector<32x128xf32> -> vector<32x128xf32>
    %37 = arith.addf %28, %36 : vector<32x128xf32>
    %c1_i32_26 = arith.constant 1 : i32
    %38 = arith.addi %0, %c1_i32_26 : i32
    %c0_27 = arith.constant 0 : index
    %39 = arith.index_cast %38 : i32 to index
    %c1_28 = arith.constant 1 : index
    %c0_29 = arith.constant 0 : index
    %40 = vector.load %arg2[%c0_27, %39, %c1_28, %c0_29] : memref<1x10x10x128xbf16, #tpu.memory_space<vmem>>, vector<1x4x8x128xbf16>
    %41 = vector.shape_cast %40 : vector<1x4x8x128xbf16> to vector<4x8x128xbf16>
    %42 = vector.shape_cast %41 : vector<4x8x128xbf16> to vector<32x128xbf16>
    %c4 = arith.constant 4 : index
    %c0_30 = arith.constant 0 : index
    %c0_31 = arith.constant 0 : index
    %43 = vector.load %arg3[%c4, %c0_30, %c0_31] : memref<9x128x128xbf16, #tpu.memory_space<vmem>>, vector<1x128x128xbf16>
    %44 = vector.shape_cast %43 : vector<1x128x128xbf16> to vector<128x128xbf16>
    %cst_32 = arith.constant dense<0.000000e+00> : vector<32x128xf32>
    %45 = tpu.matmul %42, %44, %cst_32 {dimension_numbers = #tpu.dot_dimension_numbers<[1], [0], [0], [1], [0, 0, 1, 1], [], []>} : vector<32x128xbf16>, vector<128x128xbf16>, vector<32x128xf32> -> vector<32x128xf32>
    %46 = arith.addf %37, %45 : vector<32x128xf32>
    %c1_i32_33 = arith.constant 1 : i32
    %47 = arith.addi %0, %c1_i32_33 : i32
    %c0_34 = arith.constant 0 : index
    %48 = arith.index_cast %47 : i32 to index
    %c2_35 = arith.constant 2 : index
    %c0_36 = arith.constant 0 : index
    %49 = vector.load %arg2[%c0_34, %48, %c2_35, %c0_36] : memref<1x10x10x128xbf16, #tpu.memory_space<vmem>>, vector<1x4x8x128xbf16>
    %50 = vector.shape_cast %49 : vector<1x4x8x128xbf16> to vector<4x8x128xbf16>
    %51 = vector.shape_cast %50 : vector<4x8x128xbf16> to vector<32x128xbf16>
    %c5 = arith.constant 5 : index
    %c0_37 = arith.constant 0 : index
    %c0_38 = arith.constant 0 : index
    %52 = vector.load %arg3[%c5, %c0_37, %c0_38] : memref<9x128x128xbf16, #tpu.memory_space<vmem>>, vector<1x128x128xbf16>
    %53 = vector.shape_cast %52 : vector<1x128x128xbf16> to vector<128x128xbf16>
    %cst_39 = arith.constant dense<0.000000e+00> : vector<32x128xf32>
    %54 = tpu.matmul %51, %53, %cst_39 {dimension_numbers = #tpu.dot_dimension_numbers<[1], [0], [0], [1], [0, 0, 1, 1], [], []>} : vector<32x128xbf16>, vector<128x128xbf16>, vector<32x128xf32> -> vector<32x128xf32>
    %55 = arith.addf %46, %54 : vector<32x128xf32>
    %c2_i32 = arith.constant 2 : i32
    %56 = arith.addi %0, %c2_i32 : i32
    %c0_40 = arith.constant 0 : index
    %57 = arith.index_cast %56 : i32 to index
    %c0_41 = arith.constant 0 : index
    %c0_42 = arith.constant 0 : index
    %58 = vector.load %arg2[%c0_40, %57, %c0_41, %c0_42] : memref<1x10x10x128xbf16, #tpu.memory_space<vmem>>, vector<1x4x8x128xbf16>
    %59 = vector.shape_cast %58 : vector<1x4x8x128xbf16> to vector<4x8x128xbf16>
    %60 = vector.shape_cast %59 : vector<4x8x128xbf16> to vector<32x128xbf16>
    %c6 = arith.constant 6 : index
    %c0_43 = arith.constant 0 : index
    %c0_44 = arith.constant 0 : index
    %61 = vector.load %arg3[%c6, %c0_43, %c0_44] : memref<9x128x128xbf16, #tpu.memory_space<vmem>>, vector<1x128x128xbf16>
    %62 = vector.shape_cast %61 : vector<1x128x128xbf16> to vector<128x128xbf16>
    %cst_45 = arith.constant dense<0.000000e+00> : vector<32x128xf32>
    %63 = tpu.matmul %60, %62, %cst_45 {dimension_numbers = #tpu.dot_dimension_numbers<[1], [0], [0], [1], [0, 0, 1, 1], [], []>} : vector<32x128xbf16>, vector<128x128xbf16>, vector<32x128xf32> -> vector<32x128xf32>
    %64 = arith.addf %55, %63 : vector<32x128xf32>
    %c2_i32_46 = arith.constant 2 : i32
    %65 = arith.addi %0, %c2_i32_46 : i32
    %c0_47 = arith.constant 0 : index
    %66 = arith.index_cast %65 : i32 to index
    %c1_48 = arith.constant 1 : index
    %c0_49 = arith.constant 0 : index
    %67 = vector.load %arg2[%c0_47, %66, %c1_48, %c0_49] : memref<1x10x10x128xbf16, #tpu.memory_space<vmem>>, vector<1x4x8x128xbf16>
    %68 = vector.shape_cast %67 : vector<1x4x8x128xbf16> to vector<4x8x128xbf16>
    %69 = vector.shape_cast %68 : vector<4x8x128xbf16> to vector<32x128xbf16>
    %c7 = arith.constant 7 : index
    %c0_50 = arith.constant 0 : index
    %c0_51 = arith.constant 0 : index
    %70 = vector.load %arg3[%c7, %c0_50, %c0_51] : memref<9x128x128xbf16, #tpu.memory_space<vmem>>, vector<1x128x128xbf16>
    %71 = vector.shape_cast %70 : vector<1x128x128xbf16> to vector<128x128xbf16>
    %cst_52 = arith.constant dense<0.000000e+00> : vector<32x128xf32>
    %72 = tpu.matmul %69, %71, %cst_52 {dimension_numbers = #tpu.dot_dimension_numbers<[1], [0], [0], [1], [0, 0, 1, 1], [], []>} : vector<32x128xbf16>, vector<128x128xbf16>, vector<32x128xf32> -> vector<32x128xf32>
    %73 = arith.addf %64, %72 : vector<32x128xf32>
    %c2_i32_53 = arith.constant 2 : i32
    %74 = arith.addi %0, %c2_i32_53 : i32
    %c0_54 = arith.constant 0 : index
    %75 = arith.index_cast %74 : i32 to index
    %c2_55 = arith.constant 2 : index
    %c0_56 = arith.constant 0 : index
    %76 = vector.load %arg2[%c0_54, %75, %c2_55, %c0_56] : memref<1x10x10x128xbf16, #tpu.memory_space<vmem>>, vector<1x4x8x128xbf16>
    %77 = vector.shape_cast %76 : vector<1x4x8x128xbf16> to vector<4x8x128xbf16>
    %78 = vector.shape_cast %77 : vector<4x8x128xbf16> to vector<32x128xbf16>
    %c8 = arith.constant 8 : index
    %c0_57 = arith.constant 0 : index
    %c0_58 = arith.constant 0 : index
    %79 = vector.load %arg3[%c8, %c0_57, %c0_58] : memref<9x128x128xbf16, #tpu.memory_space<vmem>>, vector<1x128x128xbf16>
    %80 = vector.shape_cast %79 : vector<1x128x128xbf16> to vector<128x128xbf16>
    %cst_59 = arith.constant dense<0.000000e+00> : vector<32x128xf32>
    %81 = tpu.matmul %78, %80, %cst_59 {dimension_numbers = #tpu.dot_dimension_numbers<[1], [0], [0], [1], [0, 0, 1, 1], [], []>} : vector<32x128xbf16>, vector<128x128xbf16>, vector<32x128xf32> -> vector<32x128xf32>
    %82 = arith.addf %73, %81 : vector<32x128xf32>
    %c0_60 = arith.constant 0 : index
    %c0_61 = arith.constant 0 : index
    %c0_62 = arith.constant 0 : index
    %83 = vector.load %arg4[%c0_60, %c0_61, %c0_62] : memref<1x32x128xf32, #tpu.memory_space<vmem>>, vector<1x32x128xf32>
    %84 = vector.shape_cast %83 : vector<1x32x128xf32> to vector<32x128xf32>
    %85 = arith.addf %82, %84 : vector<32x128xf32>
    %c0_63 = arith.constant 0 : index
    %c0_64 = arith.constant 0 : index
    %c0_65 = arith.constant 0 : index
    %86 = vector.load %arg5[%c0_63, %c0_64, %c0_65] : memref<1x32x128xf32, #tpu.memory_space<vmem>>, vector<1x32x128xf32>
    %87 = vector.shape_cast %86 : vector<1x32x128xf32> to vector<32x128xf32>
    %88 = vector.shape_cast %85 : vector<32x128xf32> to vector<1x32x128xf32>
    tpu.vector_store %arg5[%c0_63, %c0_64, %c0_65], %88 {strides = array<i32>} : memref<1x32x128xf32, #tpu.memory_space<vmem>>, vector<1x32x128xf32>,
    return
  }
  func.func @transform_0(%arg0: i32, %arg1: i32) -> (i32, i32, i32, i32) {
    %c0_i32 = arith.constant 0 : i32
    %c0_i32_0 = arith.constant 0 : i32
    %c0_i32_1 = arith.constant 0 : i32
    %c0_i32_2 = arith.constant 0 : i32
    return %arg0, %c0_i32, %c0_i32_0, %c0_i32_1 : i32, i32, i32, i32
  }
  func.func @transform_1(%arg0: i32, %arg1: i32) -> (i32, i32, i32) {
    %c0_i32 = arith.constant 0 : i32
    %c0_i32_0 = arith.constant 0 : i32
    %c0_i32_1 = arith.constant 0 : i32
    %c0_i32_2 = arith.constant 0 : i32
    return %c0_i32, %c0_i32_0, %c0_i32_1 : i32, i32, i32
  }
  func.func @transform_2(%arg0: i32, %arg1: i32) -> (i32, i32, i32) {
    %c0_i32 = arith.constant 0 : i32
    %c0_i32_0 = arith.constant 0 : i32
    return %arg0, %arg1, %c0_i32 : i32, i32, i32
  }
  func.func @transform_3(%arg0: i32, %arg1: i32) -> (i32, i32, i32) {
    %c0_i32 = arith.constant 0 : i32
    %c0_i32_0 = arith.constant 0 : i32
    return %arg0, %arg1, %c0_i32 : i32, i32, i32
  }
}

module attributes {stable_mosaic.version = 11 : i64} {
  func.func @_conv_block_kernel(%arg0: i32, %arg1: i32, %arg2: memref<1x10x10x128xbf16, #tpu.memory_space<vmem>>, %arg3: memref<9x128x128xbf16, #tpu.memory_space<vmem>>, %arg4: memref<1x9x9x4xf32, #tpu.memory_space<vmem>>, %arg5: memref<1x4xf32, #tpu.memory_space<vmem>>, %arg6: memref<1x4xf32, #tpu.memory_space<vmem>>, %arg7: memref<4x128xbf16, #tpu.memory_space<vmem>>, %arg8: memref<1x32x128xf32, #tpu.memory_space<vmem>>) attributes {dimension_semantics = [#tpu.dimension_semantics<parallel>, #tpu.dimension_semantics<parallel>], iteration_bounds = array<i64: 2, 2>, scalar_prefetch = 0 : i64, scratch_operands = 0 : i64, tpu.core_type = #tpu.core_type<tc>, window_params = [{transform_indices = @transform_0, window_bounds = array<i64: 1, 10, 10, 128>}, {pipeline_mode = #tpu.pipeline_mode<synchronous>, transform_indices = @transform_1, window_bounds = array<i64: 9, 128, 128>}, {transform_indices = @transform_2, window_bounds = array<i64: 1, 9, 9, 4>}, {pipeline_mode = #tpu.pipeline_mode<synchronous>, transform_indices = @transform_3, window_bounds = array<i64: 1, 4>}, {pipeline_mode = #tpu.pipeline_mode<synchronous>, transform_indices = @transform_4, window_bounds = array<i64: 1, 4>}, {pipeline_mode = #tpu.pipeline_mode<synchronous>, transform_indices = @transform_5, window_bounds = array<i64: 4, 128>}, {transform_indices = @transform_6, window_bounds = array<i64: 1, 32, 128>}]} {
    %c4_i32 = arith.constant 4 : i32
    %0 = arith.muli %arg1, %c4_i32 : i32
    %cst = arith.constant 0.000000e+00 : f32
    %1 = vector.broadcast %cst : f32 to vector<32x128xf32>
    %c0_i32 = arith.constant 0 : i32
    %2 = arith.addi %0, %c0_i32 : i32
    %c0 = arith.constant 0 : index
    %3 = arith.index_cast %2 : i32 to index
    %c0_0 = arith.constant 0 : index
    %c0_1 = arith.constant 0 : index
    %4 = vector.load %arg2[%c0, %3, %c0_0, %c0_1] : memref<1x10x10x128xbf16, #tpu.memory_space<vmem>>, vector<1x4x8x128xbf16>
    %5 = vector.shape_cast %4 : vector<1x4x8x128xbf16> to vector<4x8x128xbf16>
    %6 = vector.shape_cast %5 : vector<4x8x128xbf16> to vector<32x128xbf16>
    %c0_2 = arith.constant 0 : index
    %c0_3 = arith.constant 0 : index
    %c0_4 = arith.constant 0 : index
    %7 = vector.load %arg3[%c0_2, %c0_3, %c0_4] : memref<9x128x128xbf16, #tpu.memory_space<vmem>>, vector<1x128x128xbf16>
    %8 = vector.shape_cast %7 : vector<1x128x128xbf16> to vector<128x128xbf16>
    %cst_5 = arith.constant dense<0.000000e+00> : vector<32x128xf32>
    %9 = tpu.matmul %6, %8, %cst_5 {dimension_numbers = #tpu.dot_dimension_numbers<[1], [0], [0], [1], [0, 0, 1, 1], [], []>} : vector<32x128xbf16>, vector<128x128xbf16>, vector<32x128xf32> -> vector<32x128xf32>
    %10 = arith.addf %1, %9 : vector<32x128xf32>
    %c0_i32_6 = arith.constant 0 : i32
    %11 = arith.addi %0, %c0_i32_6 : i32
    %c0_7 = arith.constant 0 : index
    %12 = arith.index_cast %11 : i32 to index
    %c1 = arith.constant 1 : index
    %c0_8 = arith.constant 0 : index
    %13 = vector.load %arg2[%c0_7, %12, %c1, %c0_8] : memref<1x10x10x128xbf16, #tpu.memory_space<vmem>>, vector<1x4x8x128xbf16>
    %14 = vector.shape_cast %13 : vector<1x4x8x128xbf16> to vector<4x8x128xbf16>
    %15 = vector.shape_cast %14 : vector<4x8x128xbf16> to vector<32x128xbf16>
    %c1_9 = arith.constant 1 : index
    %c0_10 = arith.constant 0 : index
    %c0_11 = arith.constant 0 : index
    %16 = vector.load %arg3[%c1_9, %c0_10, %c0_11] : memref<9x128x128xbf16, #tpu.memory_space<vmem>>, vector<1x128x128xbf16>
    %17 = vector.shape_cast %16 : vector<1x128x128xbf16> to vector<128x128xbf16>
    %cst_12 = arith.constant dense<0.000000e+00> : vector<32x128xf32>
    %18 = tpu.matmul %15, %17, %cst_12 {dimension_numbers = #tpu.dot_dimension_numbers<[1], [0], [0], [1], [0, 0, 1, 1], [], []>} : vector<32x128xbf16>, vector<128x128xbf16>, vector<32x128xf32> -> vector<32x128xf32>
    %19 = arith.addf %10, %18 : vector<32x128xf32>
    %c0_i32_13 = arith.constant 0 : i32
    %20 = arith.addi %0, %c0_i32_13 : i32
    %c0_14 = arith.constant 0 : index
    %21 = arith.index_cast %20 : i32 to index
    %c2 = arith.constant 2 : index
    %c0_15 = arith.constant 0 : index
    %22 = vector.load %arg2[%c0_14, %21, %c2, %c0_15] : memref<1x10x10x128xbf16, #tpu.memory_space<vmem>>, vector<1x4x8x128xbf16>
    %23 = vector.shape_cast %22 : vector<1x4x8x128xbf16> to vector<4x8x128xbf16>
    %24 = vector.shape_cast %23 : vector<4x8x128xbf16> to vector<32x128xbf16>
    %c2_16 = arith.constant 2 : index
    %c0_17 = arith.constant 0 : index
    %c0_18 = arith.constant 0 : index
    %25 = vector.load %arg3[%c2_16, %c0_17, %c0_18] : memref<9x128x128xbf16, #tpu.memory_space<vmem>>, vector<1x128x128xbf16>
    %26 = vector.shape_cast %25 : vector<1x128x128xbf16> to vector<128x128xbf16>
    %cst_19 = arith.constant dense<0.000000e+00> : vector<32x128xf32>
    %27 = tpu.matmul %24, %26, %cst_19 {dimension_numbers = #tpu.dot_dimension_numbers<[1], [0], [0], [1], [0, 0, 1, 1], [], []>} : vector<32x128xbf16>, vector<128x128xbf16>, vector<32x128xf32> -> vector<32x128xf32>
    %28 = arith.addf %19, %27 : vector<32x128xf32>
    %c1_i32 = arith.constant 1 : i32
    %29 = arith.addi %0, %c1_i32 : i32
    %c0_20 = arith.constant 0 : index
    %30 = arith.index_cast %29 : i32 to index
    %c0_21 = arith.constant 0 : index
    %c0_22 = arith.constant 0 : index
    %31 = vector.load %arg2[%c0_20, %30, %c0_21, %c0_22] : memref<1x10x10x128xbf16, #tpu.memory_space<vmem>>, vector<1x4x8x128xbf16>
    %32 = vector.shape_cast %31 : vector<1x4x8x128xbf16> to vector<4x8x128xbf16>
    %33 = vector.shape_cast %32 : vector<4x8x128xbf16> to vector<32x128xbf16>
    %c3 = arith.constant 3 : index
    %c0_23 = arith.constant 0 : index
    %c0_24 = arith.constant 0 : index
    %34 = vector.load %arg3[%c3, %c0_23, %c0_24] : memref<9x128x128xbf16, #tpu.memory_space<vmem>>, vector<1x128x128xbf16>
    %35 = vector.shape_cast %34 : vector<1x128x128xbf16> to vector<128x128xbf16>
    %cst_25 = arith.constant dense<0.000000e+00> : vector<32x128xf32>
    %36 = tpu.matmul %33, %35, %cst_25 {dimension_numbers = #tpu.dot_dimension_numbers<[1], [0], [0], [1], [0, 0, 1, 1], [], []>} : vector<32x128xbf16>, vector<128x128xbf16>, vector<32x128xf32> -> vector<32x128xf32>
    %37 = arith.addf %28, %36 : vector<32x128xf32>
    %c1_i32_26 = arith.constant 1 : i32
    %38 = arith.addi %0, %c1_i32_26 : i32
    %c0_27 = arith.constant 0 : index
    %39 = arith.index_cast %38 : i32 to index
    %c1_28 = arith.constant 1 : index
    %c0_29 = arith.constant 0 : index
    %40 = vector.load %arg2[%c0_27, %39, %c1_28, %c0_29] : memref<1x10x10x128xbf16, #tpu.memory_space<vmem>>, vector<1x4x8x128xbf16>
    %41 = vector.shape_cast %40 : vector<1x4x8x128xbf16> to vector<4x8x128xbf16>
    %42 = vector.shape_cast %41 : vector<4x8x128xbf16> to vector<32x128xbf16>
    %c4 = arith.constant 4 : index
    %c0_30 = arith.constant 0 : index
    %c0_31 = arith.constant 0 : index
    %43 = vector.load %arg3[%c4, %c0_30, %c0_31] : memref<9x128x128xbf16, #tpu.memory_space<vmem>>, vector<1x128x128xbf16>
    %44 = vector.shape_cast %43 : vector<1x128x128xbf16> to vector<128x128xbf16>
    %cst_32 = arith.constant dense<0.000000e+00> : vector<32x128xf32>
    %45 = tpu.matmul %42, %44, %cst_32 {dimension_numbers = #tpu.dot_dimension_numbers<[1], [0], [0], [1], [0, 0, 1, 1], [], []>} : vector<32x128xbf16>, vector<128x128xbf16>, vector<32x128xf32> -> vector<32x128xf32>
    %46 = arith.addf %37, %45 : vector<32x128xf32>
    %c1_i32_33 = arith.constant 1 : i32
    %47 = arith.addi %0, %c1_i32_33 : i32
    %c0_34 = arith.constant 0 : index
    %48 = arith.index_cast %47 : i32 to index
    %c2_35 = arith.constant 2 : index
    %c0_36 = arith.constant 0 : index
    %49 = vector.load %arg2[%c0_34, %48, %c2_35, %c0_36] : memref<1x10x10x128xbf16, #tpu.memory_space<vmem>>, vector<1x4x8x128xbf16>
    %50 = vector.shape_cast %49 : vector<1x4x8x128xbf16> to vector<4x8x128xbf16>
    %51 = vector.shape_cast %50 : vector<4x8x128xbf16> to vector<32x128xbf16>
    %c5 = arith.constant 5 : index
    %c0_37 = arith.constant 0 : index
    %c0_38 = arith.constant 0 : index
    %52 = vector.load %arg3[%c5, %c0_37, %c0_38] : memref<9x128x128xbf16, #tpu.memory_space<vmem>>, vector<1x128x128xbf16>
    %53 = vector.shape_cast %52 : vector<1x128x128xbf16> to vector<128x128xbf16>
    %cst_39 = arith.constant dense<0.000000e+00> : vector<32x128xf32>
    %54 = tpu.matmul %51, %53, %cst_39 {dimension_numbers = #tpu.dot_dimension_numbers<[1], [0], [0], [1], [0, 0, 1, 1], [], []>} : vector<32x128xbf16>, vector<128x128xbf16>, vector<32x128xf32> -> vector<32x128xf32>
    %55 = arith.addf %46, %54 : vector<32x128xf32>
    %c2_i32 = arith.constant 2 : i32
    %56 = arith.addi %0, %c2_i32 : i32
    %c0_40 = arith.constant 0 : index
    %57 = arith.index_cast %56 : i32 to index
    %c0_41 = arith.constant 0 : index
    %c0_42 = arith.constant 0 : index
    %58 = vector.load %arg2[%c0_40, %57, %c0_41, %c0_42] : memref<1x10x10x128xbf16, #tpu.memory_space<vmem>>, vector<1x4x8x128xbf16>
    %59 = vector.shape_cast %58 : vector<1x4x8x128xbf16> to vector<4x8x128xbf16>
    %60 = vector.shape_cast %59 : vector<4x8x128xbf16> to vector<32x128xbf16>
    %c6 = arith.constant 6 : index
    %c0_43 = arith.constant 0 : index
    %c0_44 = arith.constant 0 : index
    %61 = vector.load %arg3[%c6, %c0_43, %c0_44] : memref<9x128x128xbf16, #tpu.memory_space<vmem>>, vector<1x128x128xbf16>
    %62 = vector.shape_cast %61 : vector<1x128x128xbf16> to vector<128x128xbf16>
    %cst_45 = arith.constant dense<0.000000e+00> : vector<32x128xf32>
    %63 = tpu.matmul %60, %62, %cst_45 {dimension_numbers = #tpu.dot_dimension_numbers<[1], [0], [0], [1], [0, 0, 1, 1], [], []>} : vector<32x128xbf16>, vector<128x128xbf16>, vector<32x128xf32> -> vector<32x128xf32>
    %64 = arith.addf %55, %63 : vector<32x128xf32>
    %c2_i32_46 = arith.constant 2 : i32
    %65 = arith.addi %0, %c2_i32_46 : i32
    %c0_47 = arith.constant 0 : index
    %66 = arith.index_cast %65 : i32 to index
    %c1_48 = arith.constant 1 : index
    %c0_49 = arith.constant 0 : index
    %67 = vector.load %arg2[%c0_47, %66, %c1_48, %c0_49] : memref<1x10x10x128xbf16, #tpu.memory_space<vmem>>, vector<1x4x8x128xbf16>
    %68 = vector.shape_cast %67 : vector<1x4x8x128xbf16> to vector<4x8x128xbf16>
    %69 = vector.shape_cast %68 : vector<4x8x128xbf16> to vector<32x128xbf16>
    %c7 = arith.constant 7 : index
    %c0_50 = arith.constant 0 : index
    %c0_51 = arith.constant 0 : index
    %70 = vector.load %arg3[%c7, %c0_50, %c0_51] : memref<9x128x128xbf16, #tpu.memory_space<vmem>>, vector<1x128x128xbf16>
    %71 = vector.shape_cast %70 : vector<1x128x128xbf16> to vector<128x128xbf16>
    %cst_52 = arith.constant dense<0.000000e+00> : vector<32x128xf32>
    %72 = tpu.matmul %69, %71, %cst_52 {dimension_numbers = #tpu.dot_dimension_numbers<[1], [0], [0], [1], [0, 0, 1, 1], [], []>} : vector<32x128xbf16>, vector<128x128xbf16>, vector<32x128xf32> -> vector<32x128xf32>
    %73 = arith.addf %64, %72 : vector<32x128xf32>
    %c2_i32_53 = arith.constant 2 : i32
    %74 = arith.addi %0, %c2_i32_53 : i32
    %c0_54 = arith.constant 0 : index
    %75 = arith.index_cast %74 : i32 to index
    %c2_55 = arith.constant 2 : index
    %c0_56 = arith.constant 0 : index
    %76 = vector.load %arg2[%c0_54, %75, %c2_55, %c0_56] : memref<1x10x10x128xbf16, #tpu.memory_space<vmem>>, vector<1x4x8x128xbf16>
    %77 = vector.shape_cast %76 : vector<1x4x8x128xbf16> to vector<4x8x128xbf16>
    %78 = vector.shape_cast %77 : vector<4x8x128xbf16> to vector<32x128xbf16>
    %c8 = arith.constant 8 : index
    %c0_57 = arith.constant 0 : index
    %c0_58 = arith.constant 0 : index
    %79 = vector.load %arg3[%c8, %c0_57, %c0_58] : memref<9x128x128xbf16, #tpu.memory_space<vmem>>, vector<1x128x128xbf16>
    %80 = vector.shape_cast %79 : vector<1x128x128xbf16> to vector<128x128xbf16>
    %cst_59 = arith.constant dense<0.000000e+00> : vector<32x128xf32>
    %81 = tpu.matmul %78, %80, %cst_59 {dimension_numbers = #tpu.dot_dimension_numbers<[1], [0], [0], [1], [0, 0, 1, 1], [], []>} : vector<32x128xbf16>, vector<128x128xbf16>, vector<32x128xf32> -> vector<32x128xf32>
    %82 = arith.addf %73, %81 : vector<32x128xf32>
    %c0_60 = arith.constant 0 : index
    %83 = arith.index_cast %0 : i32 to index
    %c0_61 = arith.constant 0 : index
    %c0_62 = arith.constant 0 : index
    %84 = vector.load %arg4[%c0_60, %83, %c0_61, %c0_62] : memref<1x9x9x4xf32, #tpu.memory_space<vmem>>, vector<1x4x8x4xf32>
    %85 = vector.shape_cast %84 : vector<1x4x8x4xf32> to vector<4x8x4xf32>
    %86 = vector.shape_cast %85 : vector<4x8x4xf32> to vector<32x4xf32>
    %c0_63 = arith.constant 0 : index
    %c0_64 = arith.constant 0 : index
    %87 = vector.load %arg5[%c0_63, %c0_64] : memref<1x4xf32, #tpu.memory_space<vmem>>, vector<1x4xf32>
    %88 = vector.broadcast %87 : vector<1x4xf32> to vector<32x4xf32>
    %89 = arith.mulf %86, %88 : vector<32x4xf32>
    %c0_65 = arith.constant 0 : index
    %c0_66 = arith.constant 0 : index
    %90 = vector.load %arg6[%c0_65, %c0_66] : memref<1x4xf32, #tpu.memory_space<vmem>>, vector<1x4xf32>
    %91 = vector.broadcast %90 : vector<1x4xf32> to vector<32x4xf32>
    %92 = arith.addf %89, %91 : vector<32x4xf32>
    %cst_67 = arith.constant 0.000000e+00 : f32
    %93 = vector.broadcast %cst_67 : f32 to vector<32x4xf32>
    %94 = arith.maximumf %92, %93 : vector<32x4xf32>
    %95 = arith.truncf %94 : vector<32x4xf32> to vector<32x4xbf16>
    %c0_68 = arith.constant 0 : index
    %c0_69 = arith.constant 0 : index
    %96 = vector.load %arg7[%c0_68, %c0_69] : memref<4x128xbf16, #tpu.memory_space<vmem>>, vector<4x128xbf16>
    %cst_70 = arith.constant dense<0.000000e+00> : vector<32x128xf32>
    %97 = tpu.matmul %95, %96, %cst_70 {dimension_numbers = #tpu.dot_dimension_numbers<[1], [0], [0], [1], [0, 0, 1, 1], [], []>} : vector<32x4xbf16>, vector<4x128xbf16>, vector<32x128xf32> -> vector<32x128xf32>
    %98 = arith.addf %82, %97 : vector<32x128xf32>
    %c0_71 = arith.constant 0 : index
    %c0_72 = arith.constant 0 : index
    %c0_73 = arith.constant 0 : index
    %99 = vector.load %arg8[%c0_71, %c0_72, %c0_73] : memref<1x32x128xf32, #tpu.memory_space<vmem>>, vector<1x32x128xf32>
    %100 = vector.shape_cast %99 : vector<1x32x128xf32> to vector<32x128xf32>
    %101 = vector.shape_cast %98 : vector<32x128xf32> to vector<1x32x128xf32>
    tpu.vector_store %arg8[%c0_71, %c0_72, %c0_73], %101 {strides = array<i32>} : memref<1x32x128xf32, #tpu.memory_space<vmem>>, vector<1x32x128xf32>,
    return
  }
  func.func @transform_0(%arg0: i32, %arg1: i32) -> (i32, i32, i32, i32) {
    %c0_i32 = arith.constant 0 : i32
    %c0_i32_0 = arith.constant 0 : i32
    %c0_i32_1 = arith.constant 0 : i32
    %c0_i32_2 = arith.constant 0 : i32
    return %arg0, %c0_i32, %c0_i32_0, %c0_i32_1 : i32, i32, i32, i32
  }
  func.func @transform_1(%arg0: i32, %arg1: i32) -> (i32, i32, i32) {
    %c0_i32 = arith.constant 0 : i32
    %c0_i32_0 = arith.constant 0 : i32
    %c0_i32_1 = arith.constant 0 : i32
    %c0_i32_2 = arith.constant 0 : i32
    return %c0_i32, %c0_i32_0, %c0_i32_1 : i32, i32, i32
  }
  func.func @transform_2(%arg0: i32, %arg1: i32) -> (i32, i32, i32, i32) {
    %c0_i32 = arith.constant 0 : i32
    %c0_i32_0 = arith.constant 0 : i32
    %c0_i32_1 = arith.constant 0 : i32
    %c0_i32_2 = arith.constant 0 : i32
    return %arg0, %c0_i32, %c0_i32_0, %c0_i32_1 : i32, i32, i32, i32
  }
  func.func @transform_3(%arg0: i32, %arg1: i32) -> (i32, i32) {
    %c0_i32 = arith.constant 0 : i32
    %c0_i32_0 = arith.constant 0 : i32
    %c0_i32_1 = arith.constant 0 : i32
    return %c0_i32, %c0_i32_0 : i32, i32
  }
  func.func @transform_4(%arg0: i32, %arg1: i32) -> (i32, i32) {
    %c0_i32 = arith.constant 0 : i32
    %c0_i32_0 = arith.constant 0 : i32
    %c0_i32_1 = arith.constant 0 : i32
    return %c0_i32, %c0_i32_0 : i32, i32
  }
  func.func @transform_5(%arg0: i32, %arg1: i32) -> (i32, i32) {
    %c0_i32 = arith.constant 0 : i32
    %c0_i32_0 = arith.constant 0 : i32
    %c0_i32_1 = arith.constant 0 : i32
    return %c0_i32, %c0_i32_0 : i32, i32
  }
  func.func @transform_6(%arg0: i32, %arg1: i32) -> (i32, i32, i32) {
    %c0_i32 = arith.constant 0 : i32
    %c0_i32_0 = arith.constant 0 : i32
    return %arg0, %arg1, %c0_i32 : i32, i32, i32
  }
}

</mosaic_0001>

<bundles_post_ra>
// kernel: network_block_forward.4
= control target key start
LH: loop header
LB: loop body
LE: loop exit
PB: predicated region body
PF: predicated region fallthrough
CT: control target
= control target key end

     0   :  { %s1268_s30 = smov 0   ;;  %s1270_s10 = smov 0   ;;  %s1549_s0 = inlined_call_operand.vmem [shape: f32[2,9,9,4], index: 0, kind: input, shape index: {}]   ;;  %s1550_s1 = inlined_call_operand.vmem [shape: f32[2,9,9,4], index: 1, kind: input, shape index: {}]   ;;  %s1551_s2 = inlined_call_operand.vmem [shape: f32[2,9,9,4], index: 2, kind: input, shape index: {}]   ;;  %s1552_s3 = inlined_call_operand.vmem [shape: f32[2,9,9,4], index: 3, kind: input, shape index: {}]   ;;  %s1553_s4 = inlined_call_operand.vmem [shape: bf16[9,4,128], index: 4, kind: input, shape index: {}]   ;;  %s1554_s5 = inlined_call_operand.vmem [shape: f32[1,4], index: 5, kind: input, shape index: {}]   ;;  %s1555_s6 = inlined_call_operand.vmem [shape: f32[1,4], index: 6, kind: input, shape index: {}]   ;;  %s1556_s7 = inlined_call_operand.vmem [shape: f32[1,128], index: 7, kind: input, shape index: {}]   ;;  %s1557_s8 = inlined_call_operand.vmem [shape: f32[1,128], index: 8, kind: input, shape index: {}]   ;;  %s1558_s9 = inlined_call_operand.vmem [shape: bf16[2,64,128], index: 9, kind: output, shape index: {}]  }
   0x1   :  { %s1272_s11 = smov 0   ;;  %s1274_s12 = smov 0  }
   0x2   :  { %s1276_s13 = smov 0  }
   0x3 LB: > { %s28_s14 = sadd.s32 1, %s1208_s11  ;;  %s31_s15 = sadd.s32 1, %s1212_s12  ;;  %s1216_s13 = sphi %s1276_s13, %s19_s13   ;;  %s1212_s12 = sphi %s1274_s12, %s1562_s12   ;;  %s1208_s11 = sphi %s1272_s11, %s1561_s11   ;;  %s1204_s10 = sphi %s1270_s10, %s1560_s10   ;;  %s1200_s30 = sphi %s1268_s30, %s1559_s30  }
   0x4   : > { %p29_p0 = scmp.ge.s32.totalorder %s28_s14, 2  ;;  %p1064_p1 = scmp.ge.s32.totalorder %s1216_s13, 1 }
   0x5   : > { %p331_p2 = scmp.lt.s32.totalorder %s1216_s13, 5 }
   0x6   : > { %s1564_s14 = smov (%p29_p0, %s28_s14), 0  ;;  %s1566_s15 = smov (!%p29_p0, %s31_s15), %s1212_s12 }
   0x7   : > { %p332_p3 = pnand %p1064_p1, %p331_p2  ;;  %p33_p4 = scmp.ge.s32.totalorder %s1566_s15, 2 }
   0x8   : > { %p386_p5 = scmp.lt.s32.totalorder (!%p332_p3), %s1204_s10, 1  ;;  %s1325_s27 = sshll.u32 (!%p332_p3), %s1200_s30, 6 }
   0x9   : > { %s1568_s15 = smov (%p33_p4, %s1566_s15), 0  ;;  %335 = sbr.rel (%p332_p3) target bundleno = 245 (0xf5), region = 56 }
   0xe   : > { %v1074_v0 = vld [vmem:[%s1553_s4 + $0x2] sm:$0x3]  ;;  %vm475_vm0 = vcmask 1041408   ;;  %s1570_s10 = smov (!%p386_p5, %s1204_s10), 1  ;;  %v446_v2 = vld [vmem:[%s1553_s4] sm:$0x3] }
   0xf   : > { %v477_v1 = vsel %vm475_vm0, %v1074_v0, 0  ;;  %v1312_v3 = vld [vmem:[%s1554_s5] ss:$0 sm:$0xff]  ;;  %v505_v4 = vsel %vm475_vm0, %v446_v2, 0  ;;  %v1079_v5 = vld [vmem:[%s1553_s4 + $0x4] sm:$0x3] }
  0x10   : > { %486 = vmatpush.bf16.msra.mxu0 %v477_v1  ;;  %1132 = vmatpush.bf16.msra.mxu1 %v477_v1  ;;  %v1082_v6 = vld [vmem:[%s1553_s4 + $0x6] sm:$0x3]  ;;  %s1322_s26 = smul.u32 144, %s1570_s10  ;;  %v553_v7 = vsel %vm475_vm0, %v1079_v5, 0  ;;  %v1085_v9 = vld [vmem:[%s1553_s4 + $0x8] sm:$0x3] }
  0x11   : > { %v606_v8 = vsel %vm475_vm0, %v1082_v6, 0  ;;  %562 = vmatpush.bf16.msra.mxu2 %v553_v7  ;;  %v659_v10 = vsel %vm475_vm0, %v1085_v9, 0  ;;  %v1097_v11 = vld [vmem:[%s1553_s4 + $0xc] sm:$0x3]  ;;  %v1106_v12 = vld [vmem:[%s1553_s4 + $0xe] sm:$0x3] }
  0x12   : > { %615 = vmatpush.bf16.msra.mxu3 %v606_v8  ;;  %s390_s22 = scalar_lea.vmem %s1549_s0, %s1322_s26  ;;  %s395_s25 = scalar_lea.vmem %s1550_s1, %s1322_s26  ;;  %v766_v13 = vsel %vm475_vm0, %v1097_v11, 0  ;;  %v819_v14 = vsel %vm475_vm0, %v1106_v12, 0  ;;  %v1355_v15 = vld [vmem:[%s1555_s6] ss:$0 sm:$0xff]  ;;  %vm468_vm1 = vcmask 31744  }
  0x13   : > { %s1350_s28 = scalar_lea.vmem %s390_s22, %s1325_s27  ;;  %s1358_s17 = scalar_lea.vmem %s395_s25, %s1325_s27  ;;  %v1088_v38 = vld [vmem:[%s1553_s4 + $0xa] sm:$0x3]  ;;  %v1113_v44 = vld [vmem:[%s1553_s4 + $0x10] sm:$0x3] }
  0x14   : > { %514 = vmatpush.bf16.msrb.mxu1 %v505_v4  ;;  %668 = vmatpush.bf16.msrb.mxu0 %v659_v10  ;;  %v448_v16 = vld [vmem:[%s1358_s17] sm:$0xff]  ;;  %v449_v17 = vld [vmem:[%s1358_s17 + $0x10] sm:$0xff]  ;;  %s400_s20 = scalar_lea.vmem %s1551_s2, %s1322_s26  ;;  %s405_s23 = scalar_lea.vmem %s1552_s3, %s1322_s26  ;;  %v711_v54 = vsel %vm475_vm0, %v1088_v38, 0  ;;  %v871_v60 = vsel %vm475_vm0, %v1113_v44, 0 }
  0x15   : > { %775 = vmatpush.bf16.msrb.mxu2 %v766_v13  ;;  %v450_v18 = vld [vmem:[%s1358_s17 + $0x20] sm:$0xff]  ;;  %v452_v19 = vmul.f32 %v1312_v3, %v448_v16  ;;  %v453_v20 = vmul.f32 %v1312_v3, %v449_v17  ;;  %v451_v21 = vld [vmem:[%s1358_s17 + $0x30] sm:$0xff]  ;;  %s1378_s24 = scalar_lea.vmem %s400_s20, %s1325_s27  ;;  %s1394_s26 = scalar_lea.vmem %s405_s23, %s1325_s27 }
  0x16   : > { %828 = vmatpush.bf16.msrb.mxu3 %v819_v14  ;;  %v454_v22 = vmul.f32 %v1312_v3, %v450_v18  ;;  %v526_v23 = vld [vmem:[%s1350_s28 + $0x1] sm:$0xff]  ;;  %v527_v24 = vld [vmem:[%s1350_s28 + $0x11] sm:$0xff]  ;;  %v455_v25 = vmul.f32 %v1312_v3, %v451_v21  ;;  %s1070_s20 = sshll.u32 %s1570_s10, 3 }
  0x17   : > { %v530_v26 = vmul.f32 %v1312_v3, %v526_v23  ;;  %v531_v27 = vmul.f32 %v1312_v3, %v527_v24  ;;  %v579_v28 = vld [vmem:[%s1378_s24] sm:$0xff]  ;;  %v580_v29 = vld [vmem:[%s1378_s24 + $0x10] sm:$0xff]  ;;  %v456_v30 = vadd.f32 %v1355_v15, %v452_v19  ;;  %v1387_v31 = vadd.f32 %v1355_v15, %v453_v20 }
  0x18   : > { %v1390_v32 = vadd.f32 %v1355_v15, %v454_v22  ;;  %v583_v33 = vmul.f32 %v1312_v3, %v579_v28  ;;  %v1397_v34 = vadd.f32 %v1355_v15, %v455_v25  ;;  %v584_v37 = vmul.f32 %v1312_v3, %v580_v29  ;;  %v422_v43 = vld [vmem:[%s1350_s28] sm:$0xff]  ;;  %v423_v49 = vld [vmem:[%s1350_s28 + $0x10] sm:$0xff] }
  0x19   : > { %v534_v35 = vadd.f32 %v1355_v15, %v530_v26  ;;  %v1401_v36 = vadd.f32 %v1355_v15, %v531_v27  ;;  %v460_v39 = vmax.f32 %v456_v30, 0.0  ;;  %v461_v40 = vmax.f32 %v1387_v31, 0.0  ;;  %v632_v50 = vld [vmem:[%s1394_s26] sm:$0xff]  ;;  %v633_v51 = vld [vmem:[%s1394_s26 + $0x10] sm:$0xff] }
  0x1a   : > { %v462_v41 = vmax.f32 %v1390_v32, 0.0  ;;  %v587_v42 = vadd.f32 %v1355_v15, %v583_v33  ;;  %v463_v45 = vmax.f32 %v1397_v34, 0.0  ;;  %v588_v48 = vadd.f32 %v1355_v15, %v584_v37  ;;  %v528_v55 = vld [vmem:[%s1350_s28 + $0x21] sm:$0xff]  ;;  %v529_v56 = vld [vmem:[%s1350_s28 + $0x31] sm:$0xff] }
  0x1b   : > { %v538_v46 = vmax.f32 %v534_v35, 0.0  ;;  %v539_v47 = vmax.f32 %v1401_v36, 0.0  ;;  %v464_v52 = vpack.c.bf16 %v461_v40, %v460_v39  ;;  %v429_v61 = vmul.f32 %v1312_v3, %v422_v43  ;;  %v581_v1 = vld [vmem:[%s1378_s24 + $0x20] sm:$0xff]  ;;  %v582_v2 = vld [vmem:[%s1378_s24 + $0x30] sm:$0xff] }
  0x1c   : > { %v591_v53 = vmax.f32 %v587_v42, 0.0  ;;  %v465_v57 = vpack.c.bf16 %v463_v45, %v462_v41  ;;  %v592_v59 = vmax.f32 %v588_v48, 0.0  ;;  %v430_v62 = vmul.f32 %v1312_v3, %v423_v49  ;;  %v424_v27 = vld [vmem:[%s1350_s28 + $0x20] sm:$0xff]  ;;  %v635_v33 = vld [vmem:[%s1394_s26 + $0x30] sm:$0xff] }
  0x1d   : > { %v542_v58 = vpack.c.bf16 %v539_v47, %v538_v46  ;;  %1075 = vmatmul.msk.bf16.vlgmr.msra.gmra.mxu0 %vm468_vm1, %v464_v52  ;;  %v636_v63 = vmul.f32 %v1312_v3, %v632_v50  ;;  %v637_v0 = vmul.f32 %v1312_v3, %v633_v51  ;;  %v532_v5 = vmul.f32 %v1312_v3, %v528_v55  ;;  %v634_v30 = vld [vmem:[%s1394_s26 + $0x20] sm:$0xff]  ;;  %v425_v35 = vld [vmem:[%s1350_s28 + $0x30] sm:$0xff] }
  0x1e   : > { %1076 = vmatmul.msk.bf16.vlgmr.msra.gmra.mxu1 %vm468_vm1, %v465_v57  ;;  %v595_v4 = vpack.c.bf16 %v592_v59, %v591_v53  ;;  %v533_v6 = vmul.f32 %v1312_v3, %v529_v56  ;;  %880 = vmatpush.bf16.msra.mxu0 %v871_v60  ;;  %v585_v7 = vmul.f32 %v1312_v3, %v581_v1  ;;  %v686_v46 = vld [vmem:[%s1378_s24 + $0x21] sm:$0xff]  ;;  %v687_v48 = vld [vmem:[%s1378_s24 + $0x31] sm:$0xff] }
  0x1f   : > { %1080 = vmatmul.msk.bf16.vlgmr.msra.gmra.mxu2 %vm468_vm1, %v542_v58  ;;  %720 = vmatpush.bf16.msra.mxu1 %v711_v54  ;;  %v586_v8 = vmul.f32 %v1312_v3, %v582_v2  ;;  %v640_v9 = vadd.f32 %v1355_v15, %v636_v63  ;;  %v641_v10 = vadd.f32 %v1355_v15, %v637_v0 }
  0x20   : > { %1083 = vmatmul.msk.bf16.vlgmr.msra.gmra.mxu3 %vm468_vm1, %v595_v4  ;;  %v436_v11 = vadd.f32 %v1355_v15, %v429_v61  ;;  %v437_v12 = vadd.f32 %v1355_v15, %v430_v62  ;;  %v1451_v13 = vadd.f32 %v1355_v15, %v532_v5  ;;  %v1454_v14 = vadd.f32 %v1355_v15, %v533_v6  ;;  %v1112_v61 = vld [vmem:[%s1350_s28 + $0x41] sm:$0xff] }
  0x21   : > { %v589_v16 = vadd.f32 %v1355_v15, %v585_v7  ;;  %v590_v17 = vadd.f32 %v1355_v15, %v586_v8  ;;  %v644_v18 = vmax.f32 %v640_v9, 0.0  ;;  %v645_v19 = vmax.f32 %v641_v10, 0.0  ;;  %v684_v6 = vld [vmem:[%s1378_s24 + $0x1] sm:$0xff]  ;;  %v685_v7 = vld [vmem:[%s1378_s24 + $0x11] sm:$0xff] }
  0x22   : > { %v440_v20 = vmax.f32 %v436_v11, 0.0  ;;  %v441_v21 = vmax.f32 %v437_v12, 0.0  ;;  %v540_v22 = vmax.f32 %v1451_v13, 0.0  ;;  %v541_v23 = vmax.f32 %v1454_v14, 0.0  ;;  %v1096_v8 = vld [vmem:[%s1350_s28 + $0x40] sm:$0xff]  ;;  %s1069_s28 = sshll.u32 %s1200_s30, 2 }
  0x23   : > { %v593_v24 = vmax.f32 %v589_v16, 0.0  ;;  %v594_v25 = vmax.f32 %v590_v17, 0.0  ;;  %v648_v26 = vpack.c.bf16 %v645_v19, %v644_v18  ;;  %v431_v38 = vmul.f32 %v1312_v3, %v424_v27  ;;  %v1105_v11 = vld [vmem:[%s1358_s17 + $0x40] sm:$0xff]  ;;  %p409_p6 = scmp.lt.s32.totalorder %s1069_s28, 7 }
  0x24   : > { %v444_v28 = vpack.c.bf16 %v441_v21, %v440_v20  ;;  %v543_v29 = vpack.c.bf16 %v541_v23, %v540_v22  ;;  %v638_v39 = vmul.f32 %v1312_v3, %v634_v30  ;;  %v639_v42 = vmul.f32 %v1312_v3, %v635_v33 }
  0x25   : > { %v596_v37 = vpack.c.bf16 %v594_v25, %v593_v24  ;;  %v432_v43 = vmul.f32 %v1312_v3, %v425_v35  ;;  %v438_v44 = vadd.f32 %v1355_v15, %v431_v38  ;;  %v690_v51 = vmul.f32 %v1312_v3, %v686_v46  ;;  %s1572_s28 = smov (!%p409_p6, %s1069_s28), 7 }
  0x26   : > { %v642_v49 = vadd.f32 %v1355_v15, %v638_v39  ;;  %v643_v50 = vadd.f32 %v1355_v15, %v639_v42  ;;  %v691_v52 = vmul.f32 %v1312_v3, %v687_v48  ;;  %v851_v63 = vmul.f32 %v1312_v3, %v1112_v61  ;;  %s412_s21 = sadd.s32 %s1070_s20, %s1572_s28 }
  0x27   : > { %v439_v53 = vadd.f32 %v1355_v15, %v432_v43  ;;  %v694_v54 = vadd.f32 %v1355_v15, %v690_v51  ;;  %v442_v56 = vmax.f32 %v438_v44, 0.0  ;;  %v808_v9 = vpack.c.bf16 %v462_v41, %v461_v40  ;;  %s1071_s22 = sshll.u32 %s412_s21, 2 }
  0x28   : > { %v695_v55 = vadd.f32 %v1355_v15, %v691_v52  ;;  %v646_v57 = vmax.f32 %v642_v49, 0.0  ;;  %v647_v58 = vmax.f32 %v643_v50, 0.0  ;;  %v855_v1 = vadd.f32 %v1355_v15, %v851_v63  ;;  %s414_s24 = scalar_lea.vmem %s1558_s9, %s1071_s22 }
  0x29   : > { %v698_v59 = vmax.f32 %v694_v54, 0.0  ;;  %v443_v62 = vmax.f32 %v439_v53, 0.0  ;;  %v755_v5 = vpack.c.bf16 %v442_v56, %v441_v21  ;;  %v688_v10 = vmul.f32 %v1312_v3, %v684_v6  ;;  %v1176_v6 = vld [vmem:[%s1556_s7] ss:$0 sm:$0xff] }
  0x2a   : > { %v699_v60 = vmax.f32 %v695_v55, 0.0  ;;  %v649_v2 = vpack.c.bf16 %v647_v58, %v646_v57  ;;  %v689_v12 = vmul.f32 %v1312_v3, %v685_v7  ;;  %v746_v16 = vmul.f32 %v1312_v3, %v1096_v8 }
  0x2b   : > { %v445_v4 = vpack.c.bf16 %v443_v62, %v442_v56  ;;  %v799_v31 = vmul.f32 %v1312_v3, %v1105_v11  ;;  %v692_v32 = vadd.f32 %v1355_v15, %v688_v10  ;;  %v860_v24 = vpack.c.bf16 %v540_v22, %v539_v47 }
  0x2c   : > { %v701_v0 = vpack.c.bf16 %v699_v60, %v698_v59  ;;  %v693_v40 = vadd.f32 %v1355_v15, %v689_v12  ;;  %v750_v41 = vadd.f32 %v1355_v15, %v746_v16  ;;  %v1177_v16 = vld [vmem:[%s1557_s8] ss:$0 sm:$0xff] }
  0x2d   : > { %1086 = vmatmul.msk.bf16.vlgmr.msrb.gmra.mxu0 %vm468_vm1, %v648_v26  ;;  %v803_v17 = vadd.f32 %v1355_v15, %v799_v31  ;;  %v696_v18 = vmax.f32 %v692_v32, 0.0  ;;  %v859_v15 = vmax.f32 %v855_v1, 0.0 }
  0x2e   : > { %1077 = vmatmul.msk.bf16.vlgmr.msrb.gmra.mxu1 %vm468_vm1, %v444_v28  ;;  %v697_v19 = vmax.f32 %v693_v40, 0.0  ;;  %v754_v20 = vmax.f32 %v750_v41, 0.0 }
  0x2f   : > { %1081 = vmatmul.msk.bf16.gmra.mxu2 %vm468_vm1, %v543_v29  ;;  %v807_v21 = vmax.f32 %v803_v17, 0.0  ;;  %v861_v36 = vpack.c.bf16 %v859_v15, %v541_v23 }
  0x30   : > { %1084 = vmatmul.msk.bf16.gmra.mxu3 %vm468_vm1, %v596_v37  ;;  %v700_v25 = vpack.c.bf16 %v697_v19, %v696_v18  ;;  %v756_v26 = vpack.c.bf16 %v754_v20, %v443_v62 }
  0x31   : > { %v809_v3 = vpack.c.bf16 %v807_v21, %v463_v45 }
  0x3d   : > { %1087 = vmatmul.msk.bf16.gmra.mxu0 %vm468_vm1, %v649_v2 }
  0x3e   : > { %1078 = vmatmul.msk.bf16.gmra.mxu1 %vm468_vm1, %v445_v4 }
  0x3f   : > { %1098 = vmatmul.msk.bf16.vlgmr.msrb.gmra.mxu2 %vm468_vm1, %v755_v5 }
  0x40   : > { %1107 = vmatmul.msk.bf16.vlgmr.msrb.gmra.mxu3 %vm468_vm1, %v808_v9 }
  0x4d   : > { %1114 = vmatmul.msk.bf16.vlgmr.msra.gmra.mxu0 %vm468_vm1, %v860_v24 }
  0x4e   : > { %1089 = vmatmul.msk.bf16.vlgmr.msra.gmra.mxu1 %vm468_vm1, %v700_v25 }
  0x4f   : > { %1099 = vmatmul.msk.bf16.gmra.mxu2 %vm468_vm1, %v756_v26 }
  0x50   : > { %1108 = vmatmul.msk.bf16.gmra.mxu3 %vm468_vm1, %v809_v3 }
  0x5d   : > { %1115 = vmatmul.msk.bf16.gmra.mxu0 %vm468_vm1, %v861_v36 }
  0x5e   : > { %1090 = vmatmul.msk.bf16.gmra.mxu1 %vm468_vm1, %v701_v0 }
  0x9a   : > { %v488_v47 = vpop.f32.mrf.mxu0 }
  0x9b   : > { %v493_v13 = vpop.f32.mrf.mxu1 }
  0xa2   : > { %v564_v34 = vpop.f32.mrf.mxu2  ;;  %v490_v45 = vpop.f32.mrf.mxu0 }
  0xa3   : > { %v495_v22 = vpop.f32.mrf.mxu1  ;;  %v617_v27 = vpop.f32.mrf.mxu3 }
  0xaa   : > { %v566_v28 = vpop.f32.mrf.mxu2  ;;  %v670_v29 = vpop.f32.mrf.mxu0 }
  0xab   : > { %v516_v30 = vpop.f32.mrf.mxu1  ;;  %v619_v33 = vpop.f32.mrf.mxu3 }
  0xac   : > { %v517_v43 = vadd.f32 %v516_v30, %v488_v47 }
  0xae   : > { %v574_v46 = vadd.f32 %v564_v34, %v517_v43 }
  0xb0   : > { %v627_v50 = vadd.f32 %v617_v27, %v574_v46 }
  0xb2   : > { %v672_v35 = vpop.f32.mrf.mxu0  ;;  %v569_v38 = vpop.f32.mrf.mxu2  ;;  %v680_v54 = vadd.f32 %v670_v29, %v627_v50 }
  0xb3   : > { %v518_v37 = vpop.f32.mrf.mxu1  ;;  %v622_v39 = vpop.f32.mrf.mxu3 }
  0xb4   : > { %v519_v51 = vadd.f32 %v518_v37, %v490_v45 }
  0xb6   : > { %v575_v55 = vadd.f32 %v566_v28, %v519_v51 }
  0xb8   : > { %v628_v59 = vadd.f32 %v619_v33, %v575_v55 }
  0xba   : > { %v675_v14 = vpop.f32.mrf.mxu0  ;;  %v571_v42 = vpop.f32.mrf.mxu2  ;;  %v681_v0 = vadd.f32 %v672_v35, %v628_v59 }
  0xbb   : > { %v521_v23 = vpop.f32.mrf.mxu1  ;;  %v624_v44 = vpop.f32.mrf.mxu3 }
  0xbc   : > { %v522_v60 = vadd.f32 %v521_v23, %v493_v13 }
  0xbe   : > { %v576_v1 = vadd.f32 %v569_v38, %v522_v60 }
  0xc0   : > { %v629_v9 = vadd.f32 %v622_v39, %v576_v1 }
  0xc2   : > { %v677_v48 = vpop.f32.mrf.mxu0  ;;  %v777_v52 = vpop.f32.mrf.mxu2  ;;  %v682_v32 = vadd.f32 %v675_v14, %v629_v9 }
  0xc3   : > { %v523_v49 = vpop.f32.mrf.mxu1  ;;  %v830_v53 = vpop.f32.mrf.mxu3 }
  0xc4   : > { %v524_v10 = vadd.f32 %v523_v49, %v495_v22 }
  0xc6   : > { %v577_v40 = vadd.f32 %v571_v42, %v524_v10 }
  0xc8   : > { %v630_v25 = vadd.f32 %v624_v44, %v577_v40 }
  0xca   : > { %v882_v57 = vpop.f32.mrf.mxu0  ;;  %v779_v63 = vpop.f32.mrf.mxu2  ;;  %v683_v34 = vadd.f32 %v677_v48, %v630_v25 }
  0xcb   : > { %v722_v56 = vpop.f32.mrf.mxu1  ;;  %v832_v2 = vpop.f32.mrf.mxu3 }
  0xcc   : > { %v732_v58 = vadd.f32 %v722_v56, %v680_v54 }
  0xce   : > { %v787_v61 = vadd.f32 %v777_v52, %v732_v58 }
  0xd0   : > { %v840_v62 = vadd.f32 %v830_v53, %v787_v61 }
  0xd2   : > { %v892_v5 = vadd.f32 %v882_v57, %v840_v62  ;;  %v884_v8 = vpop.f32.mrf.mxu0  ;;  %v782_v17 = vpop.f32.mrf.mxu2 }
  0xd3   : > { %v724_v4 = vpop.f32.mrf.mxu1  ;;  %v835_v24 = vpop.f32.mrf.mxu3 }
  0xd4   : > { %v733_v7 = vadd.f32 %v724_v4, %v681_v0  ;;  %v900_v12 = vmul.f32 %v1176_v6, %v892_v5 }
  0xd6   : > { %v788_v11 = vadd.f32 %v779_v63, %v733_v7  ;;  %v908_v19 = vadd.f32 %v1177_v16, %v900_v12 }
  0xd8   : > { %v841_v31 = vadd.f32 %v832_v2, %v788_v11  ;;  %v912_v36 = vmax.f32 %v908_v19, 0.0 }
  0xda   : > { %v893_v41 = vadd.f32 %v884_v8, %v841_v31  ;;  %v887_v15 = vpop.f32.mrf.mxu0  ;;  %v784_v29 = vpop.f32.mrf.mxu2 }
  0xdb   : > { %v727_v18 = vpop.f32.mrf.mxu1  ;;  %v837_v33 = vpop.f32.mrf.mxu3 }
  0xdc   : > { %v901_v20 = vmul.f32 %v1176_v6, %v893_v41  ;;  %v734_v21 = vadd.f32 %v727_v18, %v682_v32 }
  0xde   : > { %v909_v26 = vadd.f32 %v1177_v16, %v901_v20  ;;  %v789_v3 = vadd.f32 %v782_v17, %v734_v21 }
  0xe0   : > { %v913_v47 = vmax.f32 %v909_v26, 0.0  ;;  %v842_v13 = vadd.f32 %v835_v24, %v789_v3 }
  0xe2   : > { %v1124_v45 = vpack.c.bf16 %v913_v47, %v912_v36  ;;  %v894_v27 = vadd.f32 %v887_v15, %v842_v13  ;;  %v889_v38 = vpop.f32.mrf.mxu0 }
  0xe3   : > { %v729_v22 = vpop.f32.mrf.mxu1 }
  0xe4   : > { %1125 = vst [vmem:[%s414_s24] sm:$0xff] %v1124_v45   ;;  %v735_v28 = vadd.f32 %v729_v22, %v683_v34  ;;  %v902_v35 = vmul.f32 %v1176_v6, %v894_v27 }
  0xe6   : > { %v790_v30 = vadd.f32 %v784_v29, %v735_v28  ;;  %v910_v14 = vadd.f32 %v1177_v16, %v902_v35 }
  0xe8   : > { %v843_v37 = vadd.f32 %v837_v33, %v790_v30  ;;  %v914_v43 = vmax.f32 %v910_v14, 0.0 }
  0xea   : > { %v895_v39 = vadd.f32 %v889_v38, %v843_v37 }
  0xec   : > { %v903_v23 = vmul.f32 %v1176_v6, %v895_v39 }
  0xee   : > { %v911_v42 = vadd.f32 %v1177_v16, %v903_v23 }
  0xf0   : > { %v915_v44 = vmax.f32 %v911_v42, 0.0 }
  0xf2   : > { %v1129_v46 = vpack.c.bf16 %v915_v44, %v914_v43 }
  0xf4   : > { %1131 = vst [vmem:[%s414_s24 + $0x8] sm:$0xff] %v1129_v46  }
  0xf5 PF: > { %s19_s13 = sadd.s32 1, %s1216_s13   ;;  %s1559_s30 = smov %s1208_s11 }
  0xf6   : > { %p16_p7 = scmp.ge.s32.totalorder %s19_s13, 6   ;;  %s1560_s10 = smov %s1212_s12 }
  0xf7   : > { %s1561_s11 = smov %s1564_s14  ;;  %s1562_s12 = smov %s1568_s15 }
  0xf8   :  { %18 = sbr.rel (!%p16_p7) target bundleno = 3 (0x3), region = 109 }

// kernel: network_block_forward.6
= control target key start
LH: loop header
LB: loop body
LE: loop exit
PB: predicated region body
PF: predicated region fallthrough
CT: control target
= control target key end

     0   :  { %s2030_s21 = smov 0   ;;  %s2032_s22 = smov 0   ;;  %s2429_s0 = inlined_call_operand.vmem [shape: f32[2,10,10,128], index: 0, kind: input, shape index: {}]   ;;  %s2430_s1 = inlined_call_operand.vmem [shape: bf16[9,128,128], index: 1, kind: input, shape index: {}]   ;;  %s2431_s2 = inlined_call_operand.vmem [shape: f32[1,128], index: 2, kind: input, shape index: {}]   ;;  %s2432_s3 = inlined_call_operand.vmem [shape: f32[1,128], index: 3, kind: input, shape index: {}]   ;;  %s2433_s4 = inlined_call_operand.vmem [shape: f32[1,128], index: 4, kind: input, shape index: {}]   ;;  %s2434_s5 = inlined_call_operand.vmem [shape: f32[1,128], index: 5, kind: input, shape index: {}]   ;;  %s2435_s6 = inlined_call_operand.vmem [shape: bf16[2,64,128], index: 6, kind: output, shape index: {}]  }
   0x1   :  { %s2034_s23 = smov 0   ;;  %s2036_s24 = smov 0  }
   0x2   :  { %s2038_s25 = smov 0  }
   0x3 LB: > { %s25_s26 = sadd.s32 1, %s1985_s23  ;;  %s28_s27 = sadd.s32 1, %s1989_s24  ;;  %s1993_s25 = sphi %s2038_s25, %s16_s25   ;;  %s1989_s24 = sphi %s2036_s24, %s2439_s24   ;;  %s1985_s23 = sphi %s2034_s23, %s2438_s23   ;;  %s1981_s22 = sphi %s2032_s22, %s2437_s22   ;;  %s1977_s21 = sphi %s2030_s21, %s2436_s21  }
   0x4   : > { %p26_p0 = scmp.ge.s32.totalorder %s25_s26, 2  ;;  %p1363_p1 = scmp.ge.s32.totalorder %s1993_s25, 1 }
   0x5   : > { %p226_p2 = scmp.lt.s32.totalorder %s1993_s25, 5 }
   0x6   : > { %s2441_s26 = smov (%p26_p0, %s25_s26), 0  ;;  %s2443_s27 = smov (!%p26_p0, %s28_s27), %s1989_s24 }
   0x7   : > { %p227_p3 = pnand %p1363_p1, %p226_p2  ;;  %p30_p4 = scmp.ge.s32.totalorder %s2443_s27, 2 }
   0x8   : > { %p260_p5 = scmp.lt.s32.totalorder (!%p227_p3), %s1981_s22, 1  ;;  %s1816_s15 = sshll.u32 (!%p227_p3), %s1977_s21, 6 }
   0x9   : > { %s2445_s27 = smov (%p30_p4, %s2443_s27), 0  ;;  %230 = sbr.rel (%p227_p3) target bundleno = 256 (0x100), region = 44 }
   0xa   : > { %s1365_s11 = sshll.u32 (!%p227_p3), %s1977_s21, 2 }
   0xb   : > { %p268_p6 = scmp.lt.s32.totalorder (!%p227_p3), %s1365_s11, 7 }
   0xe   : > { %v1832_v0 = vld [vmem:[%s2430_s1 + $0x78] sm:$0xff]  ;;  %v1831_v4 = vld [vmem:[%s2430_s1 + $0x70] sm:$0xff]  ;;  %s2447_s22 = smov (!%p260_p5, %s1981_s22), 1  ;;  %v1830_v8 = vld [vmem:[%s2430_s1 + $0x68] sm:$0xff]  ;;  %s2449_s11 = smov (!%p268_p6, %s1365_s11), 7 }
   0xf   : > { %v1824_v1 = vld [vmem:[%s2430_s1 + $0x38] sm:$0xff]  ;;  %403 = vmatpush.bf16.msra.mxu0 %v1832_v0  ;;  %v1823_v5 = vld [vmem:[%s2430_s1 + $0x30] sm:$0xff]  ;;  %s1910_s20 = smul.u32 160, %s2447_s22  ;;  %v1822_v9 = vld [vmem:[%s2430_s1 + $0x28] sm:$0xff] }
  0x10   : > { %v1840_v2 = vld [vmem:[%s2430_s1 + $0xb8] sm:$0xff]  ;;  %470 = vmatpush.bf16.msra.mxu1 %v1824_v1  ;;  %v1839_v6 = vld [vmem:[%s2430_s1 + $0xb0] sm:$0xff]  ;;  %v1838_v10 = vld [vmem:[%s2430_s1 + $0xa8] sm:$0xff] }
  0x11   : > { %v1849_v3 = vld [vmem:[%s2430_s1 + $0xf8] sm:$0xff]  ;;  %572 = vmatpush.bf16.msra.mxu2 %v1840_v2  ;;  %v1848_v7 = vld [vmem:[%s2430_s1 + $0xf0] sm:$0xff]  ;;  %v1847_v11 = vld [vmem:[%s2430_s1 + $0xe8] sm:$0xff]  ;;  %s264_s14 = scalar_lea.vmem %s2429_s0, %s1910_s20 }
  0x12   : > { %681 = vmatpush.bf16.msra.mxu3 %v1849_v3  ;;  %v1829_v12 = vld [vmem:[%s2430_s1 + $0x60] sm:$0xff]  ;;  %s2111_s28 = scalar_lea.vmem %s264_s14, %s1816_s15  ;;  %v1828_v16 = vld [vmem:[%s2430_s1 + $0x58] sm:$0xff]  ;;  %v1827_v34 = vld [vmem:[%s2430_s1 + $0x50] sm:$0xff]  ;;  %s1366_s15 = sshll.u32 %s2447_s22, 3 }
  0x13   : > { %404 = vmatpush.bf16.msra.mxu0 %v1831_v4  ;;  %v1821_v13 = vld [vmem:[%s2430_s1 + $0x20] sm:$0xff]  ;;  %v1820_v17 = vld [vmem:[%s2430_s1 + $0x18] sm:$0xff]  ;;  %v281_v23 = vld [vmem:[%s2111_s28 + $0x10] sm:$0xff]  ;;  %s271_s16 = sadd.s32 %s1366_s15, %s2449_s11 }
  0x14   : > { %471 = vmatpush.bf16.msra.mxu1 %v1823_v5  ;;  %v1837_v14 = vld [vmem:[%s2430_s1 + $0xa0] sm:$0xff]  ;;  %v1836_v19 = vld [vmem:[%s2430_s1 + $0x98] sm:$0xff]  ;;  %v1819_v35 = vld [vmem:[%s2430_s1 + $0x10] sm:$0xff]  ;;  %s1367_s17 = sshll.u32 %s271_s16, 2 }
  0x15   : > { %573 = vmatpush.bf16.msra.mxu2 %v1839_v6  ;;  %v1846_v15 = vld [vmem:[%s2430_s1 + $0xe0] sm:$0xff]  ;;  %v321_v21 = vld [vmem:[%s2111_s28 + $0x11] sm:$0xff]  ;;  %v1826_v45 = vld [vmem:[%s2430_s1 + $0x48] sm:$0xff]  ;;  %s273_s22 = scalar_lea.vmem %s2435_s6, %s1367_s17 }
  0x16   : > { %682 = vmatpush.bf16.msra.mxu3 %v1848_v7  ;;  %v2128_v18 = vld [vmem:[%s2431_s2] ss:$0 sm:$0xff]  ;;  %v320_v20 = vld [vmem:[%s2111_s28 + $0x1] sm:$0xff]  ;;  %v1845_v25 = vld [vmem:[%s2430_s1 + $0xd8] sm:$0xff] }
  0x17   : > { %405 = vmatpush.bf16.msra.mxu0 %v1830_v8  ;;  %v280_v22 = vld [vmem:[%s2111_s28] sm:$0xff]  ;;  %v490_v26 = vld [vmem:[%s2111_s28 + $0x12] sm:$0xff]  ;;  %v324_v29 = vmul.f32 %v2128_v18, %v320_v20  ;;  %v325_v30 = vmul.f32 %v2128_v18, %v321_v21  ;;  %v288_v32 = vmul.f32 %v2128_v18, %v281_v23  ;;  %v1818_v46 = vld [vmem:[%s2430_s1 + $0x8] sm:$0xff] }
  0x18   : > { %472 = vmatpush.bf16.msra.mxu1 %v1822_v9  ;;  %v489_v24 = vld [vmem:[%s2111_s28 + $0x2] sm:$0xff]  ;;  %v2146_v28 = vld [vmem:[%s2432_s3] ss:$0 sm:$0xff]  ;;  %v287_v31 = vmul.f32 %v2128_v18, %v280_v22  ;;  %v494_v36 = vmul.f32 %v2128_v18, %v490_v26  ;;  %v1835_v38 = vld [vmem:[%s2430_s1 + $0x90] sm:$0xff] }
  0x19   : > { %574 = vmatpush.bf16.msra.mxu2 %v1838_v10  ;;  %v1501_v27 = vld [vmem:[%s2111_s28 + $0x20] sm:$0xff]  ;;  %v493_v33 = vmul.f32 %v2128_v18, %v489_v24  ;;  %v1844_v39 = vld [vmem:[%s2430_s1 + $0xd0] sm:$0xff]  ;;  %v328_v40 = vadd.f32 %v2146_v28, %v324_v29  ;;  %v2169_v41 = vadd.f32 %v2146_v28, %v325_v30  ;;  %v295_v43 = vadd.f32 %v2146_v28, %v288_v32  ;;  %v1834_v49 = vld [vmem:[%s2430_s1 + $0x88] sm:$0xff] }
  0x1a   : > { %683 = vmatpush.bf16.msra.mxu3 %v1847_v11  ;;  %v603_v37 = vmul.f32 %v2128_v18, %v1501_v27  ;;  %v294_v42 = vadd.f32 %v2146_v28, %v287_v31  ;;  %v2181_v47 = vadd.f32 %v2146_v28, %v494_v36  ;;  %v1843_v50 = vld [vmem:[%s2430_s1 + $0xc8] sm:$0xff]  ;;  %v1825_v51 = vld [vmem:[%s2430_s1 + $0x40] sm:$0xff]  ;;  %v1857_v62 = vld [vmem:[%s2430_s1 + $0x138] sm:$0xff] }
  0x1b   : > { %406 = vmatpush.bf16.msra.mxu0 %v1829_v12  ;;  %v497_v44 = vadd.f32 %v2146_v28, %v493_v33  ;;  %v1817_v52 = vld [vmem:[%s2430_s1] sm:$0xff]  ;;  %v332_v53 = vmax.f32 %v328_v40, 0.0  ;;  %v333_v54 = vmax.f32 %v2169_v41, 0.0  ;;  %v299_v56 = vmax.f32 %v295_v43, 0.0  ;;  %v1865_v63 = vld [vmem:[%s2430_s1 + $0x178] sm:$0xff]  ;;  %v283_v7 = vld [vmem:[%s2111_s28 + $0x30] sm:$0xff] }
  0x1c   : > { %473 = vmatpush.bf16.msra.mxu1 %v1821_v13  ;;  %v2184_v48 = vadd.f32 %v2146_v28, %v603_v37  ;;  %v298_v55 = vmax.f32 %v294_v42, 0.0  ;;  %v502_v58 = vmax.f32 %v2181_v47, 0.0  ;;  %v1833_v60 = vld [vmem:[%s2430_s1 + $0x80] sm:$0xff]  ;;  %v1874_v2 = vld [vmem:[%s2430_s1 + $0x1b8] sm:$0xff]  ;;  %v1856_v12 = vld [vmem:[%s2430_s1 + $0x130] sm:$0xff] }
  0x1d   : > { %575 = vmatpush.bf16.msra.mxu2 %v1837_v14  ;;  %v501_v57 = vmax.f32 %v497_v44, 0.0  ;;  %v1842_v61 = vld [vmem:[%s2430_s1 + $0xc0] sm:$0xff]  ;;  %v336_v0 = vpack.c.bf16 %v333_v54, %v332_v53  ;;  %v323_v6 = vld [vmem:[%s2111_s28 + $0x31] sm:$0xff]  ;;  %v1855_v23 = vld [vmem:[%s2430_s1 + $0x128] sm:$0xff] }
  0x1e   : > { %684 = vmatpush.bf16.msra.mxu3 %v1846_v15  ;;  %v611_v59 = vmax.f32 %v2184_v48, 0.0  ;;  %v302_v1 = vpack.c.bf16 %v299_v56, %v298_v55  ;;  %v322_v3 = vld [vmem:[%s2111_s28 + $0x21] sm:$0xff]  ;;  %v1882_v9 = vld [vmem:[%s2430_s1 + $0x1f8] sm:$0xff]  ;;  %v1864_v13 = vld [vmem:[%s2430_s1 + $0x170] sm:$0xff]  ;;  %v327_v15 = vmul.f32 %v2128_v18, %v323_v6 }
  0x1f   : > { %407 = vmatpush.bf16.msra.mxu0 %v1828_v16  ;;  %v505_v4 = vpack.c.bf16 %v502_v58, %v501_v57  ;;  %v491_v8 = vld [vmem:[%s2111_s28 + $0x22] sm:$0xff]  ;;  %v492_v10 = vld [vmem:[%s2111_s28 + $0x32] sm:$0xff]  ;;  %v326_v14 = vmul.f32 %v2128_v18, %v322_v3  ;;  %v290_v16 = vmul.f32 %v2128_v18, %v283_v7 }
  0x20   : > { %474 = vmatpush.bf16.msra.mxu1 %v1820_v17  ;;  %v614_v5 = vpack.c.bf16 %v611_v59, %v299_v56  ;;  %v1503_v11 = vld [vmem:[%s2111_s28 + $0x40] sm:$0xff]  ;;  %v495_v17 = vmul.f32 %v2128_v18, %v491_v8  ;;  %v1873_v21 = vld [vmem:[%s2430_s1 + $0x1b0] sm:$0xff]  ;;  %v1863_v24 = vld [vmem:[%s2430_s1 + $0x168] sm:$0xff]  ;;  %v2259_v26 = vadd.f32 %v2146_v28, %v327_v15 }
  0x21   : > { %576 = vmatpush.bf16.msra.mxu2 %v1836_v19  ;;  %v496_v19 = vmul.f32 %v2128_v18, %v492_v10  ;;  %v605_v20 = vmul.f32 %v2128_v18, %v1503_v11  ;;  %v1881_v22 = vld [vmem:[%s2430_s1 + $0x1f0] sm:$0xff]  ;;  %v297_v27 = vadd.f32 %v2146_v28, %v290_v16  ;;  %v1872_v32 = vld [vmem:[%s2430_s1 + $0x1a8] sm:$0xff]  ;;  %v1871_v43 = vld [vmem:[%s2430_s1 + $0x1a0] sm:$0xff] }
  0x22   : > { %685 = vmatpush.bf16.msra.mxu3 %v1845_v25  ;;  %v2256_v25 = vadd.f32 %v2146_v28, %v326_v14  ;;  %v2263_v29 = vadd.f32 %v2146_v28, %v495_v17  ;;  %v1880_v33 = vld [vmem:[%s2430_s1 + $0x1e8] sm:$0xff]  ;;  %v335_v37 = vmax.f32 %v2259_v26, 0.0  ;;  %v1879_v44 = vld [vmem:[%s2430_s1 + $0x1e0] sm:$0xff]  ;;  %v1870_v53 = vld [vmem:[%s2430_s1 + $0x198] sm:$0xff] }
  0x23   : > { %408 = vmatpush.bf16.msra.mxu0 %v1827_v34  ;;  %v2266_v30 = vadd.f32 %v2146_v28, %v496_v19  ;;  %v2269_v31 = vadd.f32 %v2146_v28, %v605_v20  ;;  %v1854_v34 = vld [vmem:[%s2430_s1 + $0x120] sm:$0xff]  ;;  %v1878_v55 = vld [vmem:[%s2430_s1 + $0x1d8] sm:$0xff]  ;;  %v1852_v48 = vld [vmem:[%s2430_s1 + $0x110] sm:$0xff] }
  0x24   : > { %475 = vmatpush.bf16.msra.mxu1 %v1819_v35  ;;  %v1862_v35 = vld [vmem:[%s2430_s1 + $0x160] sm:$0xff]  ;;  %v334_v36 = vmax.f32 %v2256_v25, 0.0  ;;  %v1860_v56 = vld [vmem:[%s2430_s1 + $0x150] sm:$0xff]  ;;  %v1888_v15 = vld [vmem:[%s2430_s1 + $0x228] sm:$0xff] }
  0x25   : > { %577 = vmatpush.bf16.msra.mxu2 %v1835_v38  ;;  %v301_v38 = vmax.f32 %v297_v27, 0.0  ;;  %v504_v40 = vmax.f32 %v2266_v30, 0.0  ;;  %v613_v42 = vmax.f32 %v2269_v31, 0.0  ;;  %v1869_v57 = vld [vmem:[%s2430_s1 + $0x190] sm:$0xff]  ;;  %v1875_v6 = vld [vmem:[%s2430_s1 + $0x1c0] sm:$0xff]  ;;  %v1886_v25 = vld [vmem:[%s2430_s1 + $0x218] sm:$0xff] }
  0x26   : > { %686 = vmatpush.bf16.msra.mxu3 %v1844_v39  ;;  %v503_v39 = vmax.f32 %v2263_v29, 0.0  ;;  %v1765_v3 = vld [vmem:[%s2111_s28 + $0x52] sm:$0xff]  ;;  %v720_v8 = vpack.c.bf16 %v334_v36, %v333_v54  ;;  %v1555_v10 = vld [vmem:[%s2111_s28 + $0x41] sm:$0xff] }
  0x27   : > { %409 = vmatpush.bf16.msra.mxu0 %v1826_v45  ;;  %v1853_v45 = vld [vmem:[%s2430_s1 + $0x118] sm:$0xff]  ;;  %v1607_v11 = vld [vmem:[%s2111_s28 + $0x42] sm:$0xff]  ;;  %v711_v41 = vmul.f32 %v2128_v18, %v1555_v10 }
  0x28   : > { %476 = vmatpush.bf16.msra.mxu1 %v1818_v46  ;;  %v1861_v46 = vld [vmem:[%s2430_s1 + $0x158] sm:$0xff]  ;;  %v817_v54 = vmul.f32 %v2128_v18, %v1607_v11  ;;  %v1884_v26 = vld [vmem:[%s2430_s1 + $0x208] sm:$0xff]  ;;  %v1883_v30 = vld [vmem:[%s2430_s1 + $0x200] sm:$0xff] }
  0x29   : > { %578 = vmatpush.bf16.msra.mxu2 %v1834_v49  ;;  %v337_v49 = vpack.c.bf16 %v335_v37, %v334_v36  ;;  %v1713_v14 = vld [vmem:[%s2111_s28 + $0x51] sm:$0xff]  ;;  %v715_v16 = vadd.f32 %v2146_v28, %v711_v41 }
  0x2a   : > { %687 = vmatpush.bf16.msra.mxu3 %v1843_v50  ;;  %v303_v50 = vpack.c.bf16 %v301_v38, %v611_v59  ;;  %v1877_v59 = vld [vmem:[%s2430_s1 + $0x1d0] sm:$0xff]  ;;  %v821_v17 = vadd.f32 %v2146_v28, %v817_v54 }
  0x2b   : > { %410 = vmatpush.bf16.msra.mxu0 %v1825_v51  ;;  %v2306_v51 = vpack.c.bf16 %v504_v40, %v503_v39 }
  0x2c   : > { %477 = vmatpush.bf16.msra.mxu1 %v1817_v52  ;;  %v615_v52 = vpack.c.bf16 %v613_v42, %v301_v38 }
  0x2d   : > { %579 = vmatpush.bf16.msra.mxu2 %v1833_v60  ;;  %v1851_v60 = vld [vmem:[%s2430_s1 + $0x108] sm:$0xff] }
  0x2e   : > { %688 = vmatpush.bf16.msra.mxu3 %v1842_v61  ;;  %411 = vmatmul.bf16.vlgmr.msra.gmra.mxu0 %v336_v0  ;;  %v1859_v61 = vld [vmem:[%s2430_s1 + $0x148] sm:$0xff]  ;;  %v1850_v0 = vld [vmem:[%s2430_s1 + $0x100] sm:$0xff] }
  0x2f   : > { %787 = vmatpush.bf16.msrb.mxu0 %v1857_v62  ;;  %478 = vmatmul.bf16.vlgmr.msra.gmra.mxu1 %v302_v1  ;;  %v1868_v62 = vld [vmem:[%s2430_s1 + $0x188] sm:$0xff]  ;;  %v1858_v1 = vld [vmem:[%s2430_s1 + $0x140] sm:$0xff] }
  0x30   : > { %893 = vmatpush.bf16.msrb.mxu1 %v1865_v63  ;;  %580 = vmatmul.bf16.vlgmr.msra.gmra.mxu2 %v505_v4  ;;  %v1876_v63 = vld [vmem:[%s2430_s1 + $0x1c8] sm:$0xff]  ;;  %v1138_v4 = vmul.f32 %v2128_v18, %v1765_v3 }
  0x31   : > { %689 = vmatmul.bf16.vlgmr.msra.gmra.mxu3 %v614_v5  ;;  %1002 = vmatpush.bf16.msrb.mxu2 %v1874_v2  ;;  %v1890_v2 = vld [vmem:[%s2430_s1 + $0x238] sm:$0xff]  ;;  %v1867_v5 = vld [vmem:[%s2430_s1 + $0x180] sm:$0xff] }
  0x32   : > { %1108 = vmatpush.bf16.msrb.mxu3 %v1882_v9  ;;  %v1142_v7 = vadd.f32 %v2146_v28, %v1138_v4  ;;  %v826_v9 = vpack.c.bf16 %v503_v39, %v502_v58  ;;  %v1032_v58 = vmul.f32 %v2128_v18, %v1713_v14 }
  0x33   : > { %788 = vmatpush.bf16.msrb.mxu0 %v1856_v12  ;;  %v1889_v12 = vld [vmem:[%s2430_s1 + $0x230] sm:$0xff] }
  0x34   : > { %894 = vmatpush.bf16.msrb.mxu1 %v1864_v13  ;;  %v1661_v13 = vld [vmem:[%s2111_s28 + $0x50] sm:$0xff]  ;;  %v1036_v20 = vadd.f32 %v2146_v28, %v1032_v58  ;;  %v1146_v31 = vmax.f32 %v1142_v7, 0.0 }
  0x35   : > { %1003 = vmatpush.bf16.msrb.mxu2 %v1873_v21  ;;  %v926_v47 = vmul.f32 %v2128_v18, %v1661_v13  ;;  %v1887_v18 = vld [vmem:[%s2430_s1 + $0x220] sm:$0xff]  ;;  %v719_v21 = vmax.f32 %v715_v16, 0.0 }
  0x36   : > { %1109 = vmatpush.bf16.msrb.mxu3 %v1881_v22  ;;  %v825_v22 = vmax.f32 %v821_v17, 0.0 }
  0x37   : > { %789 = vmatpush.bf16.msrb.mxu0 %v1855_v23  ;;  %v930_v19 = vadd.f32 %v2146_v28, %v926_v47  ;;  %v721_v27 = vpack.c.bf16 %v719_v21, %v335_v37 }
  0x38   : > { %895 = vmatpush.bf16.msrb.mxu1 %v1863_v24  ;;  %v1040_v24 = vmax.f32 %v1036_v20, 0.0  ;;  %v827_v28 = vpack.c.bf16 %v825_v22, %v504_v40 }
  0x39   : > { %1004 = vmatpush.bf16.msrb.mxu2 %v1872_v32  ;;  %v934_v23 = vmax.f32 %v930_v19, 0.0 }
  0x3a   : > { %1110 = vmatpush.bf16.msrb.mxu3 %v1880_v33  ;;  %v1042_v32 = vpack.c.bf16 %v1040_v24, %v719_v21  ;;  %v1885_v33 = vld [vmem:[%s2430_s1 + $0x210] sm:$0xff] }
  0x3b   : > { %790 = vmatpush.bf16.msrb.mxu0 %v1854_v34  ;;  %v936_v29 = vpack.c.bf16 %v934_v23, %v613_v42  ;;  %v1148_v34 = vpack.c.bf16 %v1146_v31, %v825_v22 }
  0x3c   : > { %896 = vmatpush.bf16.msrb.mxu1 %v1862_v35 }
  0x3d   : > { %1005 = vmatpush.bf16.msrb.mxu2 %v1871_v43 }
  0x3e   : > { %1111 = vmatpush.bf16.msrb.mxu3 %v1879_v44  ;;  %416 = vmatmul.bf16.gmra.mxu0 %v337_v49 }
  0x3f   : > { %791 = vmatpush.bf16.msrb.mxu0 %v1853_v45  ;;  %483 = vmatmul.bf16.gmra.mxu1 %v303_v50 }
  0x40   : > { %897 = vmatpush.bf16.msrb.mxu1 %v1861_v46  ;;  %585 = vmatmul.bf16.gmra.mxu2 %v2306_v51 }
  0x41   : > { %694 = vmatmul.bf16.gmra.mxu3 %v615_v52  ;;  %1006 = vmatpush.bf16.msrb.mxu2 %v1870_v53 }
  0x42   : > { %1112 = vmatpush.bf16.msrb.mxu3 %v1878_v55 }
  0x43   : > { %792 = vmatpush.bf16.msrb.mxu0 %v1852_v48 }
  0x44   : > { %898 = vmatpush.bf16.msrb.mxu1 %v1860_v56 }
  0x45   : > { %1007 = vmatpush.bf16.msrb.mxu2 %v1869_v57 }
  0x46   : > { %1113 = vmatpush.bf16.msrb.mxu3 %v1877_v59 }
  0x47   : > { %793 = vmatpush.bf16.msrb.mxu0 %v1851_v60 }
  0x48   : > { %899 = vmatpush.bf16.msrb.mxu1 %v1859_v61 }
  0x49   : > { %1008 = vmatpush.bf16.msrb.mxu2 %v1868_v62 }
  0x4a   : > { %1114 = vmatpush.bf16.msrb.mxu3 %v1876_v63 }
  0x4b   : > { %794 = vmatpush.bf16.msrb.mxu0 %v1850_v0 }
  0x4c   : > { %900 = vmatpush.bf16.msrb.mxu1 %v1858_v1 }
  0x4d   : > { %1009 = vmatpush.bf16.msrb.mxu2 %v1867_v5 }
  0x4e   : > { %1115 = vmatpush.bf16.msrb.mxu3 %v1875_v6  ;;  %795 = vmatmul.bf16.vlgmr.msrb.gmra.mxu0 %v720_v8 }
  0x4f   : > { %1214 = vmatpush.bf16.msra.mxu0 %v1890_v2  ;;  %901 = vmatmul.bf16.vlgmr.msrb.gmra.mxu1 %v826_v9 }
  0x50   : > { %1902 = vmatpush.bf16.msra.mxu1 %v1890_v2  ;;  %1010 = vmatmul.bf16.vlgmr.msrb.gmra.mxu2 %v303_v50 }
  0x51   : > { %1116 = vmatmul.bf16.vlgmr.msrb.gmra.mxu3 %v337_v49 }
  0x53   : > { %1215 = vmatpush.bf16.msra.mxu0 %v1889_v12 }
  0x54   : > { %1903 = vmatpush.bf16.msra.mxu1 %v1889_v12 }
  0x57   : > { %1216 = vmatpush.bf16.msra.mxu0 %v1888_v15 }
  0x58   : > { %1904 = vmatpush.bf16.msra.mxu1 %v1888_v15 }
  0x5b   : > { %1217 = vmatpush.bf16.msra.mxu0 %v1887_v18 }
  0x5c   : > { %1905 = vmatpush.bf16.msra.mxu1 %v1887_v18 }
  0x5e   : > { %800 = vmatmul.bf16.gmra.mxu0 %v721_v27 }
  0x5f   : > { %1218 = vmatpush.bf16.msra.mxu0 %v1886_v25  ;;  %906 = vmatmul.bf16.gmra.mxu1 %v827_v28 }
  0x60   : > { %1906 = vmatpush.bf16.msra.mxu1 %v1886_v25  ;;  %1015 = vmatmul.bf16.gmra.mxu2 %v936_v29 }
  0x61   : > { %1121 = vmatmul.bf16.gmra.mxu3 %v1042_v32 }
  0x63   : > { %1219 = vmatpush.bf16.msra.mxu0 %v1885_v33 }
  0x64   : > { %1907 = vmatpush.bf16.msra.mxu1 %v1885_v33 }
  0x67   : > { %1220 = vmatpush.bf16.msra.mxu0 %v1884_v26 }
  0x68   : > { %1908 = vmatpush.bf16.msra.mxu1 %v1884_v26  ;;  %v1953_v26 = vld [vmem:[%s2433_s4] ss:$0 sm:$0xff] }
  0x6b   : > { %1221 = vmatpush.bf16.msra.mxu0 %v1883_v30 }
  0x6c   : > { %1909 = vmatpush.bf16.msra.mxu1 %v1883_v30 }
  0x6e   : > { %1222 = vmatmul.bf16.vlgmr.msra.gmra.mxu0 %v2306_v51 }
  0x6f   : > { %1227 = vmatmul.bf16.vlgmr.msra.gmra.mxu1 %v1148_v34 }
  0xab   : > { %v412_v35 = vpop.f32.mrf.mxu0 }
  0xac   : > { %v479_v36 = vpop.f32.mrf.mxu1 }
  0xad   : > { %v480_v61 = vadd.f32 %v479_v36, %v412_v35 }
  0xb3   : > { %v581_v37 = vpop.f32.mrf.mxu2  ;;  %v414_v39 = vpop.f32.mrf.mxu0 }
  0xb4   : > { %v690_v38 = vpop.f32.mrf.mxu3  ;;  %v481_v40 = vpop.f32.mrf.mxu1  ;;  %v591_v2 = vadd.f32 %v581_v37, %v480_v61  ;;  %v1954_v37 = vld [vmem:[%s2434_s5] ss:$0 sm:$0xff] }
  0xb5   : > { %v482_v6 = vadd.f32 %v481_v40, %v414_v39 }
  0xb6   : > { %v700_v5 = vadd.f32 %v690_v38, %v591_v2 }
  0xbb   : > { %v583_v42 = vpop.f32.mrf.mxu2  ;;  %v417_v44 = vpop.f32.mrf.mxu0 }
  0xbc   : > { %v692_v43 = vpop.f32.mrf.mxu3  ;;  %v484_v45 = vpop.f32.mrf.mxu1  ;;  %v592_v9 = vadd.f32 %v583_v42, %v482_v6 }
  0xbd   : > { %v485_v62 = vadd.f32 %v484_v45, %v417_v44 }
  0xbe   : > { %v701_v54 = vadd.f32 %v692_v43, %v592_v9 }
  0xc3   : > { %v586_v46 = vpop.f32.mrf.mxu2  ;;  %v419_v50 = vpop.f32.mrf.mxu0 }
  0xc4   : > { %v695_v49 = vpop.f32.mrf.mxu3  ;;  %v486_v52 = vpop.f32.mrf.mxu1  ;;  %v593_v3 = vadd.f32 %v586_v46, %v485_v62 }
  0xc5   : > { %v487_v8 = vadd.f32 %v486_v52, %v419_v50 }
  0xc6   : > { %v702_v7 = vadd.f32 %v695_v49, %v593_v3 }
  0xcb   : > { %v588_v53 = vpop.f32.mrf.mxu2  ;;  %v796_v48 = vpop.f32.mrf.mxu0 }
  0xcc   : > { %v697_v55 = vpop.f32.mrf.mxu3  ;;  %v902_v56 = vpop.f32.mrf.mxu1  ;;  %v594_v10 = vadd.f32 %v588_v53, %v487_v8  ;;  %v806_v11 = vadd.f32 %v796_v48, %v700_v5 }
  0xce   : > { %v703_v47 = vadd.f32 %v697_v55, %v594_v10  ;;  %v912_v58 = vadd.f32 %v902_v56, %v806_v11 }
  0xd3   : > { %v1011_v51 = vpop.f32.mrf.mxu2  ;;  %v798_v59 = vpop.f32.mrf.mxu0 }
  0xd4   : > { %v1117_v57 = vpop.f32.mrf.mxu3  ;;  %v904_v60 = vpop.f32.mrf.mxu1  ;;  %v1021_v17 = vadd.f32 %v1011_v51, %v912_v58  ;;  %v807_v19 = vadd.f32 %v798_v59, %v701_v54 }
  0xd6   : > { %v1127_v24 = vadd.f32 %v1117_v57, %v1021_v17  ;;  %v913_v25 = vadd.f32 %v904_v60, %v807_v19 }
  0xdb   : > { %v1013_v63 = vpop.f32.mrf.mxu2  ;;  %v801_v0 = vpop.f32.mrf.mxu0 }
  0xdc   : > { %v907_v1 = vpop.f32.mrf.mxu1  ;;  %v1119_v4 = vpop.f32.mrf.mxu3  ;;  %v808_v12 = vadd.f32 %v801_v0, %v702_v7  ;;  %v1022_v29 = vadd.f32 %v1013_v63, %v913_v25 }
  0xde   : > { %v914_v15 = vadd.f32 %v907_v1, %v808_v12  ;;  %v1128_v34 = vadd.f32 %v1119_v4, %v1022_v29 }
  0xe3   : > { %v1016_v13 = vpop.f32.mrf.mxu2  ;;  %v803_v14 = vpop.f32.mrf.mxu0 }
  0xe4   : > { %v909_v41 = vpop.f32.mrf.mxu1  ;;  %v1122_v16 = vpop.f32.mrf.mxu3  ;;  %v1023_v20 = vadd.f32 %v1016_v13, %v914_v15  ;;  %v809_v18 = vadd.f32 %v803_v14, %v703_v47 }
  0xe6   : > { %v1129_v27 = vadd.f32 %v1122_v16, %v1023_v20  ;;  %v915_v28 = vadd.f32 %v909_v41, %v809_v18 }
  0xeb   : > { %v1018_v21 = vpop.f32.mrf.mxu2  ;;  %v1223_v22 = vpop.f32.mrf.mxu0 }
  0xec   : > { %v1228_v23 = vpop.f32.mrf.mxu1  ;;  %v1024_v32 = vadd.f32 %v1018_v21, %v915_v28  ;;  %v1233_v33 = vadd.f32 %v1223_v22, %v1127_v24  ;;  %v1124_v31 = vpop.f32.mrf.mxu3 }
  0xed   : > { %v1235_v30 = vadd.f32 %v1228_v23, %v1129_v27 }
  0xee   : > { %v1130_v35 = vadd.f32 %v1124_v31, %v1024_v32  ;;  %v1241_v36 = vmul.f32 %v1953_v26, %v1233_v33 }
  0xef   : > { %v1243_v38 = vmul.f32 %v1953_v26, %v1235_v30 }
  0xf0   : > { %v1249_v44 = vadd.f32 %v1954_v37, %v1241_v36 }
  0xf1   : > { %v1251_v45 = vadd.f32 %v1954_v37, %v1243_v38 }
  0xf2   : > { %v1253_v53 = vmax.f32 %v1249_v44, 0.0 }
  0xf3   : > { %v1225_v39 = vpop.f32.mrf.mxu0  ;;  %v1255_v55 = vmax.f32 %v1251_v45, 0.0 }
  0xf4   : > { %v1230_v40 = vpop.f32.mrf.mxu1  ;;  %v1234_v42 = vadd.f32 %v1225_v39, %v1128_v34 }
  0xf5   : > { %v1236_v43 = vadd.f32 %v1230_v40, %v1130_v35 }
  0xf6   : > { %v1242_v46 = vmul.f32 %v1953_v26, %v1234_v42 }
  0xf7   : > { %v1244_v49 = vmul.f32 %v1953_v26, %v1236_v43 }
  0xf8   : > { %v1250_v50 = vadd.f32 %v1954_v37, %v1242_v46 }
  0xf9   : > { %v1252_v52 = vadd.f32 %v1954_v37, %v1244_v49 }
  0xfa   : > { %v1254_v48 = vmax.f32 %v1250_v50, 0.0 }
  0xfb   : > { %v1256_v56 = vmax.f32 %v1252_v52, 0.0 }
  0xfc   : > { %v1894_v51 = vpack.c.bf16 %v1254_v48, %v1253_v53 }
  0xfd   : > { %v1899_v57 = vpack.c.bf16 %v1256_v56, %v1255_v55 }
  0xfe   : > { %1895 = vst [vmem:[%s273_s22] sm:$0xff] %v1894_v51  }
  0xff   : > { %1901 = vst [vmem:[%s273_s22 + $0x8] sm:$0xff] %v1899_v57  }
 0x100 PF: > { %s16_s25 = sadd.s32 1, %s1993_s25   ;;  %s2436_s21 = smov %s1985_s23 }
 0x101   : > { %p13_p7 = scmp.ge.s32.totalorder %s16_s25, 6   ;;  %s2437_s22 = smov %s1989_s24 }
 0x102   : > { %s2438_s23 = smov %s2441_s26  ;;  %s2439_s24 = smov %s2445_s27 }
 0x103   :  { %15 = sbr.rel (!%p13_p7) target bundleno = 3 (0x3), region = 85 }

// kernel: network_block_forward.7
= control target key start
LH: loop header
LB: loop body
LE: loop exit
PB: predicated region body
PF: predicated region fallthrough
CT: control target
= control target key end

     0   :  { %s2219_s12 = smov 0   ;;  %s2221_s13 = smov 0   ;;  %s2639_s0 = inlined_call_operand.vmem [shape: bf16[2,10,10,128], index: 0, kind: input, shape index: {}]   ;;  %s2640_s1 = inlined_call_operand.vmem [shape: bf16[9,128,128], index: 1, kind: input, shape index: {}]   ;;  %s2641_s2 = inlined_call_operand.vmem [shape: f32[2,64,128], index: 2, kind: input, shape index: {}]   ;;  %s2642_s3 = inlined_call_operand.vmem [shape: f32[2,64,128], index: 3, kind: output, shape index: {}]  }
   0x1   :  { %s2223_s14 = smov 0   ;;  %s2225_s15 = smov 0  }
   0x2   :  { %s2227_s16 = smov 0  }
   0x3 LB: > { %s22_s17 = sadd.s32 1, %s2189_s14  ;;  %s25_s18 = sadd.s32 1, %s2193_s15  ;;  %s2197_s16 = sphi %s2227_s16, %s13_s16   ;;  %s2193_s15 = sphi %s2225_s15, %s2650_s15   ;;  %s2189_s14 = sphi %s2223_s14, %s2649_s14   ;;  %s2185_s13 = sphi %s2221_s13, %s2648_s13   ;;  %s2181_s12 = sphi %s2219_s12, %s2647_s12  }
   0x4   : > { %p23_p0 = scmp.ge.s32.totalorder %s22_s17, 2  ;;  %p1527_p1 = scmp.ge.s32.totalorder %s2197_s16, 1 }
   0x5   : > { %p168_p2 = scmp.lt.s32.totalorder %s2197_s16, 5 }
   0x6   : > { %s2652_s17 = smov (%p23_p0, %s22_s17), 0  ;;  %s2654_s18 = smov (!%p23_p0, %s25_s18), %s2193_s15 }
   0x7   : > { %p169_p3 = pnand %p1527_p1, %p168_p2  ;;  %p27_p4 = scmp.ge.s32.totalorder %s2654_s18, 2 }
   0x8   : > { %p205_p5 = scmp.lt.s32.totalorder (!%p169_p3), %s2185_s13, 1  ;;  %s2029_s9 = sshll.u32 (!%p169_p3), %s2181_s12, 5 }
   0x9   : > { %s2656_s18 = smov (%p27_p4, %s2654_s18), 0  ;;  %172 = sbr.rel (%p169_p3) target bundleno = 250 (0xfa), region = 32 }
   0xa   : > { %s1529_s7 = sshll.u32 (!%p169_p3), %s2181_s12, 2 }
   0xb   : > { %p213_p6 = scmp.lt.s32.totalorder (!%p169_p3), %s1529_s7, 7 }
   0xe   : > { %v2047_v0 = vld [vmem:[%s2640_s1 + $0x78] sm:$0xff]  ;;  %v2046_v4 = vld [vmem:[%s2640_s1 + $0x70] sm:$0xff]  ;;  %s2658_s13 = smov (!%p205_p5, %s2185_s13), 1  ;;  %v2045_v8 = vld [vmem:[%s2640_s1 + $0x68] sm:$0xff]  ;;  %vm258_vm0 = vsmask.f32 3328 }
   0xf   : > { %v2039_v1 = vld [vmem:[%s2640_s1 + $0x38] sm:$0xff]  ;;  %390 = vmatpush.bf16.msra.mxu0 %v2047_v0  ;;  %v2038_v5 = vld [vmem:[%s2640_s1 + $0x30] sm:$0xff]  ;;  %s2118_s8 = smul.u32 80, %s2658_s13  ;;  %v2037_v9 = vld [vmem:[%s2640_s1 + $0x28] sm:$0xff]  ;;  %vm259_vm1 = vsmask.f32 7440 }
  0x10   : > { %v2055_v2 = vld [vmem:[%s2640_s1 + $0xb8] sm:$0xff]  ;;  %469 = vmatpush.bf16.msra.mxu1 %v2039_v1  ;;  %v2054_v6 = vld [vmem:[%s2640_s1 + $0xb0] sm:$0xff]  ;;  %v2053_v10 = vld [vmem:[%s2640_s1 + $0xa8] sm:$0xff]  ;;  %vm500_vm2 = vcmask 1042432   ;;  %vm501_vm3 = vcmask 1046532   ;;  %s2660_s7 = smov (!%p213_p6, %s1529_s7), 7 }
  0x11   : > { %v2066_v3 = vld [vmem:[%s2640_s1 + $0xf8] sm:$0xff]  ;;  %592 = vmatpush.bf16.msra.mxu2 %v2055_v2  ;;  %v2065_v7 = vld [vmem:[%s2640_s1 + $0xf0] sm:$0xff]  ;;  %s209_s23 = scalar_lea.vmem %s2639_s0, %s2118_s8  ;;  %v2064_v11 = vld [vmem:[%s2640_s1 + $0xe8] sm:$0xff]  ;;  %s1530_s8 = sshll.u32 %s2658_s13, 3 }
  0x12   : > { %700 = vmatpush.bf16.msra.mxu3 %v2066_v3  ;;  %s2294_s28 = scalar_lea.vmem %s209_s23, %s2029_s9  ;;  %v2044_v12 = vld [vmem:[%s2640_s1 + $0x60] sm:$0xff]  ;;  %v2043_v25 = vld [vmem:[%s2640_s1 + $0x58] sm:$0xff]  ;;  %v2042_v39 = vld [vmem:[%s2640_s1 + $0x50] sm:$0xff]  ;;  %s216_s12 = sadd.s32 %s1530_s8, %s2660_s7 }
  0x13   : > { %391 = vmatpush.bf16.msra.mxu0 %v2046_v4  ;;  %v2036_v13 = vld [vmem:[%s2640_s1 + $0x20] sm:$0xff]  ;;  %v235_v17 = vld [vmem:[%s2294_s28 + $0x8] sm:$0xf]  ;;  %v255_v19 = vld [vmem:[%s2294_s28 + $0xc] sm:$0x1]  ;;  %s1531_s9 = sshll.u32 %s216_s12, 3 }
  0x14   : > { %470 = vmatpush.bf16.msra.mxu1 %v2038_v5  ;;  %v2052_v14 = vld [vmem:[%s2640_s1 + $0xa0] sm:$0xff]  ;;  %v276_v22 = vshrl.u32 %v235_v17, 16  ;;  %v279_v24 = vshll.u32 %v235_v17, 16  ;;  %v2035_v26 = vld [vmem:[%s2640_s1 + $0x18] sm:$0xff]  ;;  %v285_v30 = vshll.u32 %v255_v19, 16  ;;  %v2034_v40 = vld [vmem:[%s2640_s1 + $0x10] sm:$0xff]  ;;  %s218_s11 = scalar_lea.vmem %s2641_s2, %s1531_s9  ;;  %s228_s21 = scalar_lea.vmem %s2642_s3, %s1531_s9 }
  0x15   : > { %593 = vmatpush.bf16.msra.mxu2 %v2054_v6  ;;  %v2063_v15 = vld [vmem:[%s2640_s1 + $0xe0] sm:$0xff]  ;;  %v2051_v31 = vld [vmem:[%s2640_s1 + $0x98] sm:$0xff]  ;;  %v489_v36 = vld [vmem:[%s2294_s28 + $0x8] sm:$0xe]  ;;  %v509_v51 = vrot.slane %v255_v19, 5 }
  0x16   : > { %701 = vmatpush.bf16.msra.mxu3 %v2065_v7  ;;  %v234_v16 = vld [vmem:[%s2294_s28] sm:$0xf]  ;;  %v254_v18 = vld [vmem:[%s2294_s28 + $0x4] sm:$0x1]  ;;  %v278_v29 = vrot.slane %v276_v22, 4  ;;  %v2062_v32 = vld [vmem:[%s2640_s1 + $0xd8] sm:$0xff] }
  0x17   : > { %392 = vmatpush.bf16.msra.mxu0 %v2045_v8  ;;  %v262_v20 = vshrl.u32 %v234_v16, 16  ;;  %v265_v21 = vshll.u32 %v234_v16, 16  ;;  %v271_v23 = vshll.u32 %v254_v18, 16  ;;  %v281_v33 = vrot.slane %v279_v24, 5  ;;  %v488_v34 = vld [vmem:[%s2294_s28] sm:$0xe]  ;;  %vm2334_vm4 = vmor %vm258_vm0, %vm259_vm1 }
  0x18   : > { %471 = vmatpush.bf16.msra.mxu1 %v2037_v9  ;;  %v287_v43 = vrot.slane %v285_v30, 5  ;;  %v1626_v44 = vrot.slane %v488_v34, 9  ;;  %v505_v45 = vrot.slane %v254_v18, 5  ;;  %v2050_v46 = vld [vmem:[%s2640_s1 + $0x90] sm:$0xff]  ;;  %vm2346_vm5 = vmor %vm500_vm2, %vm501_vm3  ;;  %v1627_v50 = vrot.slane %v489_v36, 9  ;;  %v2041_v54 = vld [vmem:[%s2640_s1 + $0x48] sm:$0xff] }
  0x19   : > { %594 = vmatpush.bf16.msra.mxu2 %v2053_v10  ;;  %v264_v27 = vrot.slane %v262_v20, 4  ;;  %v267_v28 = vrot.slane %v265_v21, 5  ;;  %v273_v37 = vrot.slane %v271_v23, 5  ;;  %v282_v38 = vor.u32 %v281_v33, %v278_v29  ;;  %v2061_v47 = vld [vmem:[%s2640_s1 + $0xd0] sm:$0xff]  ;;  %v2033_v55 = vld [vmem:[%s2640_s1 + $0x8] sm:$0xff]  ;;  %v2040_v5 = vld [vmem:[%s2640_s1 + $0x40] sm:$0xff] }
  0x1a   : > { %702 = vmatpush.bf16.msra.mxu3 %v2064_v11  ;;  %v236_v53 = vld [vmem:[%s2294_s28 + $0x10] sm:$0xf]  ;;  %v506_v57 = vsel %vm2346_vm5, %v1626_v44, %v505_v45  ;;  %v237_v58 = vld [vmem:[%s2294_s28 + $0x18] sm:$0xf]  ;;  %v2049_v59 = vld [vmem:[%s2640_s1 + $0x88] sm:$0xff]  ;;  %v510_v61 = vsel %vm2346_vm5, %v1627_v50, %v509_v51 }
  0x1b   : > { %393 = vmatpush.bf16.msra.mxu0 %v2044_v12  ;;  %v268_v35 = vor.u32 %v267_v28, %v264_v27  ;;  %v283_v48 = vrot.slane %v282_v38, 4  ;;  %v2060_v60 = vld [vmem:[%s2640_s1 + $0xc8] sm:$0xff]  ;;  %v290_v62 = vshrl.u32 %v236_v53, 16  ;;  %v293_v63 = vshll.u32 %v236_v53, 16  ;;  %v2373_v2 = vld [vmem:[%s2294_s28 + $0x14] sm:$0x1] }
  0x1c   : > { %472 = vmatpush.bf16.msra.mxu1 %v2036_v13  ;;  %v304_v0 = vshrl.u32 %v237_v58, 16  ;;  %v2376_v3 = vld [vmem:[%s2294_s28 + $0x1c] sm:$0x1]  ;;  %v307_v4 = vshll.u32 %v237_v58, 16  ;;  %v2032_v6 = vld [vmem:[%s2640_s1] sm:$0xff]  ;;  %v537_v16 = vunpack.c.l.b16 %v510_v61  ;;  %v299_v20 = vshll.u32 %v2373_v2, 16 }
  0x1d   : > { %595 = vmatpush.bf16.msra.mxu2 %v2052_v14  ;;  %v269_v42 = vrot.slane %v268_v35, 4  ;;  %v288_v56 = vsel %vm2334_vm4, %v283_v48, %v287_v43  ;;  %v2048_v7 = vld [vmem:[%s2640_s1 + $0x80] sm:$0xff]  ;;  %v292_v9 = vrot.slane %v290_v62, 4  ;;  %v295_v10 = vrot.slane %v293_v63, 5  ;;  %v2030_v14 = vld [vmem:[%s2294_s28 + $0x4] sm:$0xf0] }
  0x1e   : > { %703 = vmatpush.bf16.msra.mxu3 %v2063_v15  ;;  %v335_v8 = vunpack.c.l.b16 %v288_v56  ;;  %v306_v11 = vrot.slane %v304_v0, 4  ;;  %v2059_v12 = vld [vmem:[%s2640_s1 + $0xc0] sm:$0xff]  ;;  %v536_v15 = vunpack.c.l.b16 %v506_v57  ;;  %v309_v17 = vrot.slane %v307_v4, 5  ;;  %v1702_v18 = vld [vmem:[%s2294_s28 + $0x8] sm:$0xf]  ;;  %v2074_v22 = vld [vmem:[%s2640_s1 + $0x138] sm:$0xff] }
  0x1f   : > { %394 = vmatpush.bf16.msra.mxu0 %v2043_v25  ;;  %v274_v52 = vsel %vm2334_vm4, %v269_v42, %v273_v37  ;;  %v1588_v13 = vld [vmem:[%s2294_s28] sm:$0xf]  ;;  %v2057_v19 = vld [vmem:[%s2294_s28 + $0xc] sm:$0xf0]  ;;  %v313_v21 = vshll.u32 %v2376_v3, 16  ;;  %v2082_v23 = vld [vmem:[%s2640_s1 + $0x178] sm:$0xff]  ;;  %v296_v24 = vor.u32 %v295_v10, %v292_v9 }
  0x20   : > { %473 = vmatpush.bf16.msra.mxu1 %v2035_v26  ;;  %v334_v1 = vunpack.c.l.b16 %v274_v52  ;;  %v310_v25 = vor.u32 %v309_v17, %v306_v11  ;;  %v490_v26 = vld [vmem:[%s2294_s28 + $0x10] sm:$0xe]  ;;  %v1589_v28 = vor.u32 %v2030_v14, %v1588_v13  ;;  %v491_v29 = vld [vmem:[%s2294_s28 + $0x18] sm:$0xe]  ;;  %v540_v30 = vpack.c.b16 %v537_v16, %v536_v15  ;;  %v1740_v45 = vld [vmem:[%s2294_s28 + $0x8] sm:$0xf] }
  0x21   : > { %596 = vmatpush.bf16.msra.mxu2 %v2051_v31  ;;  %v1703_v31 = vor.u32 %v2057_v19, %v1702_v18  ;;  %v2101_v33 = vld [vmem:[%s2640_s1 + $0x1f8] sm:$0xff]  ;;  %v301_v34 = vrot.slane %v299_v20, 5  ;;  %v315_v35 = vrot.slane %v313_v21, 5  ;;  %v1628_v36 = vrot.slane %v490_v26, 9  ;;  %v2073_v38 = vld [vmem:[%s2640_s1 + $0x130] sm:$0xff]  ;;  %v2072_v51 = vld [vmem:[%s2640_s1 + $0x128] sm:$0xff] }
  0x22   : > { %704 = vmatpush.bf16.msra.mxu3 %v2062_v32  ;;  %v338_v27 = vpack.c.b16 %v335_v8, %v334_v1  ;;  %v2093_v32 = vld [vmem:[%s2640_s1 + $0x1b8] sm:$0xff]  ;;  %v513_v37 = vrot.slane %v2373_v2, 5  ;;  %v311_v42 = vrot.slane %v310_v25, 4  ;;  %v1629_v43 = vrot.slane %v491_v29, 9  ;;  %v2100_v48 = vld [vmem:[%s2640_s1 + $0x1f0] sm:$0xff]  ;;  %v2080_v52 = vld [vmem:[%s2640_s1 + $0x168] sm:$0xff] }
  0x23   : > { %395 = vmatpush.bf16.msra.mxu0 %v2042_v39  ;;  %v2081_v39 = vld [vmem:[%s2640_s1 + $0x170] sm:$0xff]  ;;  %v517_v44 = vrot.slane %v2376_v3, 5  ;;  %v732_v56 = vshrl.u32 %v1740_v45, 16  ;;  %v735_v57 = vshll.u32 %v1740_v45, 16  ;;  %v2099_v61 = vld [vmem:[%s2640_s1 + $0x1e8] sm:$0xff]  ;;  %v2071_v63 = vld [vmem:[%s2640_s1 + $0x120] sm:$0xff] }
  0x24   : > { %474 = vmatpush.bf16.msra.mxu1 %v2034_v40  ;;  %v297_v40 = vrot.slane %v296_v24, 4  ;;  %v514_v50 = vsel %vm2346_vm5, %v1628_v36, %v513_v37  ;;  %v1914_v62 = vld [vmem:[%s2294_s28 + $0x10] sm:$0xf]  ;;  %v2079_v0 = vld [vmem:[%s2640_s1 + $0x160] sm:$0xff]  ;;  %v1916_v1 = vld [vmem:[%s2294_s28 + $0x18] sm:$0xf] }
  0x25   : > { %597 = vmatpush.bf16.msra.mxu2 %v2050_v46  ;;  %v1742_v46 = vld [vmem:[%s2294_s28 + $0x10] sm:$0xf]  ;;  %v1124_v2 = vshrl.u32 %v1914_v62, 16  ;;  %v1127_v3 = vshll.u32 %v1914_v62, 16  ;;  %v538_v8 = vunpack.c.l.b16 %v514_v50  ;;  %v2457_v10 = vld [vmem:[%s2294_s28 + $0xc] sm:$0x1] }
  0x26   : > { %705 = vmatpush.bf16.msra.mxu3 %v2061_v47  ;;  %v2092_v47 = vld [vmem:[%s2640_s1 + $0x1b0] sm:$0xff]  ;;  %v302_v53 = vsel %vm2334_vm4, %v297_v40, %v301_v34  ;;  %v746_v58 = vshrl.u32 %v1742_v46, 16  ;;  %v2090_v11 = vld [vmem:[%s2640_s1 + $0x1a0] sm:$0xff]  ;;  %v734_v14 = vrot.slane %v732_v56, 4  ;;  %v737_v15 = vrot.slane %v735_v57, 5  ;;  %v2070_v19 = vld [vmem:[%s2640_s1 + $0x118] sm:$0xff] }
  0x27   : > { %396 = vmatpush.bf16.msra.mxu0 %v2041_v54  ;;  %v316_v54 = vsel %vm2334_vm4, %v311_v42, %v315_v35  ;;  %v336_v4 = vunpack.c.l.b16 %v302_v53  ;;  %v2464_v13 = vld [vmem:[%s2294_s28 + $0x14] sm:$0x1]  ;;  %v2098_v18 = vld [vmem:[%s2640_s1 + $0x1e0] sm:$0xff]  ;;  %v1126_v20 = vrot.slane %v1124_v2, 4  ;;  %v1129_v21 = vrot.slane %v1127_v3, 5  ;;  %v2078_v25 = vld [vmem:[%s2640_s1 + $0x158] sm:$0xff] }
  0x28   : > { %475 = vmatpush.bf16.msra.mxu1 %v2033_v55  ;;  %v518_v55 = vsel %vm2346_vm5, %v1629_v43, %v517_v44  ;;  %v748_v16 = vrot.slane %v746_v58, 4  ;;  %v2058_v24 = vld [vmem:[%s2294_s28 + $0x1c] sm:$0xf0]  ;;  %v2477_v26 = vld [vmem:[%s2294_s28 + $0x14] sm:$0x1]  ;;  %v738_v34 = vor.u32 %v737_v15, %v734_v14  ;;  %v2089_v43 = vld [vmem:[%s2640_s1 + $0x198] sm:$0xff] }
  0x29   : > { %598 = vmatpush.bf16.msra.mxu2 %v2049_v59  ;;  %v749_v59 = vshll.u32 %v1742_v46, 16  ;;  %v539_v9 = vunpack.c.l.b16 %v518_v55  ;;  %v2482_v29 = vld [vmem:[%s2294_s28 + $0x1c] sm:$0x1]  ;;  %v1796_v36 = vld [vmem:[%s2294_s28 + $0x8] sm:$0xe]  ;;  %v1130_v40 = vor.u32 %v1129_v21, %v1126_v20  ;;  %v1133_v42 = vshll.u32 %v2477_v26, 16 }
  0x2a   : > { %706 = vmatpush.bf16.msra.mxu3 %v2060_v60  ;;  %v2091_v60 = vld [vmem:[%s2640_s1 + $0x1a8] sm:$0xff]  ;;  %v2097_v44 = vld [vmem:[%s2640_s1 + $0x1d8] sm:$0xff]  ;;  %v1147_v46 = vshll.u32 %v2482_v29, 16  ;;  %v897_v53 = vrot.slane %v2457_v10, 5  ;;  %v901_v57 = vrot.slane %v2464_v13, 5  ;;  %v2088_v58 = vld [vmem:[%s2640_s1 + $0x190] sm:$0xff] }
  0x2b   : > { %397 = vmatpush.bf16.msra.mxu0 %v2040_v5  ;;  %v337_v5 = vunpack.c.l.b16 %v316_v54  ;;  %v751_v17 = vrot.slane %v749_v59, 5  ;;  %v541_v37 = vpack.c.b16 %v539_v9, %v538_v8  ;;  %v739_v54 = vrot.slane %v738_v34, 4  ;;  %v2096_v62 = vld [vmem:[%s2640_s1 + $0x1d0] sm:$0xff]  ;;  %v1746_v2 = vld [vmem:[%s2294_s28 + $0x20] sm:$0xf]  ;;  %v2076_v3 = vld [vmem:[%s2640_s1 + $0x148] sm:$0xff] }
  0x2c   : > { %476 = vmatpush.bf16.msra.mxu1 %v2032_v6  ;;  %v1592_v6 = vld [vmem:[%s2294_s28 + $0x10] sm:$0xf]  ;;  %v1131_v59 = vrot.slane %v1130_v40, 4  ;;  %v777_v14 = vshll.u32 %v1746_v2, 16  ;;  %v2087_v15 = vld [vmem:[%s2640_s1 + $0x188] sm:$0xff]  ;;  %v2067_v21 = vld [vmem:[%s2640_s1 + $0x100] sm:$0xff] }
  0x2d   : > { %599 = vmatpush.bf16.msra.mxu2 %v2048_v7  ;;  %v2031_v7 = vld [vmem:[%s2294_s28 + $0x14] sm:$0xf0]  ;;  %v752_v35 = vor.u32 %v751_v17, %v748_v16  ;;  %v2095_v16 = vld [vmem:[%s2640_s1 + $0x1c8] sm:$0xff]  ;;  %v1745_v34 = vld [vmem:[%s2294_s28 + $0x1c] sm:$0x1] }
  0x2e   : > { %707 = vmatpush.bf16.msra.mxu3 %v2059_v12  ;;  %398 = vmatmul.bf16.vlgmr.msra.gmra.mxu0 %v338_v27  ;;  %v1706_v12 = vld [vmem:[%s2294_s28 + $0x18] sm:$0xf]  ;;  %v741_v27 = vshll.u32 %v2457_v10, 16 }
  0x2f   : > { %860 = vmatpush.bf16.msrb.mxu0 %v2074_v22  ;;  %477 = vmatmul.bf16.vlgmr.msra.gmra.mxu1 %v1589_v28  ;;  %v1138_v22 = vshrl.u32 %v1916_v1, 16  ;;  %v755_v28 = vshll.u32 %v2464_v13, 16  ;;  %v753_v55 = vrot.slane %v752_v35, 4  ;;  %v774_v13 = vshrl.u32 %v1746_v2, 16 }
  0x30   : > { %984 = vmatpush.bf16.msrb.mxu1 %v2082_v23  ;;  %600 = vmatmul.bf16.vlgmr.msra.gmra.mxu2 %v540_v30  ;;  %v1141_v23 = vshll.u32 %v1916_v1, 16  ;;  %v743_v50 = vrot.slane %v741_v27, 5  ;;  %v1149_v1 = vrot.slane %v1147_v46, 5  ;;  %v2086_v27 = vld [vmem:[%s2640_s1 + $0x180] sm:$0xff] }
  0x31   : > { %708 = vmatmul.bf16.vlgmr.msra.gmra.mxu3 %v1703_v31  ;;  %1092 = vmatpush.bf16.msrb.mxu2 %v2093_v32  ;;  %v1140_v30 = vrot.slane %v1138_v22, 4  ;;  %v339_v32 = vpack.c.b16 %v337_v5, %v336_v4  ;;  %v1918_v5 = vld [vmem:[%s2294_s28 + $0x20] sm:$0xf]  ;;  %v776_v40 = vrot.slane %v774_v13, 4 }
  0x32   : > { %1252 = vmatpush.bf16.msrb.mxu3 %v2101_v33  ;;  %v1143_v31 = vrot.slane %v1141_v23, 5  ;;  %v1593_v33 = vor.u32 %v2031_v7, %v1592_v6  ;;  %v1920_v6 = vld [vmem:[%s2294_s28 + $0x28] sm:$0xf]  ;;  %v744_v7 = vsel %vm2334_vm4, %v739_v54, %v743_v50  ;;  %v2075_v22 = vld [vmem:[%s2640_s1 + $0x140] sm:$0xff]  ;;  %v2559_v50 = vld [vmem:[%s2294_s28 + $0x2c] sm:$0x1] }
  0x33   : > { %861 = vmatpush.bf16.msrb.mxu0 %v2073_v38  ;;  %v1707_v38 = vor.u32 %v2058_v24, %v1706_v12  ;;  %v1166_v20 = vshrl.u32 %v1920_v6, 16 }
  0x34   : > { %985 = vmatpush.bf16.msrb.mxu1 %v2081_v39  ;;  %v1797_v39 = vld [vmem:[%s2294_s28 + $0x10] sm:$0xe]  ;;  %v1144_v45 = vor.u32 %v1143_v31, %v1140_v30 }
  0x35   : > { %1093 = vmatpush.bf16.msrb.mxu2 %v2092_v47  ;;  %v2069_v47 = vld [vmem:[%s2640_s1 + $0x110] sm:$0xff]  ;;  %v1801_v56 = vrot.slane %v1797_v39, 9  ;;  %v1168_v46 = vrot.slane %v1166_v20, 4 }
  0x36   : > { %1253 = vmatpush.bf16.msrb.mxu3 %v2100_v48  ;;  %v2077_v48 = vld [vmem:[%s2640_s1 + $0x150] sm:$0xff] }
  0x37   : > { %862 = vmatpush.bf16.msrb.mxu0 %v2072_v51  ;;  %v757_v51 = vrot.slane %v755_v28, 5  ;;  %v902_v9 = vsel %vm2346_vm5, %v1801_v56, %v901_v57  ;;  %v804_v28 = vunpack.c.l.b16 %v744_v7  ;;  %v1876_v31 = vld [vmem:[%s2294_s28 + $0x10] sm:$0xf] }
  0x38   : > { %986 = vmatpush.bf16.msrb.mxu1 %v2080_v52  ;;  %v1800_v52 = vrot.slane %v1796_v36, 9  ;;  %v929_v24 = vunpack.c.l.b16 %v902_v9  ;;  %v2094_v36 = vld [vmem:[%s2640_s1 + $0x1c0] sm:$0xff] }
  0x39   : > { %1094 = vmatpush.bf16.msrb.mxu2 %v2091_v60  ;;  %v1135_v60 = vrot.slane %v1133_v42, 5  ;;  %v758_v8 = vsel %vm2334_vm4, %v753_v55, %v757_v51  ;;  %v779_v42 = vrot.slane %v777_v14, 5 }
  0x3a   : > { %1254 = vmatpush.bf16.msrb.mxu3 %v2099_v61  ;;  %v1744_v61 = vld [vmem:[%s2294_s28 + $0x18] sm:$0xf]  ;;  %v898_v4 = vsel %vm2346_vm5, %v1800_v52, %v897_v53  ;;  %v805_v30 = vunpack.c.l.b16 %v758_v8  ;;  %v769_v53 = vshll.u32 %v1745_v34, 16 }
  0x3b   : > { %863 = vmatpush.bf16.msrb.mxu0 %v2071_v63  ;;  %v2068_v63 = vld [vmem:[%s2640_s1 + $0x108] sm:$0xff]  ;;  %v760_v10 = vshrl.u32 %v1744_v61, 16  ;;  %v763_v12 = vshll.u32 %v1744_v61, 16  ;;  %v928_v23 = vunpack.c.l.b16 %v898_v4  ;;  %v1799_v61 = vld [vmem:[%s2294_s28 + $0x20] sm:$0xe] }
  0x3c   : > { %987 = vmatpush.bf16.msrb.mxu1 %v2079_v0  ;;  %v1145_v0 = vrot.slane %v1144_v45, 4  ;;  %v808_v51 = vpack.c.b16 %v805_v30, %v804_v28  ;;  %v771_v2 = vrot.slane %v769_v53, 5  ;;  %v1803_v8 = vrot.slane %v1799_v61, 9  ;;  %v1880_v30 = vld [vmem:[%s2294_s28 + $0x20] sm:$0xf] }
  0x3d   : > { %1095 = vmatpush.bf16.msrb.mxu2 %v2090_v11  ;;  %v1136_v11 = vsel %vm2334_vm4, %v1131_v59, %v1135_v60  ;;  %v762_v35 = vrot.slane %v760_v10, 4  ;;  %v765_v39 = vrot.slane %v763_v12, 5  ;;  %v932_v52 = vpack.c.b16 %v929_v24, %v928_v23  ;;  %v1798_v59 = vld [vmem:[%s2294_s28 + $0x18] sm:$0xe]  ;;  %v2108_v60 = vld [vmem:[%s2640_s1 + $0x230] sm:$0xff]  ;;  %v2107_v10 = vld [vmem:[%s2640_s1 + $0x228] sm:$0xff] }
  0x3e   : > { %1255 = vmatpush.bf16.msrb.mxu3 %v2098_v18  ;;  %403 = vmatmul.bf16.gmra.mxu0 %v339_v32  ;;  %v1150_v17 = vsel %vm2334_vm4, %v1145_v0, %v1149_v1  ;;  %v1152_v18 = vshrl.u32 %v1918_v5, 16  ;;  %v1196_v32 = vunpack.c.l.b16 %v1136_v11  ;;  %v1175_v1 = vshll.u32 %v2559_v50, 16 }
  0x3f   : > { %864 = vmatpush.bf16.msrb.mxu0 %v2070_v19  ;;  %482 = vmatmul.bf16.gmra.mxu1 %v1593_v33  ;;  %v1155_v19 = vshll.u32 %v1918_v5, 16  ;;  %v2109_v33 = vld [vmem:[%s2640_s1 + $0x238] sm:$0xff]  ;;  %v766_v57 = vor.u32 %v765_v39, %v762_v35  ;;  %v1802_v4 = vrot.slane %v1798_v59, 9  ;;  %v905_v5 = vrot.slane %v1745_v34, 5  ;;  %v1972_v39 = vld [vmem:[%s2294_s28 + $0x20] sm:$0xe] }
  0x40   : > { %988 = vmatpush.bf16.msrb.mxu1 %v2078_v25  ;;  %605 = vmatmul.bf16.gmra.mxu2 %v541_v37  ;;  %v1169_v25 = vshll.u32 %v1920_v6, 16  ;;  %v1197_v37 = vunpack.c.l.b16 %v1150_v17  ;;  %v1177_v14 = vrot.slane %v1175_v1, 5 }
  0x41   : > { %713 = vmatmul.bf16.gmra.mxu3 %v1707_v38  ;;  %1096 = vmatpush.bf16.msrb.mxu2 %v2089_v43  ;;  %v1747_v38 = vld [vmem:[%s2294_s28 + $0x24] sm:$0x1]  ;;  %v2084_v43 = vld [vmem:[%s2294_s28 + $0x14] sm:$0xf0]  ;;  %v1157_v45 = vrot.slane %v1155_v19, 5  ;;  %v767_v6 = vrot.slane %v766_v57, 4  ;;  %v906_v17 = vsel %vm2346_vm5, %v1802_v4, %v905_v5 }
  0x42   : > { %1256 = vmatpush.bf16.msrb.mxu3 %v2097_v44  ;;  %v1154_v44 = vrot.slane %v1152_v18, 4  ;;  %v783_v54 = vshll.u32 %v1747_v38, 16  ;;  %v1877_v55 = vor.u32 %v2084_v43, %v1876_v31  ;;  %v1200_v56 = vpack.c.b16 %v1197_v37, %v1196_v32  ;;  %v2106_v19 = vld [vmem:[%s2640_s1 + $0x220] sm:$0xff]  ;;  %v2085_v31 = vld [vmem:[%s2294_s28 + $0x24] sm:$0xf0]  ;;  %v2105_v32 = vld [vmem:[%s2640_s1 + $0x218] sm:$0xff] }
  0x43   : > { %865 = vmatpush.bf16.msrb.mxu0 %v2069_v47  ;;  %v1171_v47 = vrot.slane %v1169_v25, 5  ;;  %v909_v9 = vrot.slane %v1747_v38, 5  ;;  %v930_v24 = vunpack.c.l.b16 %v906_v17  ;;  %v1881_v34 = vor.u32 %v2085_v31, %v1880_v30  ;;  %v1970_v37 = vld [vmem:[%s2294_s28 + $0x10] sm:$0xe]  ;;  %v1971_v38 = vld [vmem:[%s2294_s28 + $0x18] sm:$0xe] }
  0x44   : > { %989 = vmatpush.bf16.msrb.mxu1 %v2077_v48  ;;  %v2556_v48 = vld [vmem:[%s2294_s28 + $0x24] sm:$0x1]  ;;  %v1293_v43 = vrot.slane %v2482_v29, 5 }
  0x45   : > { %1097 = vmatpush.bf16.msrb.mxu2 %v2088_v58  ;;  %v780_v58 = vor.u32 %v779_v42, %v776_v40  ;;  %v1172_v0 = vor.u32 %v1171_v47, %v1168_v46  ;;  %v910_v18 = vsel %vm2346_vm5, %v1803_v8, %v909_v9  ;;  %v1973_v40 = vld [vmem:[%s2294_s28 + $0x28] sm:$0xe]  ;;  %v1289_v42 = vrot.slane %v2477_v26, 5 }
  0x46   : > { %1257 = vmatpush.bf16.msrb.mxu3 %v2096_v62  ;;  %v1158_v62 = vor.u32 %v1157_v45, %v1154_v44  ;;  %v931_v25 = vunpack.c.l.b16 %v910_v18  ;;  %v1297_v44 = vrot.slane %v2556_v48, 5  ;;  %v1301_v45 = vrot.slane %v2559_v50, 5  ;;  %v2103_v26 = vld [vmem:[%s2640_s1 + $0x208] sm:$0xff] }
  0x47   : > { %866 = vmatpush.bf16.msrb.mxu0 %v2068_v63  ;;  %v1161_v63 = vshll.u32 %v2556_v48, 16  ;;  %v781_v7 = vrot.slane %v780_v58, 4  ;;  %v1173_v13 = vrot.slane %v1172_v0, 4  ;;  %v1974_v46 = vrot.slane %v1970_v37, 9 }
  0x48   : > { %990 = vmatpush.bf16.msrb.mxu1 %v2076_v3  ;;  %v785_v3 = vrot.slane %v783_v54, 5  ;;  %v1159_v11 = vrot.slane %v1158_v62, 4  ;;  %v1975_v47 = vrot.slane %v1971_v38, 9  ;;  %v2102_v54 = vld [vmem:[%s2640_s1 + $0x200] sm:$0xff] }
  0x49   : > { %1098 = vmatpush.bf16.msrb.mxu2 %v2087_v15  ;;  %v1163_v12 = vrot.slane %v1161_v63, 5  ;;  %v772_v15 = vsel %vm2334_vm4, %v767_v6, %v771_v2  ;;  %v1290_v29 = vsel %vm2346_vm5, %v1974_v46, %v1289_v42 }
  0x4a   : > { %1258 = vmatpush.bf16.msrb.mxu3 %v2095_v16  ;;  %v786_v16 = vsel %vm2334_vm4, %v781_v7, %v785_v3  ;;  %v1294_v48 = vsel %vm2346_vm5, %v1975_v47, %v1293_v43 }
  0x4b   : > { %867 = vmatpush.bf16.msrb.mxu0 %v2067_v21  ;;  %v1164_v20 = vsel %vm2334_vm4, %v1159_v11, %v1163_v12  ;;  %v1178_v21 = vsel %vm2334_vm4, %v1173_v13, %v1177_v14  ;;  %v807_v23 = vunpack.c.l.b16 %v786_v16 }
  0x4c   : > { %991 = vmatpush.bf16.msrb.mxu1 %v2075_v22  ;;  %v806_v22 = vunpack.c.l.b16 %v772_v15  ;;  %v1199_v28 = vunpack.c.l.b16 %v1178_v21 }
  0x4d   : > { %1099 = vmatpush.bf16.msrb.mxu2 %v2086_v27  ;;  %v1198_v27 = vunpack.c.l.b16 %v1164_v20 }
  0x4e   : > { %1259 = vmatpush.bf16.msrb.mxu3 %v2094_v36  ;;  %868 = vmatmul.bf16.vlgmr.msrb.gmra.mxu0 %v808_v51  ;;  %v809_v41 = vpack.c.b16 %v807_v23, %v806_v22  ;;  %v2104_v36 = vld [vmem:[%s2640_s1 + $0x210] sm:$0xff]  ;;  %v1976_v51 = vrot.slane %v1972_v39, 9 }
  0x4f   : > { %1376 = vmatpush.bf16.msra.mxu0 %v2109_v33  ;;  %992 = vmatmul.bf16.vlgmr.msrb.gmra.mxu1 %v932_v52  ;;  %v1201_v35 = vpack.c.b16 %v1199_v28, %v1198_v27  ;;  %v1977_v52 = vrot.slane %v1973_v40, 9 }
  0x50   : > { %2110 = vmatpush.bf16.msra.mxu1 %v2109_v33  ;;  %1100 = vmatmul.bf16.vlgmr.msrb.gmra.mxu2 %v1877_v55  ;;  %v933_v33 = vpack.c.b16 %v931_v25, %v930_v24  ;;  %v1298_v50 = vsel %vm2346_vm5, %v1976_v51, %v1297_v44  ;;  %v1320_v55 = vunpack.c.l.b16 %v1290_v29 }
  0x51   : > { %1260 = vmatmul.bf16.vlgmr.msrb.gmra.mxu3 %v1200_v56  ;;  %v1302_v53 = vsel %vm2346_vm5, %v1977_v52, %v1301_v45  ;;  %v1321_v56 = vunpack.c.l.b16 %v1294_v48  ;;  %v1322_v57 = vunpack.c.l.b16 %v1298_v50  ;;  %v1399_v48 = vld [vmem:[%s218_s11] sm:$0xff] }
  0x52   : > { %v1323_v58 = vunpack.c.l.b16 %v1302_v53  ;;  %v1401_v53 = vld [vmem:[%s218_s11 + $0x10] sm:$0xff] }
  0x53   : > { %1377 = vmatpush.bf16.msra.mxu0 %v2108_v60  ;;  %v1324_v59 = vpack.c.b16 %v1321_v56, %v1320_v55 }
  0x54   : > { %2111 = vmatpush.bf16.msra.mxu1 %v2108_v60  ;;  %v1325_v60 = vpack.c.b16 %v1323_v58, %v1322_v57 }
  0x57   : > { %1378 = vmatpush.bf16.msra.mxu0 %v2107_v10 }
  0x58   : > { %2112 = vmatpush.bf16.msra.mxu1 %v2107_v10 }
  0x5b   : > { %1379 = vmatpush.bf16.msra.mxu0 %v2106_v19 }
  0x5c   : > { %2113 = vmatpush.bf16.msra.mxu1 %v2106_v19 }
  0x5e   : > { %873 = vmatmul.bf16.gmra.mxu0 %v809_v41 }
  0x5f   : > { %1380 = vmatpush.bf16.msra.mxu0 %v2105_v32  ;;  %997 = vmatmul.bf16.gmra.mxu1 %v933_v33 }
  0x60   : > { %2114 = vmatpush.bf16.msra.mxu1 %v2105_v32  ;;  %1105 = vmatmul.bf16.gmra.mxu2 %v1881_v34 }
  0x61   : > { %1265 = vmatmul.bf16.gmra.mxu3 %v1201_v35 }
  0x63   : > { %1381 = vmatpush.bf16.msra.mxu0 %v2104_v36 }
  0x64   : > { %2115 = vmatpush.bf16.msra.mxu1 %v2104_v36 }
  0x67   : > { %1382 = vmatpush.bf16.msra.mxu0 %v2103_v26 }
  0x68   : > { %2116 = vmatpush.bf16.msra.mxu1 %v2103_v26 }
  0x6b   : > { %1383 = vmatpush.bf16.msra.mxu0 %v2102_v54 }
  0x6c   : > { %2117 = vmatpush.bf16.msra.mxu1 %v2102_v54 }
  0x6e   : > { %1384 = vmatmul.bf16.vlgmr.msra.gmra.mxu0 %v1324_v59 }
  0x6f   : > { %1389 = vmatmul.bf16.vlgmr.msra.gmra.mxu1 %v1325_v60 }
  0xab   : > { %v399_v61 = vpop.f32.mrf.mxu0 }
  0xac   : > { %v478_v62 = vpop.f32.mrf.mxu1 }
  0xad   : > { %v479_v18 = vadd.f32 %v478_v62, %v399_v61 }
  0xb3   : > { %v601_v49 = vpop.f32.mrf.mxu2  ;;  %v401_v0 = vpop.f32.mrf.mxu0 }
  0xb4   : > { %v709_v63 = vpop.f32.mrf.mxu3  ;;  %v480_v1 = vpop.f32.mrf.mxu1  ;;  %v611_v20 = vadd.f32 %v601_v49, %v479_v18 }
  0xb5   : > { %v481_v30 = vadd.f32 %v480_v1, %v401_v0  ;;  %v1400_v1 = vld [vmem:[%s218_s11 + $0x8] sm:$0xff] }
  0xb6   : > { %v719_v27 = vadd.f32 %v709_v63, %v611_v20 }
  0xbb   : > { %v603_v2 = vpop.f32.mrf.mxu2  ;;  %v404_v4 = vpop.f32.mrf.mxu0 }
  0xbc   : > { %v711_v3 = vpop.f32.mrf.mxu3  ;;  %v483_v5 = vpop.f32.mrf.mxu1  ;;  %v612_v33 = vadd.f32 %v603_v2, %v481_v30 }
  0xbd   : > { %v484_v19 = vadd.f32 %v483_v5, %v404_v4 }
  0xbe   : > { %v720_v40 = vadd.f32 %v711_v3, %v612_v33  ;;  %v1402_v3 = vld [vmem:[%s218_s11 + $0x18] sm:$0xff] }
  0xc3   : > { %v606_v6 = vpop.f32.mrf.mxu2  ;;  %v406_v8 = vpop.f32.mrf.mxu0 }
  0xc4   : > { %v714_v7 = vpop.f32.mrf.mxu3  ;;  %v485_v9 = vpop.f32.mrf.mxu1  ;;  %v613_v21 = vadd.f32 %v606_v6, %v484_v19 }
  0xc5   : > { %v486_v31 = vadd.f32 %v485_v9, %v406_v8 }
  0xc6   : > { %v721_v28 = vadd.f32 %v714_v7, %v613_v21 }
  0xcb   : > { %v608_v10 = vpop.f32.mrf.mxu2  ;;  %v869_v12 = vpop.f32.mrf.mxu0 }
  0xcc   : > { %v716_v11 = vpop.f32.mrf.mxu3  ;;  %v993_v13 = vpop.f32.mrf.mxu1  ;;  %v879_v32 = vadd.f32 %v869_v12, %v719_v27  ;;  %v614_v34 = vadd.f32 %v608_v10, %v486_v31 }
  0xce   : > { %v1003_v38 = vadd.f32 %v993_v13, %v879_v32  ;;  %v722_v42 = vadd.f32 %v716_v11, %v614_v34 }
  0xd3   : > { %v1101_v14 = vpop.f32.mrf.mxu2  ;;  %v871_v16 = vpop.f32.mrf.mxu0 }
  0xd4   : > { %v1261_v15 = vpop.f32.mrf.mxu3  ;;  %v995_v17 = vpop.f32.mrf.mxu1  ;;  %v1111_v43 = vadd.f32 %v1101_v14, %v1003_v38  ;;  %v880_v46 = vadd.f32 %v871_v16, %v720_v40 }
  0xd6   : > { %v1271_v51 = vadd.f32 %v1261_v15, %v1111_v43  ;;  %v1004_v54 = vadd.f32 %v995_v17, %v880_v46 }
  0xdb   : > { %v1103_v22 = vpop.f32.mrf.mxu2  ;;  %v874_v23 = vpop.f32.mrf.mxu0 }
  0xdc   : > { %v998_v24 = vpop.f32.mrf.mxu1  ;;  %v1263_v25 = vpop.f32.mrf.mxu3  ;;  %v881_v41 = vadd.f32 %v874_v23, %v721_v28  ;;  %v1112_v58 = vadd.f32 %v1103_v22, %v1004_v54 }
  0xde   : > { %v1005_v39 = vadd.f32 %v998_v24, %v881_v41  ;;  %v1272_v49 = vadd.f32 %v1263_v25, %v1112_v58 }
  0xe3   : > { %v1106_v35 = vpop.f32.mrf.mxu2  ;;  %v876_v36 = vpop.f32.mrf.mxu0 }
  0xe4   : > { %v1000_v37 = vpop.f32.mrf.mxu1  ;;  %v1113_v44 = vadd.f32 %v1106_v35, %v1005_v39  ;;  %v1266_v45 = vpop.f32.mrf.mxu3  ;;  %v882_v47 = vadd.f32 %v876_v36, %v722_v42 }
  0xe6   : > { %v1273_v52 = vadd.f32 %v1266_v45, %v1113_v44  ;;  %v1006_v55 = vadd.f32 %v1000_v37, %v882_v47 }
  0xeb   : > { %v1108_v26 = vpop.f32.mrf.mxu2  ;;  %v1385_v29 = vpop.f32.mrf.mxu0 }
  0xec   : > { %v1390_v50 = vpop.f32.mrf.mxu1  ;;  %v1395_v56 = vadd.f32 %v1385_v29, %v1271_v51  ;;  %v1114_v59 = vadd.f32 %v1108_v26, %v1006_v55  ;;  %v1268_v62 = vpop.f32.mrf.mxu3 }
  0xed   : > { %v1397_v57 = vadd.f32 %v1390_v50, %v1273_v52 }
  0xee   : > { %v1403_v60 = vadd.f32 %v1399_v48, %v1395_v56  ;;  %v1274_v63 = vadd.f32 %v1268_v62, %v1114_v59 }
  0xef   : > { %v1405_v61 = vadd.f32 %v1401_v53, %v1397_v57 }
  0xf0   : > { %1407 = vst [vmem:[%s228_s21] sm:$0xff] %v1403_v60 }
  0xf1   : > { %1409 = vst [vmem:[%s228_s21 + $0x10] sm:$0xff] %v1405_v61 }
  0xf3   : > { %v1387_v0 = vpop.f32.mrf.mxu0 }
  0xf4   : > { %v1392_v2 = vpop.f32.mrf.mxu1  ;;  %v1396_v4 = vadd.f32 %v1387_v0, %v1272_v49 }
  0xf5   : > { %v1398_v5 = vadd.f32 %v1392_v2, %v1274_v63 }
  0xf6   : > { %v1404_v6 = vadd.f32 %v1400_v1, %v1396_v4 }
  0xf7   : > { %v1406_v7 = vadd.f32 %v1402_v3, %v1398_v5 }
  0xf8   : > { %1408 = vst [vmem:[%s228_s21 + $0x8] sm:$0xff] %v1404_v6 }
  0xf9   : > { %1410 = vst [vmem:[%s228_s21 + $0x18] sm:$0xff] %v1406_v7 }
  0xfa PF: > { %s13_s16 = sadd.s32 1, %s2197_s16   ;;  %s2647_s12 = smov %s2189_s14 }
  0xfb   : > { %p10_p7 = scmp.ge.s32.totalorder %s13_s16, 6   ;;  %s2648_s13 = smov %s2193_s15 }
  0xfc   : > { %s2649_s14 = smov %s2652_s17  ;;  %s2650_s15 = smov %s2656_s18 }
  0xfd   :  { %12 = sbr.rel (!%p10_p7) target bundleno = 3 (0x3), region = 76 }

// kernel: network_block_forward.5
= control target key start
LH: loop header
LB: loop body
LE: loop exit
PB: predicated region body
PF: predicated region fallthrough
CT: control target
= control target key end

     0   :  { %s2357_s21 = smov 0   ;;  %s2359_s22 = smov 0   ;;  %s2803_s0 = inlined_call_operand.vmem [shape: bf16[2,10,10,128], index: 0, kind: input, shape index: {}]   ;;  %s2804_s1 = inlined_call_operand.vmem [shape: bf16[9,128,128], index: 1, kind: input, shape index: {}]   ;;  %s2805_s2 = inlined_call_operand.vmem [shape: f32[2,9,9,4], index: 2, kind: input, shape index: {}]   ;;  %s2806_s3 = inlined_call_operand.vmem [shape: f32[1,4], index: 3, kind: input, shape index: {}]   ;;  %s2807_s4 = inlined_call_operand.vmem [shape: f32[1,4], index: 4, kind: input, shape index: {}]   ;;  %s2808_s5 = inlined_call_operand.vmem [shape: bf16[4,128], index: 5, kind: input, shape index: {}]   ;;  %s2809_s6 = inlined_call_operand.vmem [shape: f32[2,64,128], index: 6, kind: output, shape index: {}]  }
   0x1   :  { %s2361_s23 = smov 0   ;;  %s2363_s24 = smov 0  }
   0x2   :  { %s2365_s25 = smov 0  }
   0x3 LB: > { %s25_s26 = sadd.s32 1, %s2312_s23  ;;  %s28_s27 = sadd.s32 1, %s2316_s24  ;;  %s2320_s25 = sphi %s2365_s25, %s16_s25   ;;  %s2316_s24 = sphi %s2363_s24, %s2817_s24   ;;  %s2312_s23 = sphi %s2361_s23, %s2816_s23   ;;  %s2308_s22 = sphi %s2359_s22, %s2815_s22   ;;  %s2304_s21 = sphi %s2357_s21, %s2814_s21  }
   0x4   : > { %p26_p0 = scmp.ge.s32.totalorder %s25_s26, 2  ;;  %p1644_p1 = scmp.ge.s32.totalorder %s2320_s25, 1 }
   0x5   : > { %p236_p2 = scmp.lt.s32.totalorder %s2320_s25, 5 }
   0x6   : > { %s2819_s26 = smov (%p26_p0, %s25_s26), 0  ;;  %s2821_s27 = smov (!%p26_p0, %s28_s27), %s2316_s24 }
   0x7   : > { %p237_p3 = pnand %p1644_p1, %p236_p2  ;;  %p30_p4 = scmp.ge.s32.totalorder %s2821_s27, 2 }
   0x8   : > { %p275_p5 = scmp.lt.s32.totalorder (!%p237_p3), %s2308_s22, 1  ;;  %s2147_s28 = sshll.u32 (!%p237_p3), %s2304_s21, 5 }
   0x9   : > { %s2823_s27 = smov (%p30_p4, %s2821_s27), 0  ;;  %240 = sbr.rel (%p237_p3) target bundleno = 257 (0x101), region = 44 }
   0xe   : > { %v2165_v0 = vld [vmem:[%s2804_s1 + $0x78] sm:$0xff]  ;;  %v2164_v4 = vld [vmem:[%s2804_s1 + $0x70] sm:$0xff]  ;;  %s2825_s22 = smov (!%p275_p5, %s2308_s22), 1  ;;  %v2163_v8 = vld [vmem:[%s2804_s1 + $0x68] sm:$0xff]  ;;  %vm324_vm0 = vsmask.f32 3328 }
   0xf   : > { %v2157_v1 = vld [vmem:[%s2804_s1 + $0x38] sm:$0xff]  ;;  %456 = vmatpush.bf16.msra.mxu0 %v2165_v0  ;;  %v2156_v5 = vld [vmem:[%s2804_s1 + $0x30] sm:$0xff]  ;;  %s2238_s20 = smul.u32 80, %s2825_s22  ;;  %v2155_v9 = vld [vmem:[%s2804_s1 + $0x28] sm:$0xff]  ;;  %vm325_vm1 = vsmask.f32 7440 }
  0x10   : > { %v2173_v2 = vld [vmem:[%s2804_s1 + $0xb8] sm:$0xff]  ;;  %535 = vmatpush.bf16.msra.mxu1 %v2157_v1  ;;  %v2172_v6 = vld [vmem:[%s2804_s1 + $0xb0] sm:$0xff]  ;;  %v2171_v10 = vld [vmem:[%s2804_s1 + $0xa8] sm:$0xff]  ;;  %vm566_vm2 = vcmask 1042432   ;;  %vm567_vm3 = vcmask 1046532   ;;  %vm1501_vm6 = vcmask 1041408  }
  0x11   : > { %v2184_v3 = vld [vmem:[%s2804_s1 + $0xf8] sm:$0xff]  ;;  %658 = vmatpush.bf16.msra.mxu2 %v2173_v2  ;;  %v2183_v7 = vld [vmem:[%s2804_s1 + $0xf0] sm:$0xff]  ;;  %s279_s11 = scalar_lea.vmem %s2803_s0, %s2238_s20  ;;  %v2182_v11 = vld [vmem:[%s2804_s1 + $0xe8] sm:$0xff]  ;;  %s2239_s17 = smul.u32 144, %s2825_s22  ;;  %vm1494_vm7 = vcmask 31744  }
  0x12   : > { %766 = vmatpush.bf16.msra.mxu3 %v2184_v3  ;;  %s2432_s16 = scalar_lea.vmem %s279_s11, %s2147_s28  ;;  %v2162_v12 = vld [vmem:[%s2804_s1 + $0x60] sm:$0xff]  ;;  %v2161_v25 = vld [vmem:[%s2804_s1 + $0x58] sm:$0xff]  ;;  %v2160_v39 = vld [vmem:[%s2804_s1 + $0x50] sm:$0xff]  ;;  %s2228_s28 = sshll.u32 %s2304_s21, 6 }
  0x13   : > { %457 = vmatpush.bf16.msra.mxu0 %v2164_v4  ;;  %v2154_v13 = vld [vmem:[%s2804_s1 + $0x20] sm:$0xff]  ;;  %v301_v17 = vld [vmem:[%s2432_s16 + $0x8] sm:$0xf]  ;;  %v321_v19 = vld [vmem:[%s2432_s16 + $0xc] sm:$0x1]  ;;  %s284_s30 = scalar_lea.vmem %s2805_s2, %s2239_s17  ;;  %s1647_s20 = sshll.u32 %s2304_s21, 2 }
  0x14   : > { %536 = vmatpush.bf16.msra.mxu1 %v2156_v5  ;;  %v2170_v14 = vld [vmem:[%s2804_s1 + $0xa0] sm:$0xff]  ;;  %v342_v22 = vshrl.u32 %v301_v17, 16  ;;  %v345_v24 = vshll.u32 %v301_v17, 16  ;;  %v2153_v26 = vld [vmem:[%s2804_s1 + $0x18] sm:$0xff]  ;;  %v351_v30 = vshll.u32 %v321_v19, 16  ;;  %v2152_v40 = vld [vmem:[%s2804_s1 + $0x10] sm:$0xff]  ;;  %s1466_s9 = scalar_lea.vmem %s284_s30, %s2228_s28 }
  0x15   : > { %659 = vmatpush.bf16.msra.mxu2 %v2172_v6  ;;  %v2181_v15 = vld [vmem:[%s2804_s1 + $0xe0] sm:$0xff]  ;;  %v2169_v31 = vld [vmem:[%s2804_s1 + $0x98] sm:$0xff]  ;;  %v555_v36 = vld [vmem:[%s2432_s16 + $0x8] sm:$0xe]  ;;  %v575_v51 = vrot.slane %v321_v19, 5  ;;  %p288_p6 = scmp.lt.s32.totalorder %s1647_s20, 7 }
  0x16   : > { %767 = vmatpush.bf16.msra.mxu3 %v2183_v7  ;;  %v300_v16 = vld [vmem:[%s2432_s16] sm:$0xf]  ;;  %v320_v18 = vld [vmem:[%s2432_s16 + $0x4] sm:$0x1]  ;;  %v344_v29 = vrot.slane %v342_v22, 4  ;;  %v2180_v32 = vld [vmem:[%s2804_s1 + $0xd8] sm:$0xff] }
  0x17   : > { %458 = vmatpush.bf16.msra.mxu0 %v2163_v8  ;;  %v328_v20 = vshrl.u32 %v300_v16, 16  ;;  %v331_v21 = vshll.u32 %v300_v16, 16  ;;  %v337_v23 = vshll.u32 %v320_v18, 16  ;;  %v347_v33 = vrot.slane %v345_v24, 5  ;;  %v554_v34 = vld [vmem:[%s2432_s16] sm:$0xe]  ;;  %vm2472_vm4 = vmor %vm324_vm0, %vm325_vm1 }
  0x18   : > { %537 = vmatpush.bf16.msra.mxu1 %v2155_v9  ;;  %v353_v43 = vrot.slane %v351_v30, 5  ;;  %v1741_v44 = vrot.slane %v554_v34, 9  ;;  %v571_v45 = vrot.slane %v320_v18, 5  ;;  %v2168_v46 = vld [vmem:[%s2804_s1 + $0x90] sm:$0xff]  ;;  %vm2484_vm5 = vmor %vm566_vm2, %vm567_vm3  ;;  %v1742_v50 = vrot.slane %v555_v36, 9  ;;  %v2159_v54 = vld [vmem:[%s2804_s1 + $0x48] sm:$0xff] }
  0x19   : > { %660 = vmatpush.bf16.msra.mxu2 %v2171_v10  ;;  %v330_v27 = vrot.slane %v328_v20, 4  ;;  %v333_v28 = vrot.slane %v331_v21, 5  ;;  %v339_v37 = vrot.slane %v337_v23, 5  ;;  %v348_v38 = vor.u32 %v347_v33, %v344_v29  ;;  %v2179_v47 = vld [vmem:[%s2804_s1 + $0xd0] sm:$0xff]  ;;  %v2151_v55 = vld [vmem:[%s2804_s1 + $0x8] sm:$0xff]  ;;  %v2158_v5 = vld [vmem:[%s2804_s1 + $0x40] sm:$0xff] }
  0x1a   : > { %768 = vmatpush.bf16.msra.mxu3 %v2182_v11  ;;  %v302_v53 = vld [vmem:[%s2432_s16 + $0x10] sm:$0xf]  ;;  %v572_v57 = vsel %vm2484_vm5, %v1741_v44, %v571_v45  ;;  %v303_v58 = vld [vmem:[%s2432_s16 + $0x18] sm:$0xf]  ;;  %v2167_v59 = vld [vmem:[%s2804_s1 + $0x88] sm:$0xff]  ;;  %v576_v61 = vsel %vm2484_vm5, %v1742_v50, %v575_v51  ;;  %s2827_s20 = smov (!%p288_p6, %s1647_s20), 7 }
  0x1b   : > { %459 = vmatpush.bf16.msra.mxu0 %v2162_v12  ;;  %v334_v35 = vor.u32 %v333_v28, %v330_v27  ;;  %v349_v48 = vrot.slane %v348_v38, 4  ;;  %v2178_v60 = vld [vmem:[%s2804_s1 + $0xc8] sm:$0xff]  ;;  %v356_v62 = vshrl.u32 %v302_v53, 16  ;;  %v359_v63 = vshll.u32 %v302_v53, 16  ;;  %v2511_v2 = vld [vmem:[%s2432_s16 + $0x14] sm:$0x1] }
  0x1c   : > { %538 = vmatpush.bf16.msra.mxu1 %v2154_v13  ;;  %v370_v0 = vshrl.u32 %v303_v58, 16  ;;  %v2514_v3 = vld [vmem:[%s2432_s16 + $0x1c] sm:$0x1]  ;;  %v373_v4 = vshll.u32 %v303_v58, 16  ;;  %v2150_v6 = vld [vmem:[%s2804_s1] sm:$0xff]  ;;  %v603_v16 = vunpack.c.l.b16 %v576_v61  ;;  %v365_v20 = vshll.u32 %v2511_v2, 16 }
  0x1d   : > { %661 = vmatpush.bf16.msra.mxu2 %v2170_v14  ;;  %v335_v42 = vrot.slane %v334_v35, 4  ;;  %v354_v56 = vsel %vm2472_vm4, %v349_v48, %v353_v43  ;;  %v2166_v7 = vld [vmem:[%s2804_s1 + $0x80] sm:$0xff]  ;;  %v358_v9 = vrot.slane %v356_v62, 4  ;;  %v361_v10 = vrot.slane %v359_v63, 5  ;;  %v2148_v14 = vld [vmem:[%s2432_s16 + $0x4] sm:$0xf0] }
  0x1e   : > { %769 = vmatpush.bf16.msra.mxu3 %v2181_v15  ;;  %v401_v8 = vunpack.c.l.b16 %v354_v56  ;;  %v372_v11 = vrot.slane %v370_v0, 4  ;;  %v2177_v12 = vld [vmem:[%s2804_s1 + $0xc0] sm:$0xff]  ;;  %v602_v15 = vunpack.c.l.b16 %v572_v57  ;;  %v375_v17 = vrot.slane %v373_v4, 5  ;;  %v1817_v18 = vld [vmem:[%s2432_s16 + $0x8] sm:$0xf]  ;;  %v2211_v22 = vld [vmem:[%s2804_s1 + $0x1b8] sm:$0xff] }
  0x1f   : > { %460 = vmatpush.bf16.msra.mxu0 %v2161_v25  ;;  %v340_v52 = vsel %vm2472_vm4, %v335_v42, %v339_v37  ;;  %v1703_v13 = vld [vmem:[%s2432_s16] sm:$0xf]  ;;  %v2175_v19 = vld [vmem:[%s2432_s16 + $0xc] sm:$0xf0]  ;;  %v379_v21 = vshll.u32 %v2514_v3, 16  ;;  %v2192_v23 = vld [vmem:[%s2804_s1 + $0x138] sm:$0xff]  ;;  %v362_v24 = vor.u32 %v361_v10, %v358_v9 }
  0x20   : > { %539 = vmatpush.bf16.msra.mxu1 %v2153_v26  ;;  %v400_v1 = vunpack.c.l.b16 %v340_v52  ;;  %v376_v25 = vor.u32 %v375_v17, %v372_v11  ;;  %v556_v26 = vld [vmem:[%s2432_s16 + $0x10] sm:$0xe]  ;;  %v1704_v28 = vor.u32 %v2148_v14, %v1703_v13  ;;  %v557_v29 = vld [vmem:[%s2432_s16 + $0x18] sm:$0xe]  ;;  %v606_v30 = vpack.c.b16 %v603_v16, %v602_v15  ;;  %v1855_v45 = vld [vmem:[%s2432_s16 + $0x8] sm:$0xf] }
  0x21   : > { %662 = vmatpush.bf16.msra.mxu2 %v2169_v31  ;;  %v1818_v31 = vor.u32 %v2175_v19, %v1817_v18  ;;  %v2219_v33 = vld [vmem:[%s2804_s1 + $0x1f8] sm:$0xff]  ;;  %v367_v34 = vrot.slane %v365_v20, 5  ;;  %v381_v35 = vrot.slane %v379_v21, 5  ;;  %v1743_v36 = vrot.slane %v556_v26, 9  ;;  %v2210_v38 = vld [vmem:[%s2804_s1 + $0x1b0] sm:$0xff]  ;;  %v2209_v51 = vld [vmem:[%s2804_s1 + $0x1a8] sm:$0xff] }
  0x22   : > { %770 = vmatpush.bf16.msra.mxu3 %v2180_v32  ;;  %v404_v27 = vpack.c.b16 %v401_v8, %v400_v1  ;;  %v2200_v32 = vld [vmem:[%s2804_s1 + $0x178] sm:$0xff]  ;;  %v579_v37 = vrot.slane %v2511_v2, 5  ;;  %v377_v42 = vrot.slane %v376_v25, 4  ;;  %v1744_v43 = vrot.slane %v557_v29, 9  ;;  %v2218_v48 = vld [vmem:[%s2804_s1 + $0x1f0] sm:$0xff]  ;;  %v2190_v52 = vld [vmem:[%s2804_s1 + $0x128] sm:$0xff] }
  0x23   : > { %461 = vmatpush.bf16.msra.mxu0 %v2160_v39  ;;  %v2191_v39 = vld [vmem:[%s2804_s1 + $0x130] sm:$0xff]  ;;  %v583_v44 = vrot.slane %v2514_v3, 5  ;;  %v2198_v56 = vld [vmem:[%s2804_s1 + $0x168] sm:$0xff]  ;;  %v798_v58 = vshrl.u32 %v1855_v45, 16  ;;  %v2208_v62 = vld [vmem:[%s2804_s1 + $0x1a0] sm:$0xff]  ;;  %s1648_s29 = sshll.u32 %s2825_s22, 3 }
  0x24   : > { %540 = vmatpush.bf16.msra.mxu1 %v2152_v40  ;;  %v363_v40 = vrot.slane %v362_v24, 4  ;;  %v580_v50 = vsel %vm2484_vm5, %v1743_v36, %v579_v37  ;;  %v2217_v57 = vld [vmem:[%s2804_s1 + $0x1e8] sm:$0xff]  ;;  %v2189_v63 = vld [vmem:[%s2804_s1 + $0x120] sm:$0xff]  ;;  %v2591_v0 = vld [vmem:[%s2432_s16 + $0x10] sm:$0xf]  ;;  %s291_s21 = sadd.s32 %s1648_s29, %s2827_s20 }
  0x25   : > { %663 = vmatpush.bf16.msra.mxu2 %v2168_v46  ;;  %v1857_v46 = vld [vmem:[%s2432_s16 + $0x10] sm:$0xf]  ;;  %v2149_v2 = vld [vmem:[%s2432_s16 + $0x14] sm:$0xf0]  ;;  %v604_v3 = vunpack.c.l.b16 %v580_v50  ;;  %v2176_v9 = vld [vmem:[%s2432_s16 + $0x1c] sm:$0xf0] }
  0x26   : > { %771 = vmatpush.bf16.msra.mxu3 %v2179_v47  ;;  %v2199_v47 = vld [vmem:[%s2804_s1 + $0x170] sm:$0xff]  ;;  %v368_v53 = vsel %vm2472_vm4, %v363_v40, %v367_v34  ;;  %v815_v61 = vshll.u32 %v1857_v46, 16  ;;  %v2601_v10 = vld [vmem:[%s2432_s16 + $0xc] sm:$0x1]  ;;  %v800_v13 = vrot.slane %v798_v58, 4  ;;  %v2197_v17 = vld [vmem:[%s2804_s1 + $0x160] sm:$0xff] }
  0x27   : > { %462 = vmatpush.bf16.msra.mxu0 %v2159_v54  ;;  %v382_v54 = vsel %vm2472_vm4, %v377_v42, %v381_v35  ;;  %v2029_v1 = vld [vmem:[%s2432_s16 + $0x10] sm:$0xf]  ;;  %v1858_v18 = vld [vmem:[%s2432_s16 + $0x14] sm:$0x1]  ;;  %v2216_v21 = vld [vmem:[%s2804_s1 + $0x1e0] sm:$0xff]  ;;  %v807_v25 = vshll.u32 %v2601_v10, 16 }
  0x28   : > { %541 = vmatpush.bf16.msra.mxu1 %v2151_v55  ;;  %v584_v55 = vsel %vm2484_vm5, %v1744_v43, %v583_v44  ;;  %v403_v8 = vunpack.c.l.b16 %v382_v54  ;;  %v1190_v11 = vshrl.u32 %v2029_v1, 16  ;;  %v817_v16 = vrot.slane %v815_v61, 5  ;;  %v1911_v26 = vld [vmem:[%s2432_s16 + $0x8] sm:$0xe]  ;;  %v2188_v29 = vld [vmem:[%s2804_s1 + $0x118] sm:$0xff]  ;;  %v2195_v54 = vld [vmem:[%s2804_s1 + $0x150] sm:$0xff] }
  0x29   : > { %664 = vmatpush.bf16.msra.mxu2 %v2167_v59  ;;  %v801_v59 = vshll.u32 %v1855_v45, 16  ;;  %v605_v4 = vunpack.c.l.b16 %v584_v55  ;;  %v821_v37 = vshll.u32 %v1858_v18, 16  ;;  %v1915_v40 = vrot.slane %v1911_v26, 9  ;;  %v2196_v45 = vld [vmem:[%s2804_s1 + $0x158] sm:$0xff]  ;;  %v2214_v55 = vld [vmem:[%s2804_s1 + $0x1d0] sm:$0xff]  ;;  %v2186_v61 = vld [vmem:[%s2804_s1 + $0x108] sm:$0xff] }
  0x2a   : > { %772 = vmatpush.bf16.msra.mxu3 %v2178_v60  ;;  %v812_v60 = vshrl.u32 %v1857_v46, 16  ;;  %v963_v42 = vrot.slane %v2601_v10, 5  ;;  %v967_v44 = vrot.slane %v1858_v18, 5  ;;  %v2215_v46 = vld [vmem:[%s2804_s1 + $0x1d8] sm:$0xff]  ;;  %v2194_v18 = vld [vmem:[%s2804_s1 + $0x148] sm:$0xff]  ;;  %s1649_s30 = sshll.u32 %s291_s21, 3 }
  0x2b   : > { %463 = vmatpush.bf16.msra.mxu0 %v2158_v5  ;;  %v2596_v5 = vld [vmem:[%s2432_s16 + $0x18] sm:$0xf]  ;;  %v803_v14 = vrot.slane %v801_v59, 5  ;;  %v823_v59 = vrot.slane %v821_v37, 5  ;;  %v2706_v37 = vld [vmem:[%s2432_s16 + $0x24] sm:$0x1]  ;;  %s293_s7 = scalar_lea.vmem %s2809_s6, %s1649_s30 }
  0x2c   : > { %542 = vmatpush.bf16.msra.mxu1 %v2150_v6  ;;  %v2031_v6 = vld [vmem:[%s2432_s16 + $0x18] sm:$0xf]  ;;  %v814_v15 = vrot.slane %v812_v60, 4  ;;  %v1822_v24 = vor.u32 %v2176_v9, %v2596_v5  ;;  %v2205_v60 = vld [vmem:[%s2804_s1 + $0x188] sm:$0xff] }
  0x2d   : > { %665 = vmatpush.bf16.msra.mxu2 %v2166_v7  ;;  %v402_v7 = vunpack.c.l.b16 %v368_v53  ;;  %v1204_v19 = vshrl.u32 %v2031_v6, 16  ;;  %v1207_v20 = vshll.u32 %v2031_v6, 16  ;;  %v804_v35 = vor.u32 %v803_v14, %v800_v13  ;;  %v2035_v13 = vld [vmem:[%s2432_s16 + $0x28] sm:$0xf] }
  0x2e   : > { %773 = vmatpush.bf16.msra.mxu3 %v2177_v12  ;;  %464 = vmatmul.bf16.vlgmr.msra.gmra.mxu0 %v404_v27  ;;  %v1193_v12 = vshll.u32 %v2029_v1, 16  ;;  %v1912_v27 = vld [vmem:[%s2432_s16 + $0x10] sm:$0xe]  ;;  %v818_v36 = vor.u32 %v817_v16, %v814_v15  ;;  %v2662_v1 = vld [vmem:[%s2432_s16 + $0x14] sm:$0xf0] }
  0x2f   : > { %926 = vmatpush.bf16.msrb.mxu0 %v2192_v23  ;;  %543 = vmatmul.bf16.vlgmr.msra.gmra.mxu1 %v1704_v28  ;;  %v607_v23 = vpack.c.b16 %v605_v4, %v604_v3  ;;  %v2207_v28 = vld [vmem:[%s2804_s1 + $0x198] sm:$0xff]  ;;  %v405_v34 = vpack.c.b16 %v403_v8, %v402_v7  ;;  %v1916_v43 = vrot.slane %v1912_v27, 9  ;;  %v1861_v3 = vld [vmem:[%s2432_s16 + $0x20] sm:$0xf]  ;;  %v1232_v27 = vshrl.u32 %v2035_v13, 16 }
  0x30   : > { %666 = vmatmul.bf16.vlgmr.msra.gmra.mxu2 %v606_v30  ;;  %1050 = vmatpush.bf16.msrb.mxu1 %v2200_v32  ;;  %v1192_v30 = vrot.slane %v1190_v11, 4  ;;  %v1206_v32 = vrot.slane %v1204_v19, 4  ;;  %v819_v58 = vrot.slane %v818_v36, 4  ;;  %v2033_v8 = vld [vmem:[%s2432_s16 + $0x20] sm:$0xf]  ;;  %v840_v16 = vshrl.u32 %v1861_v3, 16 }
  0x31   : > { %1158 = vmatpush.bf16.msrb.mxu2 %v2211_v22  ;;  %774 = vmatmul.bf16.vlgmr.msra.gmra.mxu3 %v1818_v31  ;;  %v1708_v22 = vor.u32 %v2149_v2, %v2591_v0  ;;  %v1195_v31 = vrot.slane %v1193_v12, 5  ;;  %v2659_v0 = vld [vmem:[%s2432_s16 + $0x10] sm:$0xf]  ;;  %v1859_v2 = vld [vmem:[%s2432_s16 + $0x18] sm:$0xf]  ;;  %v2213_v19 = vld [vmem:[%s2804_s1 + $0x1c8] sm:$0xff] }
  0x32   : > { %1318 = vmatpush.bf16.msrb.mxu3 %v2219_v33  ;;  %v1209_v33 = vrot.slane %v1207_v20, 5  ;;  %v824_v10 = vsel %vm2472_vm4, %v819_v58, %v823_v59  ;;  %v826_v14 = vshrl.u32 %v1859_v2, 16  ;;  %v829_v15 = vshll.u32 %v1859_v2, 16  ;;  %v2226_v59 = vld [vmem:[%s2804_s1 + $0x230] sm:$0xff]  ;;  %v2203_v41 = vld [vmem:[%s2432_s16 + $0x24] sm:$0xf0] }
  0x33   : > { %927 = vmatpush.bf16.msrb.mxu0 %v2191_v39  ;;  %v2625_v39 = vld [vmem:[%s2432_s16 + $0x1c] sm:$0x1]  ;;  %v1196_v50 = vor.u32 %v1195_v31, %v1192_v30  ;;  %v1992_v20 = vor.u32 %v2662_v1, %v2659_v0  ;;  %v871_v31 = vunpack.c.l.b16 %v824_v10  ;;  %v1235_v36 = vshll.u32 %v2035_v13, 16  ;;  %v2224_v1 = vld [vmem:[%s2804_s1 + $0x220] sm:$0xff] }
  0x34   : > { %1051 = vmatpush.bf16.msrb.mxu1 %v2199_v47  ;;  %v2206_v47 = vld [vmem:[%s2804_s1 + $0x190] sm:$0xff]  ;;  %v1213_v53 = vshll.u32 %v2625_v39, 16 }
  0x35   : > { %1159 = vmatpush.bf16.msrb.mxu2 %v2210_v38  ;;  %v2622_v38 = vld [vmem:[%s2432_s16 + $0x14] sm:$0x1]  ;;  %v1197_v4 = vrot.slane %v1196_v50, 4 }
  0x36   : > { %1319 = vmatpush.bf16.msrb.mxu3 %v2218_v48  ;;  %v2187_v48 = vld [vmem:[%s2804_s1 + $0x110] sm:$0xff]  ;;  %v1215_v7 = vrot.slane %v1213_v53, 5  ;;  %v1237_v53 = vrot.slane %v1235_v36, 5 }
  0x37   : > { %928 = vmatpush.bf16.msrb.mxu0 %v2190_v52  ;;  %v1210_v52 = vor.u32 %v1209_v33, %v1206_v32  ;;  %v2227_v33 = vld [vmem:[%s2804_s1 + $0x238] sm:$0xff] }
  0x38   : > { %1052 = vmatpush.bf16.msrb.mxu1 %v2198_v56  ;;  %v805_v56 = vrot.slane %v804_v35, 4  ;;  %v2703_v35 = vld [vmem:[%s2432_s16 + $0x1c] sm:$0x1] }
  0x39   : > { %1160 = vmatpush.bf16.msrb.mxu2 %v2209_v51  ;;  %v1199_v51 = vshll.u32 %v2622_v38, 16  ;;  %v1211_v6 = vrot.slane %v1210_v52, 4  ;;  %v1234_v52 = vrot.slane %v1232_v27, 4 }
  0x3a   : > { %1320 = vmatpush.bf16.msrb.mxu3 %v2217_v57  ;;  %v809_v57 = vrot.slane %v807_v25, 5 }
  0x3b   : > { %929 = vmatpush.bf16.msrb.mxu0 %v2189_v63  ;;  %v968_v63 = vsel %vm2484_vm5, %v1916_v43, %v967_v44  ;;  %v1201_v5 = vrot.slane %v1199_v51, 5  ;;  %v1216_v26 = vsel %vm2472_vm4, %v1211_v6, %v1215_v7  ;;  %v842_v43 = vrot.slane %v840_v16, 4  ;;  %v1913_v6 = vld [vmem:[%s2432_s16 + $0x18] sm:$0xe] }
  0x3c   : > { %1053 = vmatpush.bf16.msrb.mxu1 %v2197_v17  ;;  %v810_v9 = vsel %vm2472_vm4, %v805_v56, %v809_v57  ;;  %v995_v12 = vunpack.c.l.b16 %v968_v63  ;;  %v843_v17 = vshll.u32 %v1861_v3, 16  ;;  %v2087_v56 = vld [vmem:[%s2432_s16 + $0x20] sm:$0xe]  ;;  %v849_v3 = vshll.u32 %v2706_v37, 16 }
  0x3d   : > { %1161 = vmatpush.bf16.msrb.mxu2 %v2208_v62  ;;  %v964_v62 = vsel %vm2484_vm5, %v1915_v40, %v963_v42  ;;  %v1202_v25 = vsel %vm2472_vm4, %v1197_v4, %v1201_v5  ;;  %v870_v30 = vunpack.c.l.b16 %v810_v9  ;;  %v828_v40 = vrot.slane %v826_v14, 4  ;;  %v1914_v9 = vld [vmem:[%s2432_s16 + $0x20] sm:$0xe]  ;;  %v2225_v14 = vld [vmem:[%s2804_s1 + $0x228] sm:$0xff] }
  0x3e   : > { %1321 = vmatpush.bf16.msrb.mxu3 %v2216_v21  ;;  %469 = vmatmul.bf16.gmra.mxu0 %v405_v34  ;;  %v994_v11 = vunpack.c.l.b16 %v964_v62  ;;  %v1218_v21 = vshrl.u32 %v2033_v8, 16  ;;  %v1493_v34 = vld [vmem:[%s2808_s5] sm:$0x3]  ;;  %v831_v42 = vrot.slane %v829_v15, 5  ;;  %v845_v44 = vrot.slane %v843_v17, 5 }
  0x3f   : > { %930 = vmatpush.bf16.msrb.mxu0 %v2188_v29  ;;  %548 = vmatmul.bf16.gmra.mxu1 %v1708_v22  ;;  %v1221_v22 = vshll.u32 %v2033_v8, 16  ;;  %v2212_v29 = vld [vmem:[%s2804_s1 + $0x1c0] sm:$0xff]  ;;  %v874_v57 = vpack.c.b16 %v871_v31, %v870_v30  ;;  %v1503_v58 = vsel %vm1501_vm6, %v1493_v34, 0  ;;  %v2091_v62 = vrot.slane %v2087_v56, 9  ;;  %v1468_v56 = vld [vmem:[%s1466_s9 + $0x10] sm:$0xff] }
  0x40   : > { %671 = vmatmul.bf16.gmra.mxu2 %v607_v23  ;;  %1054 = vmatpush.bf16.msrb.mxu1 %v2196_v45  ;;  %v2204_v23 = vld [vmem:[%s2804_s1 + $0x180] sm:$0xff]  ;;  %v998_v32 = vpack.c.b16 %v995_v12, %v994_v11  ;;  %v1262_v45 = vunpack.c.l.b16 %v1202_v25  ;;  %v1220_v50 = vrot.slane %v1218_v21, 4  ;;  %v832_v63 = vor.u32 %v831_v42, %v828_v40 }
  0x41   : > { %1162 = vmatpush.bf16.msrb.mxu2 %v2207_v28  ;;  %779 = vmatmul.bf16.gmra.mxu3 %v1822_v24  ;;  %v2185_v24 = vld [vmem:[%s2804_s1 + $0x100] sm:$0xff]  ;;  %v1223_v51 = vrot.slane %v1221_v22, 5  ;;  %v846_v2 = vor.u32 %v845_v44, %v842_v43  ;;  %v1238_v10 = vor.u32 %v1237_v53, %v1234_v52  ;;  %v851_v21 = vrot.slane %v849_v3, 5 }
  0x42   : > { %1322 = vmatpush.bf16.msrb.mxu3 %v2215_v46  ;;  %v2193_v28 = vld [vmem:[%s2804_s1 + $0x140] sm:$0xff]  ;;  %v1263_v46 = vunpack.c.l.b16 %v1216_v26  ;;  %v1917_v22 = vrot.slane %v1913_v6, 9  ;;  %v975_v25 = vrot.slane %v2706_v37, 5  ;;  %v2223_v37 = vld [vmem:[%s2804_s1 + $0x218] sm:$0xff] }
  0x43   : > { %931 = vmatpush.bf16.msrb.mxu0 %v2187_v48  ;;  %v2036_v48 = vld [vmem:[%s2432_s16 + $0x2c] sm:$0x1]  ;;  %v1224_v7 = vor.u32 %v1223_v51, %v1220_v50  ;;  %v1995_v43 = vld [vmem:[%s2432_s16 + $0x20] sm:$0xf] }
  0x44   : > { %1055 = vmatpush.bf16.msrb.mxu1 %v2195_v54  ;;  %v1266_v5 = vpack.c.b16 %v1263_v46, %v1262_v45  ;;  %v1241_v11 = vshll.u32 %v2036_v48, 16  ;;  %v1996_v50 = vor.u32 %v2203_v41, %v1995_v43  ;;  %v1467_v51 = vld [vmem:[%s1466_s9] sm:$0xff] }
  0x45   : > { %1163 = vmatpush.bf16.msrb.mxu2 %v2206_v47  ;;  %v2034_v47 = vld [vmem:[%s2432_s16 + $0x24] sm:$0x1]  ;;  %v1225_v27 = vrot.slane %v1224_v7, 4  ;;  %v2280_v52 = vld [vmem:[%s2806_s3] ss:$0 sm:$0xff] }
  0x46   : > { %1323 = vmatpush.bf16.msrb.mxu3 %v2214_v55  ;;  %v1363_v54 = vrot.slane %v2034_v47, 5  ;;  %v1367_v55 = vrot.slane %v2036_v48, 5  ;;  %v1227_v8 = vshll.u32 %v2034_v47, 16  ;;  %v1243_v0 = vrot.slane %v1241_v11, 5  ;;  %v2222_v47 = vld [vmem:[%s2804_s1 + $0x210] sm:$0xff] }
  0x47   : > { %932 = vmatpush.bf16.msrb.mxu0 %v2186_v61  ;;  %v2088_v61 = vld [vmem:[%s2432_s16 + $0x28] sm:$0xe]  ;;  %v1476_v3 = vmul.f32 %v2280_v52, %v1468_v56 }
  0x48   : > { %1056 = vmatpush.bf16.msrb.mxu1 %v2194_v18  ;;  %v2092_v4 = vrot.slane %v2088_v61, 9  ;;  %v1364_v12 = vsel %vm2484_vm5, %v2091_v62, %v1363_v54  ;;  %v833_v18 = vrot.slane %v832_v63, 4  ;;  %v2085_v54 = vld [vmem:[%s2432_s16 + $0x10] sm:$0xe]  ;;  %v2221_v61 = vld [vmem:[%s2804_s1 + $0x208] sm:$0xff] }
  0x49   : > { %1164 = vmatpush.bf16.msrb.mxu2 %v2205_v60  ;;  %v835_v60 = vshll.u32 %v2703_v35, 16  ;;  %v1388_v16 = vunpack.c.l.b16 %v1364_v12  ;;  %v2089_v62 = vrot.slane %v2085_v54, 9 }
  0x4a   : > { %1324 = vmatpush.bf16.msrb.mxu3 %v2213_v19  ;;  %v1368_v13 = vsel %vm2484_vm5, %v2092_v4, %v1367_v55  ;;  %v847_v19 = vrot.slane %v846_v2, 4  ;;  %v2086_v55 = vld [vmem:[%s2432_s16 + $0x18] sm:$0xe]  ;;  %v1475_v2 = vmul.f32 %v2280_v52, %v1467_v51  ;;  %v2281_v4 = vld [vmem:[%s2807_s4] ss:$0 sm:$0xff] }
  0x4b   : > { %933 = vmatpush.bf16.msrb.mxu0 %v2185_v24  ;;  %v837_v15 = vrot.slane %v835_v60, 5  ;;  %v1389_v17 = vunpack.c.l.b16 %v1368_v13  ;;  %v1918_v24 = vrot.slane %v1914_v9, 9  ;;  %v1359_v60 = vrot.slane %v2625_v39, 5 }
  0x4c   : > { %1057 = vmatpush.bf16.msrb.mxu1 %v2193_v28  ;;  %v1229_v28 = vrot.slane %v1227_v8, 5  ;;  %v852_v30 = vsel %vm2472_vm4, %v847_v19, %v851_v21  ;;  %v2090_v63 = vrot.slane %v2086_v55, 9  ;;  %v1483_v8 = vadd.f32 %v2281_v4, %v1475_v2 }
  0x4d   : > { %1165 = vmatpush.bf16.msrb.mxu2 %v2204_v23  ;;  %v971_v23 = vrot.slane %v2703_v35, 5  ;;  %v2732_v26 = vpack.c.b16 %v1389_v17, %v1388_v16  ;;  %v873_v36 = vunpack.c.l.b16 %v852_v30  ;;  %v1484_v9 = vadd.f32 %v2281_v4, %v1476_v3 }
  0x4e   : > { %1325 = vmatpush.bf16.msrb.mxu3 %v2212_v29  ;;  %934 = vmatmul.bf16.vlgmr.msrb.gmra.mxu0 %v874_v57  ;;  %v1239_v29 = vrot.slane %v1238_v10, 4  ;;  %v1469_v57 = vld [vmem:[%s1466_s9 + $0x20] sm:$0xff]  ;;  %v1360_v7 = vsel %vm2484_vm5, %v2090_v63, %v1359_v60 }
  0x4f   : > { %1442 = vmatpush.bf16.msra.mxu0 %v2227_v33  ;;  %1058 = vmatmul.bf16.vlgmr.msrb.gmra.mxu1 %v998_v32  ;;  %v972_v31 = vsel %vm2484_vm5, %v1917_v22, %v971_v23  ;;  %v976_v32 = vsel %vm2484_vm5, %v1918_v24, %v975_v25  ;;  %v1387_v13 = vunpack.c.l.b16 %v1360_v7 }
  0x50   : > { %1512 = vmatpush.bf16.msra.mxu1 %v1503_v58  ;;  %1166 = vmatmul.bf16.vlgmr.msrb.gmra.mxu2 %v1992_v20  ;;  %v838_v20 = vsel %vm2472_vm4, %v833_v18, %v837_v15  ;;  %v1244_v34 = vsel %vm2472_vm4, %v1239_v29, %v1243_v0  ;;  %v996_v40 = vunpack.c.l.b16 %v972_v31  ;;  %v997_v42 = vunpack.c.l.b16 %v976_v32 }
  0x51   : > { %2229 = vmatpush.bf16.msra.mxu2 %v2227_v33  ;;  %1326 = vmatmul.bf16.vlgmr.msrb.gmra.mxu3 %v1266_v5  ;;  %v1230_v33 = vsel %vm2472_vm4, %v1225_v27, %v1229_v28  ;;  %v872_v35 = vunpack.c.l.b16 %v838_v20  ;;  %v1265_v45 = vunpack.c.l.b16 %v1244_v34  ;;  %v2220_v5 = vld [vmem:[%s2804_s1 + $0x200] sm:$0xff]  ;;  %v1488_v15 = vmax.f32 %v1484_v9, 0.0 }
  0x52   : > { %2237 = vmatpush.bf16.msra.mxu3 %v1503_v58  ;;  %v1264_v44 = vunpack.c.l.b16 %v1230_v33  ;;  %v999_v48 = vpack.c.b16 %v997_v42, %v996_v40  ;;  %v1470_v58 = vld [vmem:[%s1466_s9 + $0x30] sm:$0xff] }
  0x53   : > { %1443 = vmatpush.bf16.msra.mxu0 %v2226_v59  ;;  %v875_v46 = vpack.c.b16 %v873_v36, %v872_v35  ;;  %v1478_v39 = vmul.f32 %v2280_v52, %v1470_v58 }
  0x54   : > { %v1267_v53 = vpack.c.b16 %v1265_v45, %v1264_v44 }
  0x55   : > { %2230 = vmatpush.bf16.msra.mxu2 %v2226_v59  ;;  %v1355_v59 = vrot.slane %v2622_v38, 5  ;;  %v1477_v38 = vmul.f32 %v2280_v52, %v1469_v57  ;;  %v1486_v11 = vadd.f32 %v2281_v4, %v1478_v39 }
  0x57   : > { %1444 = vmatpush.bf16.msra.mxu0 %v2225_v14  ;;  %v1356_v6 = vsel %vm2484_vm5, %v2089_v62, %v1355_v59  ;;  %v1485_v10 = vadd.f32 %v2281_v4, %v1477_v38  ;;  %v1490_v17 = vmax.f32 %v1486_v11, 0.0 }
  0x58   : > { %v1386_v12 = vunpack.c.l.b16 %v1356_v6 }
  0x59   : > { %2231 = vmatpush.bf16.msra.mxu2 %v2225_v14  ;;  %v1487_v14 = vmax.f32 %v1483_v8, 0.0  ;;  %v1489_v16 = vmax.f32 %v1485_v10, 0.0 }
  0x5a   : > { %v1390_v18 = vpack.c.b16 %v1387_v13, %v1386_v12 }
  0x5b   : > { %1445 = vmatpush.bf16.msra.mxu0 %v2224_v1  ;;  %v1491_v19 = vpack.c.bf16 %v1488_v15, %v1487_v14  ;;  %v1492_v21 = vpack.c.bf16 %v1490_v17, %v1489_v16 }
  0x5d   : > { %2232 = vmatpush.bf16.msra.mxu2 %v2224_v1 }
  0x5e   : > { %939 = vmatmul.bf16.gmra.mxu0 %v875_v46 }
  0x5f   : > { %1446 = vmatpush.bf16.msra.mxu0 %v2223_v37  ;;  %1063 = vmatmul.bf16.gmra.mxu1 %v999_v48 }
  0x60   : > { %1171 = vmatmul.bf16.gmra.mxu2 %v1996_v50 }
  0x61   : > { %2233 = vmatpush.bf16.msra.mxu2 %v2223_v37  ;;  %1331 = vmatmul.bf16.gmra.mxu3 %v1267_v53 }
  0x63   : > { %1447 = vmatpush.bf16.msra.mxu0 %v2222_v47 }
  0x65   : > { %2234 = vmatpush.bf16.msra.mxu2 %v2222_v47 }
  0x67   : > { %1448 = vmatpush.bf16.msra.mxu0 %v2221_v61 }
  0x69   : > { %2235 = vmatpush.bf16.msra.mxu2 %v2221_v61 }
  0x6b   : > { %1449 = vmatpush.bf16.msra.mxu0 %v2220_v5 }
  0x6d   : > { %2236 = vmatpush.bf16.msra.mxu2 %v2220_v5 }
  0x6e   : > { %1450 = vmatmul.bf16.vlgmr.msra.gmra.mxu0 %v1390_v18 }
  0x6f   : > { %2142 = vmatmul.msk.bf16.vlgmr.msra.gmra.mxu1 %vm1494_vm7, %v1491_v19 }
  0x70   : > { %1455 = vmatmul.bf16.vlgmr.msra.gmra.mxu2 %v2732_v26 }
  0x71   : > { %2143 = vmatmul.msk.bf16.vlgmr.msra.gmra.mxu3 %vm1494_vm7, %v1492_v21 }
  0xab   : > { %v465_v49 = vpop.f32.mrf.mxu0 }
  0xac   : > { %v544_v22 = vpop.f32.mrf.mxu1 }
  0xad   : > { %v545_v43 = vadd.f32 %v544_v22, %v465_v49 }
  0xb3   : > { %v667_v23 = vpop.f32.mrf.mxu2  ;;  %v467_v25 = vpop.f32.mrf.mxu0 }
  0xb4   : > { %v775_v24 = vpop.f32.mrf.mxu3  ;;  %v546_v27 = vpop.f32.mrf.mxu1  ;;  %v677_v41 = vadd.f32 %v667_v23, %v545_v43 }
  0xb5   : > { %v547_v51 = vadd.f32 %v546_v27, %v467_v25 }
  0xb6   : > { %v785_v50 = vadd.f32 %v775_v24, %v677_v41 }
  0xbb   : > { %v669_v28 = vpop.f32.mrf.mxu2  ;;  %v470_v0 = vpop.f32.mrf.mxu0 }
  0xbc   : > { %v777_v29 = vpop.f32.mrf.mxu3  ;;  %v549_v1 = vpop.f32.mrf.mxu1  ;;  %v678_v54 = vadd.f32 %v669_v28, %v547_v51 }
  0xbd   : > { %v550_v48 = vadd.f32 %v549_v1, %v470_v0 }
  0xbe   : > { %v786_v61 = vadd.f32 %v777_v29, %v678_v54 }
  0xc3   : > { %v672_v20 = vpop.f32.mrf.mxu2  ;;  %v472_v31 = vpop.f32.mrf.mxu0 }
  0xc4   : > { %v780_v30 = vpop.f32.mrf.mxu3  ;;  %v551_v32 = vpop.f32.mrf.mxu1  ;;  %v679_v53 = vadd.f32 %v672_v20, %v550_v48 }
  0xc5   : > { %v552_v63 = vadd.f32 %v551_v32, %v472_v31 }
  0xc6   : > { %v787_v60 = vadd.f32 %v780_v30, %v679_v53 }
  0xcb   : > { %v674_v33 = vpop.f32.mrf.mxu2  ;;  %v935_v26 = vpop.f32.mrf.mxu0 }
  0xcc   : > { %v782_v34 = vpop.f32.mrf.mxu3  ;;  %v1059_v35 = vpop.f32.mrf.mxu1  ;;  %v945_v52 = vadd.f32 %v935_v26, %v785_v50  ;;  %v680_v4 = vadd.f32 %v674_v33, %v552_v63 }
  0xce   : > { %v1069_v58 = vadd.f32 %v1059_v35, %v945_v52  ;;  %v788_v11 = vadd.f32 %v782_v34, %v680_v4 }
  0xd3   : > { %v1167_v36 = vpop.f32.mrf.mxu2  ;;  %v937_v40 = vpop.f32.mrf.mxu0 }
  0xd4   : > { %v1327_v37 = vpop.f32.mrf.mxu3  ;;  %v1061_v42 = vpop.f32.mrf.mxu1  ;;  %v1177_v62 = vadd.f32 %v1167_v36, %v1069_v58  ;;  %v946_v3 = vadd.f32 %v937_v40, %v786_v61 }
  0xd6   : > { %v1337_v38 = vadd.f32 %v1327_v37, %v1177_v62  ;;  %v1070_v8 = vadd.f32 %v1061_v42, %v946_v3 }
  0xdb   : > { %v1169_v44 = vpop.f32.mrf.mxu2  ;;  %v940_v46 = vpop.f32.mrf.mxu0 }
  0xdc   : > { %v1329_v45 = vpop.f32.mrf.mxu3  ;;  %v1064_v47 = vpop.f32.mrf.mxu1  ;;  %v947_v2 = vadd.f32 %v940_v46, %v787_v60  ;;  %v1178_v13 = vadd.f32 %v1169_v44, %v1070_v8 }
  0xde   : > { %v1071_v5 = vadd.f32 %v1064_v47, %v947_v2  ;;  %v1338_v17 = vadd.f32 %v1329_v45, %v1178_v13 }
  0xe3   : > { %v1172_v55 = vpop.f32.mrf.mxu2  ;;  %v942_v57 = vpop.f32.mrf.mxu0 }
  0xe4   : > { %v1332_v56 = vpop.f32.mrf.mxu3  ;;  %v1066_v59 = vpop.f32.mrf.mxu1  ;;  %v1179_v12 = vadd.f32 %v1172_v55, %v1071_v5  ;;  %v948_v15 = vadd.f32 %v942_v57, %v788_v11 }
  0xe6   : > { %v1339_v16 = vadd.f32 %v1332_v56, %v1179_v12  ;;  %v1072_v19 = vadd.f32 %v1066_v59, %v948_v15 }
  0xeb   : > { %v1174_v39 = vpop.f32.mrf.mxu2  ;;  %v1451_v7 = vpop.f32.mrf.mxu0 }
  0xec   : > { %v1334_v6 = vpop.f32.mrf.mxu3  ;;  %v1461_v9 = vadd.f32 %v1451_v7, %v1337_v38  ;;  %v1514_v10 = vpop.f32.mrf.mxu1  ;;  %v1180_v24 = vadd.f32 %v1174_v39, %v1072_v19 }
  0xee   : > { %v1524_v14 = vadd.f32 %v1514_v10, %v1461_v9  ;;  %v1340_v29 = vadd.f32 %v1334_v6, %v1180_v24 }
  0xf0   : > { %1528 = vst [vmem:[%s293_s7] sm:$0xff] %v1524_v14 }
  0xf3   : > { %v1456_v18 = vpop.f32.mrf.mxu2  ;;  %v1453_v22 = vpop.f32.mrf.mxu0 }
  0xf4   : > { %v1463_v21 = vadd.f32 %v1456_v18, %v1339_v16  ;;  %v1519_v49 = vpop.f32.mrf.mxu3  ;;  %v1462_v23 = vadd.f32 %v1453_v22, %v1338_v17  ;;  %v1516_v27 = vpop.f32.mrf.mxu1 }
  0xf6   : > { %v1526_v25 = vadd.f32 %v1519_v49, %v1463_v21  ;;  %v1525_v28 = vadd.f32 %v1516_v27, %v1462_v23 }
  0xf8   : > { %1530 = vst [vmem:[%s293_s7 + $0x10] sm:$0xff] %v1526_v25 }
  0xf9   : > { %1529 = vst [vmem:[%s293_s7 + $0x8] sm:$0xff] %v1525_v28 }
  0xfb   : > { %v1458_v0 = vpop.f32.mrf.mxu2 }
  0xfc   : > { %v1464_v1 = vadd.f32 %v1458_v0, %v1340_v29  ;;  %v1521_v20 = vpop.f32.mrf.mxu3 }
  0xfe   : > { %v1527_v30 = vadd.f32 %v1521_v20, %v1464_v1 }
 0x100   : > { %1531 = vst [vmem:[%s293_s7 + $0x18] sm:$0xff] %v1527_v30 }
 0x101 PF: > { %s16_s25 = sadd.s32 1, %s2320_s25   ;;  %s2814_s21 = smov %s2312_s23 }
 0x102   : > { %p13_p7 = scmp.ge.s32.totalorder %s16_s25, 6   ;;  %s2815_s22 = smov %s2316_s24 }
 0x103   : > { %s2816_s23 = smov %s2819_s26  ;;  %s2817_s24 = smov %s2823_s27 }
 0x104   :  { %15 = sbr.rel (!%p13_p7) target bundleno = 3 (0x3), region = 89 }

</bundles_post_ra>
